<compile_context>
chip_gen: v7x
topology: tpu7x:2x2x1
jax: 0.10.0
libtpu: 0.0.40
codegen_flags: <defaults>
</compile_context>

<pallas_src>
import functools
import math

import jax
import jax.numpy as jnp
from jax.experimental import pallas as pl
from jax.experimental.pallas import tpu as pltpu


# ---------------------------------------------------------------------------
# in-kernel helpers
# ---------------------------------------------------------------------------
def _layernorm(x, w, b, eps=1e-5):
    # x: (M, D) f32; w, b: (1, D) f32
    mu = jnp.mean(x, axis=-1, keepdims=True)
    xc = x - mu
    var = jnp.mean(xc * xc, axis=-1, keepdims=True)
    return xc * jax.lax.rsqrt(var + eps) * w + b


def _attention(q3, k3, v3, out_w, out_b, nheads):
    """Scaled-dot-product MHA given already-projected Q/K/V.

    q3: (B, Tq, D) f32, k3/v3: (B, Tk, D) f32, out_w: (D, D) bf16,
    out_b: (1, D) f32.  Returns (B*Tq, D) f32.

    Heads are handled with lane slices + a concat-free accumulation through
    the output projection (avoids the cross-lane concatenate relayout).
    """
    B, Tq, D = q3.shape
    hd = D // nheads
    scale = 1.0 / math.sqrt(hd)

    qb = q3.astype(jnp.bfloat16)
    kb = k3.astype(jnp.bfloat16)
    vb = v3.astype(jnp.bfloat16)

    acc = None
    for h in range(nheads):  # static unroll, H small
        sl = slice(h * hd, (h + 1) * hd)
        s = jnp.einsum('bqd,bkd->bqk', qb[:, :, sl], kb[:, :, sl],
                       preferred_element_type=jnp.float32) * scale
        s = s - jnp.max(s, axis=-1, keepdims=True)
        p = jnp.exp(s)
        p = p * pl.reciprocal(jnp.sum(p, axis=-1, keepdims=True), approx=True)
        o = jnp.einsum('bqk,bkd->bqd', p.astype(jnp.bfloat16), vb[:, :, sl],
                       preferred_element_type=jnp.float32)        # (B, Tq, hd)
        # fold head h directly through its slice of the output projection
        contrib = jnp.dot(o.reshape(B * Tq, hd).astype(jnp.bfloat16),
                          out_w[sl, :], preferred_element_type=jnp.float32)
        acc = contrib if acc is None else acc + contrib
    return acc + out_b


def _self_attention(q_in, v_in, qkv_w, qkv_b, out_w, out_b, nheads):
    # q_in == k_in source: (B, T, D); v_in: (B, T, D).  qkv_w: (D, 3D) bf16.
    B, T, D = q_in.shape
    xq = q_in.reshape(B * T, D).astype(jnp.bfloat16)
    xv = v_in.reshape(B * T, D).astype(jnp.bfloat16)
    # fused Q+K projection (one matmul, N = 2D), bias added once
    qk = jnp.dot(xq, qkv_w[:, :2 * D],
                 preferred_element_type=jnp.float32) + qkv_b[:, :2 * D]
    v = jnp.dot(xv, qkv_w[:, 2 * D:],
                preferred_element_type=jnp.float32) + qkv_b[:, 2 * D:]
    q3 = qk[:, :D].reshape(B, T, D)
    k3 = qk[:, D:].reshape(B, T, D)
    v3 = v.reshape(B, T, D)
    return _attention(q3, k3, v3, out_w, out_b, nheads)


def _cross_attention(q_in, k_in, v_in, qkv_w, qkv_b, out_w, out_b, nheads):
    # q_in: (B, Tq, D); k_in/v_in: (B, Tk, D).  qkv_w: (D, 3D) bf16.
    B, Tq, D = q_in.shape
    Tk = k_in.shape[1]
    q = jnp.dot(q_in.reshape(B * Tq, D).astype(jnp.bfloat16), qkv_w[:, :D],
                preferred_element_type=jnp.float32) + qkv_b[:, :D]
    k = jnp.dot(k_in.reshape(B * Tk, D).astype(jnp.bfloat16), qkv_w[:, D:2 * D],
                preferred_element_type=jnp.float32) + qkv_b[:, D:2 * D]
    v = jnp.dot(v_in.reshape(B * Tk, D).astype(jnp.bfloat16), qkv_w[:, 2 * D:],
                preferred_element_type=jnp.float32) + qkv_b[:, 2 * D:]
    return _attention(q.reshape(B, Tq, D), k.reshape(B, Tk, D),
                      v.reshape(B, Tk, D), out_w, out_b, nheads)


# ---------------------------------------------------------------------------
# fused multi-layer decoder kernel
# ---------------------------------------------------------------------------
def fused_decoder_kernel(nheads, num_layers, want_inter, *refs):
    # TODO(synk): tgt_mask / memory_mask / key_padding_mask not implemented.
    (tgt_ref, mem_ref, pos_ref, qpos_ref,
     sa_qkv_w, sa_qkv_b, sa_out_w, sa_out_b,
     ca_qkv_w, ca_qkv_b, ca_out_w, ca_out_b,
     l1_w, l1_b, l2_w, l2_b, ln_ref,
     fn_w, fn_b) = refs[:19]
    if want_inter:
        out_ref, inter_ref, resid = refs[19], refs[20], refs[21]
    else:
        out_ref, resid = refs[19], refs[20]
        inter_ref = None

    layer = pl.program_id(1)
    _, bc, T, D = tgt_ref.shape
    M = bc * T

    # initialize the resident residual stream at the first layer of this chunk
    @pl.when(layer == 0)
    def _():
        resid[...] = tgt_ref[0].reshape(M, D)

    x = resid[...]                        # (M, D) f32 residual stream
    qpos = qpos_ref[0].reshape(M, D)      # (M, D)
    mem = mem_ref[0]                      # (bc, S, D)
    pos = pos_ref[0]                      # (bc, S, D)
    ln = ln_ref[0]                        # (6, D) rows: ln1_w ln1_b ln2_w ln2_b ln3_w ln3_b

    # --- self attention: q = k = x + query_pos, v = x ---------------------
    sa = _self_attention((x + qpos).reshape(bc, T, D), x.reshape(bc, T, D),
                         sa_qkv_w[0], sa_qkv_b[0], sa_out_w[0], sa_out_b[0],
                         nheads)
    x = _layernorm(x + sa, ln[0:1, :], ln[1:2, :])

    # --- cross attention: q = x + query_pos, k = mem + pos, v = mem -------
    ca = _cross_attention((x + qpos).reshape(bc, T, D), mem + pos, mem,
                          ca_qkv_w[0], ca_qkv_b[0], ca_out_w[0], ca_out_b[0],
                          nheads)
    x = _layernorm(x + ca, ln[2:3, :], ln[3:4, :])

    # --- feed forward ------------------------------------------------------
    h = jnp.dot(x.astype(jnp.bfloat16), l1_w[0],
                preferred_element_type=jnp.float32) + l1_b[0]
    h = jnp.maximum(h, 0.0)
    ff = jnp.dot(h.astype(jnp.bfloat16), l2_w[0],
                 preferred_element_type=jnp.float32) + l2_b[0]
    x = _layernorm(x + ff, ln[4:5, :], ln[5:6, :])

    resid[...] = x

    if want_inter:
        y = _layernorm(x, fn_w[...], fn_b[...])
        inter_ref[0, 0] = y.reshape(bc, T, D)

        @pl.when(layer == num_layers - 1)
        def _():
            out_ref[0] = y.reshape(bc, T, D)
    else:
        @pl.when(layer == num_layers - 1)
        def _():
            out_ref[0] = _layernorm(x, fn_w[...], fn_b[...]).reshape(bc, T, D)


# ---------------------------------------------------------------------------
# wrapper
# ---------------------------------------------------------------------------
_LAYER_PARAM_ORDER = ('sa_qkv_w', 'sa_qkv_b', 'sa_out_w', 'sa_out_b',
                      'ca_qkv_w', 'ca_qkv_b', 'ca_out_w', 'ca_out_b',
                      'l1_w', 'l1_b', 'l2_w', 'l2_b', 'ln')
_MATMUL_WEIGHTS = ('sa_qkv_w', 'sa_out_w', 'ca_qkv_w', 'ca_out_w', 'l1_w', 'l2_w')


def _pick_block_b(B, max_bc=8):
    """Largest divisor of B (<= max_bc) that still leaves >= 2 parallel grid
    steps (so both TensorCores on v7x get work)."""
    best = 1
    for bc in range(1, min(B, max_bc) + 1):
        if B % bc == 0 and (B // bc >= 2 or B == 1):
            best = bc
    return best


def _stack_layer_params(layer_params):
    stacked = {}
    for k in _LAYER_PARAM_ORDER:
        w = jnp.stack([p[k] for p in layer_params], axis=0)
        if k in _MATMUL_WEIGHTS:        # MXU operands in bf16; biases/LN stay f32
            w = w.astype(jnp.bfloat16)
        stacked[k] = w
    return stacked


def transformer_decoder(tgt, memory, layer_params, final_norm, pos=None,
                        query_pos=None, nheads=4, return_intermediate=False,
                        block_b=None):
    """Mirrors TransformerDecoder.forward (eval mode, no masks).

    tgt: (T, B, D), memory: (S, B, D), pos: (S, B, D), query_pos: (T, B, D)
    (PyTorch seq-first).  Returns (T, B, D), or (num_layers, T, B, D) if
    return_intermediate.
    """
    T, B, D = tgt.shape
    S = memory.shape[0]
    L = len(layer_params)
    if pos is None:
        pos = jnp.zeros((S, B, D), jnp.float32)
    if query_pos is None:
        query_pos = jnp.zeros((T, B, D), jnp.float32)

    bc = _pick_block_b(B) if block_b is None else block_b
    nb = B // bc

    # batch-first, chunked: (nb, bc, seq, D)
    tgt_b = jnp.transpose(tgt, (1, 0, 2)).reshape(nb, bc, T, D).astype(jnp.float32)
    mem_b = jnp.transpose(memory, (1, 0, 2)).reshape(nb, bc, S, D).astype(jnp.float32)
    pos_b = jnp.transpose(pos, (1, 0, 2)).reshape(nb, bc, S, D).astype(jnp.float32)
    qpos_b = jnp.transpose(query_pos, (1, 0, 2)).reshape(nb, bc, T, D).astype(jnp.float32)

    stacked = _stack_layer_params(layer_params)
    weights = [stacked[k] for k in _LAYER_PARAM_ORDER]
    fn_w, fn_b = final_norm
    fn_w = fn_w.astype(jnp.float32)
    fn_b = fn_b.astype(jnp.float32)

    def chunk_spec(seq):
        return pl.BlockSpec((1, bc, seq, D), lambda b, l: (b, 0, 0, 0))

    def layer_spec(arr):
        return pl.BlockSpec((1,) + arr.shape[1:],
                            lambda b, l, _nd=arr.ndim: (l,) + (0,) * (_nd - 1))

    def const_spec(arr):
        return pl.BlockSpec(arr.shape, lambda b, l, _nd=arr.ndim: (0,) * _nd)

    in_specs = ([chunk_spec(T), chunk_spec(S), chunk_spec(S), chunk_spec(T)]
                + [layer_spec(w) for w in weights]
                + [const_spec(fn_w), const_spec(fn_b)])

    out_shapes = [jax.ShapeDtypeStruct((nb, bc, T, D), jnp.float32)]
    out_specs = [pl.BlockSpec((1, bc, T, D), lambda b, l: (b, 0, 0, 0))]
    if return_intermediate:
        out_shapes.append(jax.ShapeDtypeStruct((L, nb, bc, T, D), jnp.float32))
        out_specs.append(pl.BlockSpec((1, 1, bc, T, D),
                                      lambda b, l: (l, b, 0, 0, 0)))

    # TODO(synk): at real DETR sizes (D=256, FF=2048, S~850) set
    # pltpu.CompilerParams(vmem_limit_bytes=...) explicitly for v7x (64 MiB VMEM).
    outs = pl.pallas_call(
        functools.partial(fused_decoder_kernel, nheads, L, return_intermediate),
        out_shape=tuple(out_shapes) if return_intermediate else out_shapes[0],
        grid=(nb, L),
        in_specs=in_specs,
        out_specs=tuple(out_specs) if return_intermediate else out_specs[0],
        scratch_shapes=[pltpu.VMEM((bc * T, D), jnp.float32)],
        compiler_params=pltpu.CompilerParams(
            dimension_semantics=("parallel", "arbitrary")),
    )(tgt_b, mem_b, pos_b, qpos_b, *weights, fn_w, fn_b)

    if return_intermediate:
        _, inter = outs
        inter = inter.reshape(L, B, T, D)
        return jnp.transpose(inter, (0, 2, 1, 3))      # (L, T, B, D)

    out = outs.reshape(B, T, D)
    return jnp.transpose(out, (1, 0, 2))               # (T, B, D)


# ---------------------------------------------------------------------------
# deterministic parameter init (synthetic; no checkpoint load)
# ---------------------------------------------------------------------------
def init_layer_params(key, d_model, dim_ff):
    ks = jax.random.split(key, 6)
    s = 0.02

    def w(k, shape):
        return jax.random.normal(k, shape, jnp.float32) * s

    ln = jnp.concatenate(
        [jnp.ones((1, d_model), jnp.float32),
         jnp.zeros((1, d_model), jnp.float32)] * 3,
        axis=0)  # rows: ln1_w, ln1_b, ln2_w, ln2_b, ln3_w, ln3_b
    return {
        'sa_qkv_w': w(ks[0], (d_model, 3 * d_model)),
        'sa_qkv_b': jnp.zeros((1, 3 * d_model), jnp.float32),
        'sa_out_w': w(ks[1], (d_model, d_model)),
        'sa_out_b': jnp.zeros((1, d_model), jnp.float32),
        'ca_qkv_w': w(ks[2], (d_model, 3 * d_model)),
        'ca_qkv_b': jnp.zeros((1, 3 * d_model), jnp.float32),
        'ca_out_w': w(ks[3], (d_model, d_model)),
        'ca_out_b': jnp.zeros((1, d_model), jnp.float32),
        'l1_w': w(ks[4], (d_model, dim_ff)),
        'l1_b': jnp.zeros((1, dim_ff), jnp.float32),
        'l2_w': w(ks[5], (dim_ff, d_model)),
        'l2_b': jnp.zeros((1, d_model), jnp.float32),
        'ln': ln,
    }


if __name__ == "__main__":
    key = jax.random.PRNGKey(0)
    B, T, S, D, H, FF, L = 2, 8, 16, 32, 4, 64, 2

    k1, k2, k3, k4, k5 = jax.random.split(key, 5)
    tgt = jax.random.normal(k1, (T, B, D), jnp.float32)        # queries (seq-first)
    memory = jax.random.normal(k2, (S, B, D), jnp.float32)     # encoder memory
    pos = jax.random.normal(k3, (S, B, D), jnp.float32)        # memory pos embed
    query_pos = jax.random.normal(k4, (T, B, D), jnp.float32)  # query pos embed

    layer_keys = jax.random.split(k5, L)
    layer_params = [init_layer_params(k, D, FF) for k in layer_keys]
    final_norm = (jnp.ones((1, D), jnp.float32), jnp.zeros((1, D), jnp.float32))

    out = transformer_decoder(tgt, memory, layer_params, final_norm,
                              pos=pos, query_pos=query_pos, nheads=H,
                              return_intermediate=False)
    jax.block_until_ready(out)
    assert out.shape == (T, B, D)
    print("KERNEL_OK")
</pallas_src>

<mosaic_0001>
module attributes {stable_mosaic.version = 11 : i64} {
  func.func @fused_decoder_kernel(%arg0: i32, %arg1: i32, %arg2: memref<1x1x8x32xf32, #tpu.memory_space<vmem>>, %arg3: memref<1x1x16x32xf32, #tpu.memory_space<vmem>>, %arg4: memref<1x1x16x32xf32, #tpu.memory_space<vmem>>, %arg5: memref<1x1x8x32xf32, #tpu.memory_space<vmem>>, %arg6: memref<1x32x96xbf16, #tpu.memory_space<vmem>>, %arg7: memref<1x1x96xf32, #tpu.memory_space<vmem>>, %arg8: memref<1x32x32xbf16, #tpu.memory_space<vmem>>, %arg9: memref<1x1x32xf32, #tpu.memory_space<vmem>>, %arg10: memref<1x32x96xbf16, #tpu.memory_space<vmem>>, %arg11: memref<1x1x96xf32, #tpu.memory_space<vmem>>, %arg12: memref<1x32x32xbf16, #tpu.memory_space<vmem>>, %arg13: memref<1x1x32xf32, #tpu.memory_space<vmem>>, %arg14: memref<1x32x64xbf16, #tpu.memory_space<vmem>>, %arg15: memref<1x1x64xf32, #tpu.memory_space<vmem>>, %arg16: memref<1x64x32xbf16, #tpu.memory_space<vmem>>, %arg17: memref<1x1x32xf32, #tpu.memory_space<vmem>>, %arg18: memref<1x6x32xf32, #tpu.memory_space<vmem>>, %arg19: memref<1x32xf32, #tpu.memory_space<vmem>>, %arg20: memref<1x32xf32, #tpu.memory_space<vmem>>, %arg21: memref<1x1x8x32xf32, #tpu.memory_space<vmem>>, %arg22: memref<8x32xf32, #tpu.memory_space<vmem>>) attributes {dimension_semantics = [#tpu.dimension_semantics<parallel>, #tpu.dimension_semantics<arbitrary>], iteration_bounds = array<i64: 2, 2>, scalar_prefetch = 0 : i64, scratch_operands = 1 : i64, tpu.core_type = #tpu.core_type<tc>, window_params = [{transform_indices = @transform_0, window_bounds = array<i64: 1, 1, 8, 32>}, {transform_indices = @transform_1, window_bounds = array<i64: 1, 1, 16, 32>}, {transform_indices = @transform_2, window_bounds = array<i64: 1, 1, 16, 32>}, {transform_indices = @transform_3, window_bounds = array<i64: 1, 1, 8, 32>}, {transform_indices = @transform_4, window_bounds = array<i64: 1, 32, 96>}, {transform_indices = @transform_5, window_bounds = array<i64: 1, 1, 96>}, {transform_indices = @transform_6, window_bounds = array<i64: 1, 32, 32>}, {transform_indices = @transform_7, window_bounds = array<i64: 1, 1, 32>}, {transform_indices = @transform_8, window_bounds = array<i64: 1, 32, 96>}, {transform_indices = @transform_9, window_bounds = array<i64: 1, 1, 96>}, {transform_indices = @transform_10, window_bounds = array<i64: 1, 32, 32>}, {transform_indices = @transform_11, window_bounds = array<i64: 1, 1, 32>}, {transform_indices = @transform_12, window_bounds = array<i64: 1, 32, 64>}, {transform_indices = @transform_13, window_bounds = array<i64: 1, 1, 64>}, {transform_indices = @transform_14, window_bounds = array<i64: 1, 64, 32>}, {transform_indices = @transform_15, window_bounds = array<i64: 1, 1, 32>}, {transform_indices = @transform_16, window_bounds = array<i64: 1, 6, 32>}, {pipeline_mode = #tpu.pipeline_mode<synchronous>, transform_indices = @transform_17, window_bounds = array<i64: 1, 32>}, {pipeline_mode = #tpu.pipeline_mode<synchronous>, transform_indices = @transform_18, window_bounds = array<i64: 1, 32>}, {transform_indices = @transform_19, window_bounds = array<i64: 1, 1, 8, 32>}]} {
    %c0_i32 = arith.constant 0 : i32
    %0 = arith.cmpi eq, %arg1, %c0_i32 : i32
    %1 = arith.extui %0 : i1 to i32
    %c0_i32_0 = arith.constant 0 : i32
    %2 = arith.cmpi ne, %1, %c0_i32_0 : i32
    scf.if %2 {
      %c0_126 = arith.constant 0 : index
      %c0_127 = arith.constant 0 : index
      %c0_128 = arith.constant 0 : index
      %c0_129 = arith.constant 0 : index
      %361 = vector.load %arg2[%c0_126, %c0_127, %c0_128, %c0_129] : memref<1x1x8x32xf32, #tpu.memory_space<vmem>>, vector<1x1x8x32xf32>
      %362 = vector.shape_cast %361 : vector<1x1x8x32xf32> to vector<1x8x32xf32>
      %363 = vector.shape_cast %362 : vector<1x8x32xf32> to vector<8x32xf32>
      %c0_130 = arith.constant 0 : index
      %c0_131 = arith.constant 0 : index
      %364 = vector.load %arg22[%c0_130, %c0_131] : memref<8x32xf32, #tpu.memory_space<vmem>>, vector<8x32xf32>
      tpu.vector_store %arg22[%c0_130, %c0_131], %363 {strides = array<i32>} : memref<8x32xf32, #tpu.memory_space<vmem>>, vector<8x32xf32>,
    } else {
    }
    %c0 = arith.constant 0 : index
    %c0_1 = arith.constant 0 : index
    %3 = vector.load %arg22[%c0, %c0_1] : memref<8x32xf32, #tpu.memory_space<vmem>>, vector<8x32xf32>
    %c0_2 = arith.constant 0 : index
    %c0_3 = arith.constant 0 : index
    %c0_4 = arith.constant 0 : index
    %c0_5 = arith.constant 0 : index
    %4 = vector.load %arg5[%c0_2, %c0_3, %c0_4, %c0_5] : memref<1x1x8x32xf32, #tpu.memory_space<vmem>>, vector<1x1x8x32xf32>
    %5 = vector.shape_cast %4 : vector<1x1x8x32xf32> to vector<1x8x32xf32>
    %6 = vector.shape_cast %5 : vector<1x8x32xf32> to vector<8x32xf32>
    %c0_6 = arith.constant 0 : index
    %c0_7 = arith.constant 0 : index
    %c0_8 = arith.constant 0 : index
    %c0_9 = arith.constant 0 : index
    %7 = vector.load %arg3[%c0_6, %c0_7, %c0_8, %c0_9] : memref<1x1x16x32xf32, #tpu.memory_space<vmem>>, vector<1x1x16x32xf32>
    %8 = vector.shape_cast %7 : vector<1x1x16x32xf32> to vector<1x16x32xf32>
    %c0_10 = arith.constant 0 : index
    %c0_11 = arith.constant 0 : index
    %c0_12 = arith.constant 0 : index
    %c0_13 = arith.constant 0 : index
    %9 = vector.load %arg4[%c0_10, %c0_11, %c0_12, %c0_13] : memref<1x1x16x32xf32, #tpu.memory_space<vmem>>, vector<1x1x16x32xf32>
    %10 = vector.shape_cast %9 : vector<1x1x16x32xf32> to vector<1x16x32xf32>
    %c0_14 = arith.constant 0 : index
    %c0_15 = arith.constant 0 : index
    %c0_16 = arith.constant 0 : index
    %11 = vector.load %arg18[%c0_14, %c0_15, %c0_16] : memref<1x6x32xf32, #tpu.memory_space<vmem>>, vector<1x6x32xf32>
    %12 = vector.shape_cast %11 : vector<1x6x32xf32> to vector<6x32xf32>
    %13 = arith.addf %3, %6 : vector<8x32xf32>
    %14 = vector.shape_cast %13 : vector<8x32xf32> to vector<1x8x32xf32>
    %15 = vector.shape_cast %3 : vector<8x32xf32> to vector<1x8x32xf32>
    %c0_17 = arith.constant 0 : index
    %c0_18 = arith.constant 0 : index
    %c0_19 = arith.constant 0 : index
    %16 = vector.load %arg6[%c0_17, %c0_18, %c0_19] : memref<1x32x96xbf16, #tpu.memory_space<vmem>>, vector<1x32x96xbf16>
    %17 = vector.shape_cast %16 : vector<1x32x96xbf16> to vector<32x96xbf16>
    %c0_20 = arith.constant 0 : index
    %c0_21 = arith.constant 0 : index
    %c0_22 = arith.constant 0 : index
    %18 = vector.load %arg7[%c0_20, %c0_21, %c0_22] : memref<1x1x96xf32, #tpu.memory_space<vmem>>, vector<1x1x96xf32>
    %19 = vector.shape_cast %18 : vector<1x1x96xf32> to vector<1x96xf32>
    %c0_23 = arith.constant 0 : index
    %c0_24 = arith.constant 0 : index
    %c0_25 = arith.constant 0 : index
    %20 = vector.load %arg8[%c0_23, %c0_24, %c0_25] : memref<1x32x32xbf16, #tpu.memory_space<vmem>>, vector<1x32x32xbf16>
    %21 = vector.shape_cast %20 : vector<1x32x32xbf16> to vector<32x32xbf16>
    %c0_26 = arith.constant 0 : index
    %c0_27 = arith.constant 0 : index
    %c0_28 = arith.constant 0 : index
    %22 = vector.load %arg9[%c0_26, %c0_27, %c0_28] : memref<1x1x32xf32, #tpu.memory_space<vmem>>, vector<1x1x32xf32>
    %23 = vector.shape_cast %22 : vector<1x1x32xf32> to vector<1x32xf32>
    %24 = vector.shape_cast %14 : vector<1x8x32xf32> to vector<8x32xf32>
    %25 = arith.truncf %24 : vector<8x32xf32> to vector<8x32xbf16>
    %26 = vector.shape_cast %15 : vector<1x8x32xf32> to vector<8x32xf32>
    %27 = arith.truncf %26 : vector<8x32xf32> to vector<8x32xbf16>
    %28 = vector.extract_strided_slice %17 {offsets = [0, 0], sizes = [32, 64], strides = [1, 1]} : vector<32x96xbf16> to vector<32x64xbf16>
    %cst = arith.constant dense<0.000000e+00> : vector<8x64xf32>
    %29 = tpu.matmul %25, %28, %cst {dimension_numbers = #tpu.dot_dimension_numbers<[1], [0], [0], [1], [0, 0, 1, 1], [], []>} : vector<8x32xbf16>, vector<32x64xbf16>, vector<8x64xf32> -> vector<8x64xf32>
    %30 = vector.extract_strided_slice %19 {offsets = [0, 0], sizes = [1, 64], strides = [1, 1]} : vector<1x96xf32> to vector<1x64xf32>
    %31 = vector.broadcast %30 : vector<1x64xf32> to vector<8x64xf32>
    %32 = arith.addf %29, %31 : vector<8x64xf32>
    %33 = vector.extract_strided_slice %17 {offsets = [0, 64], sizes = [32, 32], strides = [1, 1]} : vector<32x96xbf16> to vector<32x32xbf16>
    %cst_29 = arith.constant dense<0.000000e+00> : vector<8x32xf32>
    %34 = tpu.matmul %27, %33, %cst_29 {dimension_numbers = #tpu.dot_dimension_numbers<[1], [0], [0], [1], [0, 0, 1, 1], [], []>} : vector<8x32xbf16>, vector<32x32xbf16>, vector<8x32xf32> -> vector<8x32xf32>
    %35 = vector.extract_strided_slice %19 {offsets = [0, 64], sizes = [1, 32], strides = [1, 1]} : vector<1x96xf32> to vector<1x32xf32>
    %36 = vector.broadcast %35 : vector<1x32xf32> to vector<8x32xf32>
    %37 = arith.addf %34, %36 : vector<8x32xf32>
    %38 = vector.extract_strided_slice %32 {offsets = [0, 0], sizes = [8, 32], strides = [1, 1]} : vector<8x64xf32> to vector<8x32xf32>
    %39 = vector.shape_cast %38 : vector<8x32xf32> to vector<1x8x32xf32>
    %40 = vector.extract_strided_slice %32 {offsets = [0, 32], sizes = [8, 32], strides = [1, 1]} : vector<8x64xf32> to vector<8x32xf32>
    %41 = vector.shape_cast %40 : vector<8x32xf32> to vector<1x8x32xf32>
    %42 = vector.shape_cast %37 : vector<8x32xf32> to vector<1x8x32xf32>
    %43 = arith.truncf %39 : vector<1x8x32xf32> to vector<1x8x32xbf16>
    %44 = arith.truncf %41 : vector<1x8x32xf32> to vector<1x8x32xbf16>
    %45 = arith.truncf %42 : vector<1x8x32xf32> to vector<1x8x32xbf16>
    %46 = vector.extract_strided_slice %43 {offsets = [0, 0, 0], sizes = [1, 8, 8], strides = [1, 1, 1]} : vector<1x8x32xbf16> to vector<1x8x8xbf16>
    %47 = vector.extract_strided_slice %44 {offsets = [0, 0, 0], sizes = [1, 8, 8], strides = [1, 1, 1]} : vector<1x8x32xbf16> to vector<1x8x8xbf16>
    "tpu.trace_start"() <{level = 10 : i32, message = "bqd,bkd->bqk"}> : () -> ()
    %cst_30 = arith.constant dense<0.000000e+00> : vector<1x8x8xf32>
    %48 = tpu.matmul %46, %47, %cst_30 {dimension_numbers = #tpu.dot_dimension_numbers<[2], [2], [1], [1], [0, 0, 0, 1, 1, 1], [0], [0]>} : vector<1x8x8xbf16>, vector<1x8x8xbf16>, vector<1x8x8xf32> -> vector<1x8x8xf32>
    "tpu.trace_stop"() : () -> ()
    %cst_31 = arith.constant 0.353553385 : f32
    %49 = vector.broadcast %cst_31 : f32 to vector<1x8x8xf32>
    %50 = arith.mulf %48, %49 : vector<1x8x8xf32>
    %cst_32 = arith.constant dense<0xFF800000> : vector<1x8xf32>
    %51 = vector.multi_reduction <maximumf>, %50, %cst_32 [2] : vector<1x8x8xf32> to vector<1x8xf32>
    %52 = vector.shape_cast %51 : vector<1x8xf32> to vector<1x8x1xf32>
    %53 = vector.broadcast %52 : vector<1x8x1xf32> to vector<1x8x8xf32>
    %54 = arith.subf %50, %53 : vector<1x8x8xf32>
    %55 = math.exp %54 : vector<1x8x8xf32>
    %cst_33 = arith.constant dense<0.000000e+00> : vector<1x8xf32>
    %56 = vector.multi_reduction <add>, %55, %cst_33 [2] : vector<1x8x8xf32> to vector<1x8xf32>
    %57 = vector.shape_cast %56 : vector<1x8xf32> to vector<1x8x1xf32>
    %58 = tpu.reciprocal %57 {approx = true} : vector<1x8x1xf32> -> vector<1x8x1xf32>
    %59 = vector.broadcast %58 : vector<1x8x1xf32> to vector<1x8x8xf32>
    %60 = arith.mulf %55, %59 : vector<1x8x8xf32>
    %61 = arith.truncf %60 : vector<1x8x8xf32> to vector<1x8x8xbf16>
    %62 = vector.extract_strided_slice %45 {offsets = [0, 0, 0], sizes = [1, 8, 8], strides = [1, 1, 1]} : vector<1x8x32xbf16> to vector<1x8x8xbf16>
    "tpu.trace_start"() <{level = 10 : i32, message = "bqk,bkd->bqd"}> : () -> ()
    %cst_34 = arith.constant dense<0.000000e+00> : vector<1x8x8xf32>
    %63 = tpu.matmul %61, %62, %cst_34 {dimension_numbers = #tpu.dot_dimension_numbers<[2], [1], [1], [2], [0, 0, 0, 1, 1, 2], [0], [0]>} : vector<1x8x8xbf16>, vector<1x8x8xbf16>, vector<1x8x8xf32> -> vector<1x8x8xf32>
    "tpu.trace_stop"() : () -> ()
    %64 = vector.shape_cast %63 : vector<1x8x8xf32> to vector<8x8xf32>
    %65 = arith.truncf %64 : vector<8x8xf32> to vector<8x8xbf16>
    %66 = vector.extract_strided_slice %21 {offsets = [0, 0], sizes = [8, 32], strides = [1, 1]} : vector<32x32xbf16> to vector<8x32xbf16>
    %cst_35 = arith.constant dense<0.000000e+00> : vector<8x32xf32>
    %67 = tpu.matmul %65, %66, %cst_35 {dimension_numbers = #tpu.dot_dimension_numbers<[1], [0], [0], [1], [0, 0, 1, 1], [], []>} : vector<8x8xbf16>, vector<8x32xbf16>, vector<8x32xf32> -> vector<8x32xf32>
    %68 = vector.extract_strided_slice %43 {offsets = [0, 0, 8], sizes = [1, 8, 8], strides = [1, 1, 1]} : vector<1x8x32xbf16> to vector<1x8x8xbf16>
    %69 = vector.extract_strided_slice %44 {offsets = [0, 0, 8], sizes = [1, 8, 8], strides = [1, 1, 1]} : vector<1x8x32xbf16> to vector<1x8x8xbf16>
    "tpu.trace_start"() <{level = 10 : i32, message = "bqd,bkd->bqk"}> : () -> ()
    %cst_36 = arith.constant dense<0.000000e+00> : vector<1x8x8xf32>
    %70 = tpu.matmul %68, %69, %cst_36 {dimension_numbers = #tpu.dot_dimension_numbers<[2], [2], [1], [1], [0, 0, 0, 1, 1, 1], [0], [0]>} : vector<1x8x8xbf16>, vector<1x8x8xbf16>, vector<1x8x8xf32> -> vector<1x8x8xf32>
    "tpu.trace_stop"() : () -> ()
    %cst_37 = arith.constant 0.353553385 : f32
    %71 = vector.broadcast %cst_37 : f32 to vector<1x8x8xf32>
    %72 = arith.mulf %70, %71 : vector<1x8x8xf32>
    %cst_38 = arith.constant dense<0xFF800000> : vector<1x8xf32>
    %73 = vector.multi_reduction <maximumf>, %72, %cst_38 [2] : vector<1x8x8xf32> to vector<1x8xf32>
    %74 = vector.shape_cast %73 : vector<1x8xf32> to vector<1x8x1xf32>
    %75 = vector.broadcast %74 : vector<1x8x1xf32> to vector<1x8x8xf32>
    %76 = arith.subf %72, %75 : vector<1x8x8xf32>
    %77 = math.exp %76 : vector<1x8x8xf32>
    %cst_39 = arith.constant dense<0.000000e+00> : vector<1x8xf32>
    %78 = vector.multi_reduction <add>, %77, %cst_39 [2] : vector<1x8x8xf32> to vector<1x8xf32>
    %79 = vector.shape_cast %78 : vector<1x8xf32> to vector<1x8x1xf32>
    %80 = tpu.reciprocal %79 {approx = true} : vector<1x8x1xf32> -> vector<1x8x1xf32>
    %81 = vector.broadcast %80 : vector<1x8x1xf32> to vector<1x8x8xf32>
    %82 = arith.mulf %77, %81 : vector<1x8x8xf32>
    %83 = arith.truncf %82 : vector<1x8x8xf32> to vector<1x8x8xbf16>
    %84 = vector.extract_strided_slice %45 {offsets = [0, 0, 8], sizes = [1, 8, 8], strides = [1, 1, 1]} : vector<1x8x32xbf16> to vector<1x8x8xbf16>
    "tpu.trace_start"() <{level = 10 : i32, message = "bqk,bkd->bqd"}> : () -> ()
    %cst_40 = arith.constant dense<0.000000e+00> : vector<1x8x8xf32>
    %85 = tpu.matmul %83, %84, %cst_40 {dimension_numbers = #tpu.dot_dimension_numbers<[2], [1], [1], [2], [0, 0, 0, 1, 1, 2], [0], [0]>} : vector<1x8x8xbf16>, vector<1x8x8xbf16>, vector<1x8x8xf32> -> vector<1x8x8xf32>
    "tpu.trace_stop"() : () -> ()
    %86 = vector.shape_cast %85 : vector<1x8x8xf32> to vector<8x8xf32>
    %87 = arith.truncf %86 : vector<8x8xf32> to vector<8x8xbf16>
    %88 = vector.extract_strided_slice %21 {offsets = [8, 0], sizes = [8, 32], strides = [1, 1]} : vector<32x32xbf16> to vector<8x32xbf16>
    %cst_41 = arith.constant dense<0.000000e+00> : vector<8x32xf32>
    %89 = tpu.matmul %87, %88, %cst_41 {dimension_numbers = #tpu.dot_dimension_numbers<[1], [0], [0], [1], [0, 0, 1, 1], [], []>} : vector<8x8xbf16>, vector<8x32xbf16>, vector<8x32xf32> -> vector<8x32xf32>
    %90 = arith.addf %67, %89 : vector<8x32xf32>
    %91 = vector.extract_strided_slice %43 {offsets = [0, 0, 16], sizes = [1, 8, 8], strides = [1, 1, 1]} : vector<1x8x32xbf16> to vector<1x8x8xbf16>
    %92 = vector.extract_strided_slice %44 {offsets = [0, 0, 16], sizes = [1, 8, 8], strides = [1, 1, 1]} : vector<1x8x32xbf16> to vector<1x8x8xbf16>
    "tpu.trace_start"() <{level = 10 : i32, message = "bqd,bkd->bqk"}> : () -> ()
    %cst_42 = arith.constant dense<0.000000e+00> : vector<1x8x8xf32>
    %93 = tpu.matmul %91, %92, %cst_42 {dimension_numbers = #tpu.dot_dimension_numbers<[2], [2], [1], [1], [0, 0, 0, 1, 1, 1], [0], [0]>} : vector<1x8x8xbf16>, vector<1x8x8xbf16>, vector<1x8x8xf32> -> vector<1x8x8xf32>
    "tpu.trace_stop"() : () -> ()
    %cst_43 = arith.constant 0.353553385 : f32
    %94 = vector.broadcast %cst_43 : f32 to vector<1x8x8xf32>
    %95 = arith.mulf %93, %94 : vector<1x8x8xf32>
    %cst_44 = arith.constant dense<0xFF800000> : vector<1x8xf32>
    %96 = vector.multi_reduction <maximumf>, %95, %cst_44 [2] : vector<1x8x8xf32> to vector<1x8xf32>
    %97 = vector.shape_cast %96 : vector<1x8xf32> to vector<1x8x1xf32>
    %98 = vector.broadcast %97 : vector<1x8x1xf32> to vector<1x8x8xf32>
    %99 = arith.subf %95, %98 : vector<1x8x8xf32>
    %100 = math.exp %99 : vector<1x8x8xf32>
    %cst_45 = arith.constant dense<0.000000e+00> : vector<1x8xf32>
    %101 = vector.multi_reduction <add>, %100, %cst_45 [2] : vector<1x8x8xf32> to vector<1x8xf32>
    %102 = vector.shape_cast %101 : vector<1x8xf32> to vector<1x8x1xf32>
    %103 = tpu.reciprocal %102 {approx = true} : vector<1x8x1xf32> -> vector<1x8x1xf32>
    %104 = vector.broadcast %103 : vector<1x8x1xf32> to vector<1x8x8xf32>
    %105 = arith.mulf %100, %104 : vector<1x8x8xf32>
    %106 = arith.truncf %105 : vector<1x8x8xf32> to vector<1x8x8xbf16>
    %107 = vector.extract_strided_slice %45 {offsets = [0, 0, 16], sizes = [1, 8, 8], strides = [1, 1, 1]} : vector<1x8x32xbf16> to vector<1x8x8xbf16>
    "tpu.trace_start"() <{level = 10 : i32, message = "bqk,bkd->bqd"}> : () -> ()
    %cst_46 = arith.constant dense<0.000000e+00> : vector<1x8x8xf32>
    %108 = tpu.matmul %106, %107, %cst_46 {dimension_numbers = #tpu.dot_dimension_numbers<[2], [1], [1], [2], [0, 0, 0, 1, 1, 2], [0], [0]>} : vector<1x8x8xbf16>, vector<1x8x8xbf16>, vector<1x8x8xf32> -> vector<1x8x8xf32>
    "tpu.trace_stop"() : () -> ()
    %109 = vector.shape_cast %108 : vector<1x8x8xf32> to vector<8x8xf32>
    %110 = arith.truncf %109 : vector<8x8xf32> to vector<8x8xbf16>
    %111 = vector.extract_strided_slice %21 {offsets = [16, 0], sizes = [8, 32], strides = [1, 1]} : vector<32x32xbf16> to vector<8x32xbf16>
    %cst_47 = arith.constant dense<0.000000e+00> : vector<8x32xf32>
    %112 = tpu.matmul %110, %111, %cst_47 {dimension_numbers = #tpu.dot_dimension_numbers<[1], [0], [0], [1], [0, 0, 1, 1], [], []>} : vector<8x8xbf16>, vector<8x32xbf16>, vector<8x32xf32> -> vector<8x32xf32>
    %113 = arith.addf %90, %112 : vector<8x32xf32>
    %114 = vector.extract_strided_slice %43 {offsets = [0, 0, 24], sizes = [1, 8, 8], strides = [1, 1, 1]} : vector<1x8x32xbf16> to vector<1x8x8xbf16>
    %115 = vector.extract_strided_slice %44 {offsets = [0, 0, 24], sizes = [1, 8, 8], strides = [1, 1, 1]} : vector<1x8x32xbf16> to vector<1x8x8xbf16>
    "tpu.trace_start"() <{level = 10 : i32, message = "bqd,bkd->bqk"}> : () -> ()
    %cst_48 = arith.constant dense<0.000000e+00> : vector<1x8x8xf32>
    %116 = tpu.matmul %114, %115, %cst_48 {dimension_numbers = #tpu.dot_dimension_numbers<[2], [2], [1], [1], [0, 0, 0, 1, 1, 1], [0], [0]>} : vector<1x8x8xbf16>, vector<1x8x8xbf16>, vector<1x8x8xf32> -> vector<1x8x8xf32>
    "tpu.trace_stop"() : () -> ()
    %cst_49 = arith.constant 0.353553385 : f32
    %117 = vector.broadcast %cst_49 : f32 to vector<1x8x8xf32>
    %118 = arith.mulf %116, %117 : vector<1x8x8xf32>
    %cst_50 = arith.constant dense<0xFF800000> : vector<1x8xf32>
    %119 = vector.multi_reduction <maximumf>, %118, %cst_50 [2] : vector<1x8x8xf32> to vector<1x8xf32>
    %120 = vector.shape_cast %119 : vector<1x8xf32> to vector<1x8x1xf32>
    %121 = vector.broadcast %120 : vector<1x8x1xf32> to vector<1x8x8xf32>
    %122 = arith.subf %118, %121 : vector<1x8x8xf32>
    %123 = math.exp %122 : vector<1x8x8xf32>
    %cst_51 = arith.constant dense<0.000000e+00> : vector<1x8xf32>
    %124 = vector.multi_reduction <add>, %123, %cst_51 [2] : vector<1x8x8xf32> to vector<1x8xf32>
    %125 = vector.shape_cast %124 : vector<1x8xf32> to vector<1x8x1xf32>
    %126 = tpu.reciprocal %125 {approx = true} : vector<1x8x1xf32> -> vector<1x8x1xf32>
    %127 = vector.broadcast %126 : vector<1x8x1xf32> to vector<1x8x8xf32>
    %128 = arith.mulf %123, %127 : vector<1x8x8xf32>
    %129 = arith.truncf %128 : vector<1x8x8xf32> to vector<1x8x8xbf16>
    %130 = vector.extract_strided_slice %45 {offsets = [0, 0, 24], sizes = [1, 8, 8], strides = [1, 1, 1]} : vector<1x8x32xbf16> to vector<1x8x8xbf16>
    "tpu.trace_start"() <{level = 10 : i32, message = "bqk,bkd->bqd"}> : () -> ()
    %cst_52 = arith.constant dense<0.000000e+00> : vector<1x8x8xf32>
    %131 = tpu.matmul %129, %130, %cst_52 {dimension_numbers = #tpu.dot_dimension_numbers<[2], [1], [1], [2], [0, 0, 0, 1, 1, 2], [0], [0]>} : vector<1x8x8xbf16>, vector<1x8x8xbf16>, vector<1x8x8xf32> -> vector<1x8x8xf32>
    "tpu.trace_stop"() : () -> ()
    %132 = vector.shape_cast %131 : vector<1x8x8xf32> to vector<8x8xf32>
    %133 = arith.truncf %132 : vector<8x8xf32> to vector<8x8xbf16>
    %134 = vector.extract_strided_slice %21 {offsets = [24, 0], sizes = [8, 32], strides = [1, 1]} : vector<32x32xbf16> to vector<8x32xbf16>
    %cst_53 = arith.constant dense<0.000000e+00> : vector<8x32xf32>
    %135 = tpu.matmul %133, %134, %cst_53 {dimension_numbers = #tpu.dot_dimension_numbers<[1], [0], [0], [1], [0, 0, 1, 1], [], []>} : vector<8x8xbf16>, vector<8x32xbf16>, vector<8x32xf32> -> vector<8x32xf32>
    %136 = arith.addf %113, %135 : vector<8x32xf32>
    %137 = vector.broadcast %23 : vector<1x32xf32> to vector<8x32xf32>
    %138 = arith.addf %136, %137 : vector<8x32xf32>
    %139 = arith.addf %3, %138 : vector<8x32xf32>
    %140 = vector.extract_strided_slice %12 {offsets = [0, 0], sizes = [1, 32], strides = [1, 1]} : vector<6x32xf32> to vector<1x32xf32>
    %141 = vector.extract_strided_slice %12 {offsets = [1, 0], sizes = [1, 32], strides = [1, 1]} : vector<6x32xf32> to vector<1x32xf32>
    %cst_54 = arith.constant dense<0.000000e+00> : vector<8xf32>
    %142 = vector.multi_reduction <add>, %139, %cst_54 [1] : vector<8x32xf32> to vector<8xf32>
    %143 = vector.shape_cast %142 : vector<8xf32> to vector<8x1xf32>
    %cst_55 = arith.constant 3.200000e+01 : f32
    %144 = vector.broadcast %cst_55 : f32 to vector<8x1xf32>
    %145 = arith.divf %143, %144 : vector<8x1xf32>
    %146 = vector.broadcast %145 : vector<8x1xf32> to vector<8x32xf32>
    %147 = arith.subf %139, %146 : vector<8x32xf32>
    %148 = arith.mulf %147, %147 : vector<8x32xf32>
    %cst_56 = arith.constant dense<0.000000e+00> : vector<8xf32>
    %149 = vector.multi_reduction <add>, %148, %cst_56 [1] : vector<8x32xf32> to vector<8xf32>
    %150 = vector.shape_cast %149 : vector<8xf32> to vector<8x1xf32>
    %cst_57 = arith.constant 3.200000e+01 : f32
    %151 = vector.broadcast %cst_57 : f32 to vector<8x1xf32>
    %152 = arith.divf %150, %151 : vector<8x1xf32>
    %cst_58 = arith.constant 9.99999974E-6 : f32
    %153 = vector.broadcast %cst_58 : f32 to vector<8x1xf32>
    %154 = arith.addf %152, %153 : vector<8x1xf32>
    %155 = math.rsqrt %154 : vector<8x1xf32>
    %156 = vector.broadcast %155 : vector<8x1xf32> to vector<8x32xf32>
    %157 = arith.mulf %147, %156 : vector<8x32xf32>
    %158 = vector.broadcast %140 : vector<1x32xf32> to vector<8x32xf32>
    %159 = arith.mulf %157, %158 : vector<8x32xf32>
    %160 = vector.broadcast %141 : vector<1x32xf32> to vector<8x32xf32>
    %161 = arith.addf %159, %160 : vector<8x32xf32>
    %162 = arith.addf %161, %6 : vector<8x32xf32>
    %163 = vector.shape_cast %162 : vector<8x32xf32> to vector<1x8x32xf32>
    %164 = arith.addf %8, %10 : vector<1x16x32xf32>
    %c0_59 = arith.constant 0 : index
    %c0_60 = arith.constant 0 : index
    %c0_61 = arith.constant 0 : index
    %165 = vector.load %arg10[%c0_59, %c0_60, %c0_61] : memref<1x32x96xbf16, #tpu.memory_space<vmem>>, vector<1x32x96xbf16>
    %166 = vector.shape_cast %165 : vector<1x32x96xbf16> to vector<32x96xbf16>
    %c0_62 = arith.constant 0 : index
    %c0_63 = arith.constant 0 : index
    %c0_64 = arith.constant 0 : index
    %167 = vector.load %arg11[%c0_62, %c0_63, %c0_64] : memref<1x1x96xf32, #tpu.memory_space<vmem>>, vector<1x1x96xf32>
    %168 = vector.shape_cast %167 : vector<1x1x96xf32> to vector<1x96xf32>
    %c0_65 = arith.constant 0 : index
    %c0_66 = arith.constant 0 : index
    %c0_67 = arith.constant 0 : index
    %169 = vector.load %arg12[%c0_65, %c0_66, %c0_67] : memref<1x32x32xbf16, #tpu.memory_space<vmem>>, vector<1x32x32xbf16>
    %170 = vector.shape_cast %169 : vector<1x32x32xbf16> to vector<32x32xbf16>
    %c0_68 = arith.constant 0 : index
    %c0_69 = arith.constant 0 : index
    %c0_70 = arith.constant 0 : index
    %171 = vector.load %arg13[%c0_68, %c0_69, %c0_70] : memref<1x1x32xf32, #tpu.memory_space<vmem>>, vector<1x1x32xf32>
    %172 = vector.shape_cast %171 : vector<1x1x32xf32> to vector<1x32xf32>
    %173 = vector.shape_cast %163 : vector<1x8x32xf32> to vector<8x32xf32>
    %174 = arith.truncf %173 : vector<8x32xf32> to vector<8x32xbf16>
    %175 = vector.extract_strided_slice %166 {offsets = [0, 0], sizes = [32, 32], strides = [1, 1]} : vector<32x96xbf16> to vector<32x32xbf16>
    %cst_71 = arith.constant dense<0.000000e+00> : vector<8x32xf32>
    %176 = tpu.matmul %174, %175, %cst_71 {dimension_numbers = #tpu.dot_dimension_numbers<[1], [0], [0], [1], [0, 0, 1, 1], [], []>} : vector<8x32xbf16>, vector<32x32xbf16>, vector<8x32xf32> -> vector<8x32xf32>
    %177 = vector.extract_strided_slice %168 {offsets = [0, 0], sizes = [1, 32], strides = [1, 1]} : vector<1x96xf32> to vector<1x32xf32>
    %178 = vector.broadcast %177 : vector<1x32xf32> to vector<8x32xf32>
    %179 = arith.addf %176, %178 : vector<8x32xf32>
    %180 = vector.shape_cast %164 : vector<1x16x32xf32> to vector<16x32xf32>
    %181 = arith.truncf %180 : vector<16x32xf32> to vector<16x32xbf16>
    %182 = vector.extract_strided_slice %166 {offsets = [0, 32], sizes = [32, 32], strides = [1, 1]} : vector<32x96xbf16> to vector<32x32xbf16>
    %cst_72 = arith.constant dense<0.000000e+00> : vector<16x32xf32>
    %183 = tpu.matmul %181, %182, %cst_72 {dimension_numbers = #tpu.dot_dimension_numbers<[1], [0], [0], [1], [0, 0, 1, 1], [], []>} : vector<16x32xbf16>, vector<32x32xbf16>, vector<16x32xf32> -> vector<16x32xf32>
    %184 = vector.extract_strided_slice %168 {offsets = [0, 32], sizes = [1, 32], strides = [1, 1]} : vector<1x96xf32> to vector<1x32xf32>
    %185 = vector.broadcast %184 : vector<1x32xf32> to vector<16x32xf32>
    %186 = arith.addf %183, %185 : vector<16x32xf32>
    %187 = vector.shape_cast %8 : vector<1x16x32xf32> to vector<16x32xf32>
    %188 = arith.truncf %187 : vector<16x32xf32> to vector<16x32xbf16>
    %189 = vector.extract_strided_slice %166 {offsets = [0, 64], sizes = [32, 32], strides = [1, 1]} : vector<32x96xbf16> to vector<32x32xbf16>
    %cst_73 = arith.constant dense<0.000000e+00> : vector<16x32xf32>
    %190 = tpu.matmul %188, %189, %cst_73 {dimension_numbers = #tpu.dot_dimension_numbers<[1], [0], [0], [1], [0, 0, 1, 1], [], []>} : vector<16x32xbf16>, vector<32x32xbf16>, vector<16x32xf32> -> vector<16x32xf32>
    %191 = vector.extract_strided_slice %168 {offsets = [0, 64], sizes = [1, 32], strides = [1, 1]} : vector<1x96xf32> to vector<1x32xf32>
    %192 = vector.broadcast %191 : vector<1x32xf32> to vector<16x32xf32>
    %193 = arith.addf %190, %192 : vector<16x32xf32>
    %194 = vector.shape_cast %179 : vector<8x32xf32> to vector<1x8x32xf32>
    %195 = vector.shape_cast %186 : vector<16x32xf32> to vector<1x16x32xf32>
    %196 = vector.shape_cast %193 : vector<16x32xf32> to vector<1x16x32xf32>
    %197 = arith.truncf %194 : vector<1x8x32xf32> to vector<1x8x32xbf16>
    %198 = arith.truncf %195 : vector<1x16x32xf32> to vector<1x16x32xbf16>
    %199 = arith.truncf %196 : vector<1x16x32xf32> to vector<1x16x32xbf16>
    %200 = vector.extract_strided_slice %197 {offsets = [0, 0, 0], sizes = [1, 8, 8], strides = [1, 1, 1]} : vector<1x8x32xbf16> to vector<1x8x8xbf16>
    %201 = vector.extract_strided_slice %198 {offsets = [0, 0, 0], sizes = [1, 16, 8], strides = [1, 1, 1]} : vector<1x16x32xbf16> to vector<1x16x8xbf16>
    "tpu.trace_start"() <{level = 10 : i32, message = "bqd,bkd->bqk"}> : () -> ()
    %cst_74 = arith.constant dense<0.000000e+00> : vector<1x8x16xf32>
    %202 = tpu.matmul %200, %201, %cst_74 {dimension_numbers = #tpu.dot_dimension_numbers<[2], [2], [1], [1], [0, 0, 0, 1, 1, 1], [0], [0]>} : vector<1x8x8xbf16>, vector<1x16x8xbf16>, vector<1x8x16xf32> -> vector<1x8x16xf32>
    "tpu.trace_stop"() : () -> ()
    %cst_75 = arith.constant 0.353553385 : f32
    %203 = vector.broadcast %cst_75 : f32 to vector<1x8x16xf32>
    %204 = arith.mulf %202, %203 : vector<1x8x16xf32>
    %cst_76 = arith.constant dense<0xFF800000> : vector<1x8xf32>
    %205 = vector.multi_reduction <maximumf>, %204, %cst_76 [2] : vector<1x8x16xf32> to vector<1x8xf32>
    %206 = vector.shape_cast %205 : vector<1x8xf32> to vector<1x8x1xf32>
    %207 = vector.broadcast %206 : vector<1x8x1xf32> to vector<1x8x16xf32>
    %208 = arith.subf %204, %207 : vector<1x8x16xf32>
    %209 = math.exp %208 : vector<1x8x16xf32>
    %cst_77 = arith.constant dense<0.000000e+00> : vector<1x8xf32>
    %210 = vector.multi_reduction <add>, %209, %cst_77 [2] : vector<1x8x16xf32> to vector<1x8xf32>
    %211 = vector.shape_cast %210 : vector<1x8xf32> to vector<1x8x1xf32>
    %212 = tpu.reciprocal %211 {approx = true} : vector<1x8x1xf32> -> vector<1x8x1xf32>
    %213 = vector.broadcast %212 : vector<1x8x1xf32> to vector<1x8x16xf32>
    %214 = arith.mulf %209, %213 : vector<1x8x16xf32>
    %215 = arith.truncf %214 : vector<1x8x16xf32> to vector<1x8x16xbf16>
    %216 = vector.extract_strided_slice %199 {offsets = [0, 0, 0], sizes = [1, 16, 8], strides = [1, 1, 1]} : vector<1x16x32xbf16> to vector<1x16x8xbf16>
    "tpu.trace_start"() <{level = 10 : i32, message = "bqk,bkd->bqd"}> : () -> ()
    %cst_78 = arith.constant dense<0.000000e+00> : vector<1x8x8xf32>
    %217 = tpu.matmul %215, %216, %cst_78 {dimension_numbers = #tpu.dot_dimension_numbers<[2], [1], [1], [2], [0, 0, 0, 1, 1, 2], [0], [0]>} : vector<1x8x16xbf16>, vector<1x16x8xbf16>, vector<1x8x8xf32> -> vector<1x8x8xf32>
    "tpu.trace_stop"() : () -> ()
    %218 = vector.shape_cast %217 : vector<1x8x8xf32> to vector<8x8xf32>
    %219 = arith.truncf %218 : vector<8x8xf32> to vector<8x8xbf16>
    %220 = vector.extract_strided_slice %170 {offsets = [0, 0], sizes = [8, 32], strides = [1, 1]} : vector<32x32xbf16> to vector<8x32xbf16>
    %cst_79 = arith.constant dense<0.000000e+00> : vector<8x32xf32>
    %221 = tpu.matmul %219, %220, %cst_79 {dimension_numbers = #tpu.dot_dimension_numbers<[1], [0], [0], [1], [0, 0, 1, 1], [], []>} : vector<8x8xbf16>, vector<8x32xbf16>, vector<8x32xf32> -> vector<8x32xf32>
    %222 = vector.extract_strided_slice %197 {offsets = [0, 0, 8], sizes = [1, 8, 8], strides = [1, 1, 1]} : vector<1x8x32xbf16> to vector<1x8x8xbf16>
    %223 = vector.extract_strided_slice %198 {offsets = [0, 0, 8], sizes = [1, 16, 8], strides = [1, 1, 1]} : vector<1x16x32xbf16> to vector<1x16x8xbf16>
    "tpu.trace_start"() <{level = 10 : i32, message = "bqd,bkd->bqk"}> : () -> ()
    %cst_80 = arith.constant dense<0.000000e+00> : vector<1x8x16xf32>
    %224 = tpu.matmul %222, %223, %cst_80 {dimension_numbers = #tpu.dot_dimension_numbers<[2], [2], [1], [1], [0, 0, 0, 1, 1, 1], [0], [0]>} : vector<1x8x8xbf16>, vector<1x16x8xbf16>, vector<1x8x16xf32> -> vector<1x8x16xf32>
    "tpu.trace_stop"() : () -> ()
    %cst_81 = arith.constant 0.353553385 : f32
    %225 = vector.broadcast %cst_81 : f32 to vector<1x8x16xf32>
    %226 = arith.mulf %224, %225 : vector<1x8x16xf32>
    %cst_82 = arith.constant dense<0xFF800000> : vector<1x8xf32>
    %227 = vector.multi_reduction <maximumf>, %226, %cst_82 [2] : vector<1x8x16xf32> to vector<1x8xf32>
    %228 = vector.shape_cast %227 : vector<1x8xf32> to vector<1x8x1xf32>
    %229 = vector.broadcast %228 : vector<1x8x1xf32> to vector<1x8x16xf32>
    %230 = arith.subf %226, %229 : vector<1x8x16xf32>
    %231 = math.exp %230 : vector<1x8x16xf32>
    %cst_83 = arith.constant dense<0.000000e+00> : vector<1x8xf32>
    %232 = vector.multi_reduction <add>, %231, %cst_83 [2] : vector<1x8x16xf32> to vector<1x8xf32>
    %233 = vector.shape_cast %232 : vector<1x8xf32> to vector<1x8x1xf32>
    %234 = tpu.reciprocal %233 {approx = true} : vector<1x8x1xf32> -> vector<1x8x1xf32>
    %235 = vector.broadcast %234 : vector<1x8x1xf32> to vector<1x8x16xf32>
    %236 = arith.mulf %231, %235 : vector<1x8x16xf32>
    %237 = arith.truncf %236 : vector<1x8x16xf32> to vector<1x8x16xbf16>
    %238 = vector.extract_strided_slice %199 {offsets = [0, 0, 8], sizes = [1, 16, 8], strides = [1, 1, 1]} : vector<1x16x32xbf16> to vector<1x16x8xbf16>
    "tpu.trace_start"() <{level = 10 : i32, message = "bqk,bkd->bqd"}> : () -> ()
    %cst_84 = arith.constant dense<0.000000e+00> : vector<1x8x8xf32>
    %239 = tpu.matmul %237, %238, %cst_84 {dimension_numbers = #tpu.dot_dimension_numbers<[2], [1], [1], [2], [0, 0, 0, 1, 1, 2], [0], [0]>} : vector<1x8x16xbf16>, vector<1x16x8xbf16>, vector<1x8x8xf32> -> vector<1x8x8xf32>
    "tpu.trace_stop"() : () -> ()
    %240 = vector.shape_cast %239 : vector<1x8x8xf32> to vector<8x8xf32>
    %241 = arith.truncf %240 : vector<8x8xf32> to vector<8x8xbf16>
    %242 = vector.extract_strided_slice %170 {offsets = [8, 0], sizes = [8, 32], strides = [1, 1]} : vector<32x32xbf16> to vector<8x32xbf16>
    %cst_85 = arith.constant dense<0.000000e+00> : vector<8x32xf32>
    %243 = tpu.matmul %241, %242, %cst_85 {dimension_numbers = #tpu.dot_dimension_numbers<[1], [0], [0], [1], [0, 0, 1, 1], [], []>} : vector<8x8xbf16>, vector<8x32xbf16>, vector<8x32xf32> -> vector<8x32xf32>
    %244 = arith.addf %221, %243 : vector<8x32xf32>
    %245 = vector.extract_strided_slice %197 {offsets = [0, 0, 16], sizes = [1, 8, 8], strides = [1, 1, 1]} : vector<1x8x32xbf16> to vector<1x8x8xbf16>
    %246 = vector.extract_strided_slice %198 {offsets = [0, 0, 16], sizes = [1, 16, 8], strides = [1, 1, 1]} : vector<1x16x32xbf16> to vector<1x16x8xbf16>
    "tpu.trace_start"() <{level = 10 : i32, message = "bqd,bkd->bqk"}> : () -> ()
    %cst_86 = arith.constant dense<0.000000e+00> : vector<1x8x16xf32>
    %247 = tpu.matmul %245, %246, %cst_86 {dimension_numbers = #tpu.dot_dimension_numbers<[2], [2], [1], [1], [0, 0, 0, 1, 1, 1], [0], [0]>} : vector<1x8x8xbf16>, vector<1x16x8xbf16>, vector<1x8x16xf32> -> vector<1x8x16xf32>
    "tpu.trace_stop"() : () -> ()
    %cst_87 = arith.constant 0.353553385 : f32
    %248 = vector.broadcast %cst_87 : f32 to vector<1x8x16xf32>
    %249 = arith.mulf %247, %248 : vector<1x8x16xf32>
    %cst_88 = arith.constant dense<0xFF800000> : vector<1x8xf32>
    %250 = vector.multi_reduction <maximumf>, %249, %cst_88 [2] : vector<1x8x16xf32> to vector<1x8xf32>
    %251 = vector.shape_cast %250 : vector<1x8xf32> to vector<1x8x1xf32>
    %252 = vector.broadcast %251 : vector<1x8x1xf32> to vector<1x8x16xf32>
    %253 = arith.subf %249, %252 : vector<1x8x16xf32>
    %254 = math.exp %253 : vector<1x8x16xf32>
    %cst_89 = arith.constant dense<0.000000e+00> : vector<1x8xf32>
    %255 = vector.multi_reduction <add>, %254, %cst_89 [2] : vector<1x8x16xf32> to vector<1x8xf32>
    %256 = vector.shape_cast %255 : vector<1x8xf32> to vector<1x8x1xf32>
    %257 = tpu.reciprocal %256 {approx = true} : vector<1x8x1xf32> -> vector<1x8x1xf32>
    %258 = vector.broadcast %257 : vector<1x8x1xf32> to vector<1x8x16xf32>
    %259 = arith.mulf %254, %258 : vector<1x8x16xf32>
    %260 = arith.truncf %259 : vector<1x8x16xf32> to vector<1x8x16xbf16>
    %261 = vector.extract_strided_slice %199 {offsets = [0, 0, 16], sizes = [1, 16, 8], strides = [1, 1, 1]} : vector<1x16x32xbf16> to vector<1x16x8xbf16>
    "tpu.trace_start"() <{level = 10 : i32, message = "bqk,bkd->bqd"}> : () -> ()
    %cst_90 = arith.constant dense<0.000000e+00> : vector<1x8x8xf32>
    %262 = tpu.matmul %260, %261, %cst_90 {dimension_numbers = #tpu.dot_dimension_numbers<[2], [1], [1], [2], [0, 0, 0, 1, 1, 2], [0], [0]>} : vector<1x8x16xbf16>, vector<1x16x8xbf16>, vector<1x8x8xf32> -> vector<1x8x8xf32>
    "tpu.trace_stop"() : () -> ()
    %263 = vector.shape_cast %262 : vector<1x8x8xf32> to vector<8x8xf32>
    %264 = arith.truncf %263 : vector<8x8xf32> to vector<8x8xbf16>
    %265 = vector.extract_strided_slice %170 {offsets = [16, 0], sizes = [8, 32], strides = [1, 1]} : vector<32x32xbf16> to vector<8x32xbf16>
    %cst_91 = arith.constant dense<0.000000e+00> : vector<8x32xf32>
    %266 = tpu.matmul %264, %265, %cst_91 {dimension_numbers = #tpu.dot_dimension_numbers<[1], [0], [0], [1], [0, 0, 1, 1], [], []>} : vector<8x8xbf16>, vector<8x32xbf16>, vector<8x32xf32> -> vector<8x32xf32>
    %267 = arith.addf %244, %266 : vector<8x32xf32>
    %268 = vector.extract_strided_slice %197 {offsets = [0, 0, 24], sizes = [1, 8, 8], strides = [1, 1, 1]} : vector<1x8x32xbf16> to vector<1x8x8xbf16>
    %269 = vector.extract_strided_slice %198 {offsets = [0, 0, 24], sizes = [1, 16, 8], strides = [1, 1, 1]} : vector<1x16x32xbf16> to vector<1x16x8xbf16>
    "tpu.trace_start"() <{level = 10 : i32, message = "bqd,bkd->bqk"}> : () -> ()
    %cst_92 = arith.constant dense<0.000000e+00> : vector<1x8x16xf32>
    %270 = tpu.matmul %268, %269, %cst_92 {dimension_numbers = #tpu.dot_dimension_numbers<[2], [2], [1], [1], [0, 0, 0, 1, 1, 1], [0], [0]>} : vector<1x8x8xbf16>, vector<1x16x8xbf16>, vector<1x8x16xf32> -> vector<1x8x16xf32>
    "tpu.trace_stop"() : () -> ()
    %cst_93 = arith.constant 0.353553385 : f32
    %271 = vector.broadcast %cst_93 : f32 to vector<1x8x16xf32>
    %272 = arith.mulf %270, %271 : vector<1x8x16xf32>
    %cst_94 = arith.constant dense<0xFF800000> : vector<1x8xf32>
    %273 = vector.multi_reduction <maximumf>, %272, %cst_94 [2] : vector<1x8x16xf32> to vector<1x8xf32>
    %274 = vector.shape_cast %273 : vector<1x8xf32> to vector<1x8x1xf32>
    %275 = vector.broadcast %274 : vector<1x8x1xf32> to vector<1x8x16xf32>
    %276 = arith.subf %272, %275 : vector<1x8x16xf32>
    %277 = math.exp %276 : vector<1x8x16xf32>
    %cst_95 = arith.constant dense<0.000000e+00> : vector<1x8xf32>
    %278 = vector.multi_reduction <add>, %277, %cst_95 [2] : vector<1x8x16xf32> to vector<1x8xf32>
    %279 = vector.shape_cast %278 : vector<1x8xf32> to vector<1x8x1xf32>
    %280 = tpu.reciprocal %279 {approx = true} : vector<1x8x1xf32> -> vector<1x8x1xf32>
    %281 = vector.broadcast %280 : vector<1x8x1xf32> to vector<1x8x16xf32>
    %282 = arith.mulf %277, %281 : vector<1x8x16xf32>
    %283 = arith.truncf %282 : vector<1x8x16xf32> to vector<1x8x16xbf16>
    %284 = vector.extract_strided_slice %199 {offsets = [0, 0, 24], sizes = [1, 16, 8], strides = [1, 1, 1]} : vector<1x16x32xbf16> to vector<1x16x8xbf16>
    "tpu.trace_start"() <{level = 10 : i32, message = "bqk,bkd->bqd"}> : () -> ()
    %cst_96 = arith.constant dense<0.000000e+00> : vector<1x8x8xf32>
    %285 = tpu.matmul %283, %284, %cst_96 {dimension_numbers = #tpu.dot_dimension_numbers<[2], [1], [1], [2], [0, 0, 0, 1, 1, 2], [0], [0]>} : vector<1x8x16xbf16>, vector<1x16x8xbf16>, vector<1x8x8xf32> -> vector<1x8x8xf32>
    "tpu.trace_stop"() : () -> ()
    %286 = vector.shape_cast %285 : vector<1x8x8xf32> to vector<8x8xf32>
    %287 = arith.truncf %286 : vector<8x8xf32> to vector<8x8xbf16>
    %288 = vector.extract_strided_slice %170 {offsets = [24, 0], sizes = [8, 32], strides = [1, 1]} : vector<32x32xbf16> to vector<8x32xbf16>
    %cst_97 = arith.constant dense<0.000000e+00> : vector<8x32xf32>
    %289 = tpu.matmul %287, %288, %cst_97 {dimension_numbers = #tpu.dot_dimension_numbers<[1], [0], [0], [1], [0, 0, 1, 1], [], []>} : vector<8x8xbf16>, vector<8x32xbf16>, vector<8x32xf32> -> vector<8x32xf32>
    %290 = arith.addf %267, %289 : vector<8x32xf32>
    %291 = vector.broadcast %172 : vector<1x32xf32> to vector<8x32xf32>
    %292 = arith.addf %290, %291 : vector<8x32xf32>
    %293 = arith.addf %161, %292 : vector<8x32xf32>
    %294 = vector.extract_strided_slice %12 {offsets = [2, 0], sizes = [1, 32], strides = [1, 1]} : vector<6x32xf32> to vector<1x32xf32>
    %295 = vector.extract_strided_slice %12 {offsets = [3, 0], sizes = [1, 32], strides = [1, 1]} : vector<6x32xf32> to vector<1x32xf32>
    %cst_98 = arith.constant dense<0.000000e+00> : vector<8xf32>
    %296 = vector.multi_reduction <add>, %293, %cst_98 [1] : vector<8x32xf32> to vector<8xf32>
    %297 = vector.shape_cast %296 : vector<8xf32> to vector<8x1xf32>
    %cst_99 = arith.constant 3.200000e+01 : f32
    %298 = vector.broadcast %cst_99 : f32 to vector<8x1xf32>
    %299 = arith.divf %297, %298 : vector<8x1xf32>
    %300 = vector.broadcast %299 : vector<8x1xf32> to vector<8x32xf32>
    %301 = arith.subf %293, %300 : vector<8x32xf32>
    %302 = arith.mulf %301, %301 : vector<8x32xf32>
    %cst_100 = arith.constant dense<0.000000e+00> : vector<8xf32>
    %303 = vector.multi_reduction <add>, %302, %cst_100 [1] : vector<8x32xf32> to vector<8xf32>
    %304 = vector.shape_cast %303 : vector<8xf32> to vector<8x1xf32>
    %cst_101 = arith.constant 3.200000e+01 : f32
    %305 = vector.broadcast %cst_101 : f32 to vector<8x1xf32>
    %306 = arith.divf %304, %305 : vector<8x1xf32>
    %cst_102 = arith.constant 9.99999974E-6 : f32
    %307 = vector.broadcast %cst_102 : f32 to vector<8x1xf32>
    %308 = arith.addf %306, %307 : vector<8x1xf32>
    %309 = math.rsqrt %308 : vector<8x1xf32>
    %310 = vector.broadcast %309 : vector<8x1xf32> to vector<8x32xf32>
    %311 = arith.mulf %301, %310 : vector<8x32xf32>
    %312 = vector.broadcast %294 : vector<1x32xf32> to vector<8x32xf32>
    %313 = arith.mulf %311, %312 : vector<8x32xf32>
    %314 = vector.broadcast %295 : vector<1x32xf32> to vector<8x32xf32>
    %315 = arith.addf %313, %314 : vector<8x32xf32>
    %316 = arith.truncf %315 : vector<8x32xf32> to vector<8x32xbf16>
    %c0_103 = arith.constant 0 : index
    %c0_104 = arith.constant 0 : index
    %c0_105 = arith.constant 0 : index
    %317 = vector.load %arg14[%c0_103, %c0_104, %c0_105] : memref<1x32x64xbf16, #tpu.memory_space<vmem>>, vector<1x32x64xbf16>
    %318 = vector.shape_cast %317 : vector<1x32x64xbf16> to vector<32x64xbf16>
    %cst_106 = arith.constant dense<0.000000e+00> : vector<8x64xf32>
    %319 = tpu.matmul %316, %318, %cst_106 {dimension_numbers = #tpu.dot_dimension_numbers<[1], [0], [0], [1], [0, 0, 1, 1], [], []>} : vector<8x32xbf16>, vector<32x64xbf16>, vector<8x64xf32> -> vector<8x64xf32>
    %c0_107 = arith.constant 0 : index
    %c0_108 = arith.constant 0 : index
    %c0_109 = arith.constant 0 : index
    %320 = vector.load %arg15[%c0_107, %c0_108, %c0_109] : memref<1x1x64xf32, #tpu.memory_space<vmem>>, vector<1x1x64xf32>
    %321 = vector.shape_cast %320 : vector<1x1x64xf32> to vector<1x64xf32>
    %322 = vector.broadcast %321 : vector<1x64xf32> to vector<8x64xf32>
    %323 = arith.addf %319, %322 : vector<8x64xf32>
    %cst_110 = arith.constant 0.000000e+00 : f32
    %324 = vector.broadcast %cst_110 : f32 to vector<8x64xf32>
    %325 = arith.maximumf %323, %324 : vector<8x64xf32>
    %326 = arith.truncf %325 : vector<8x64xf32> to vector<8x64xbf16>
    %c0_111 = arith.constant 0 : index
    %c0_112 = arith.constant 0 : index
    %c0_113 = arith.constant 0 : index
    %327 = vector.load %arg16[%c0_111, %c0_112, %c0_113] : memref<1x64x32xbf16, #tpu.memory_space<vmem>>, vector<1x64x32xbf16>
    %328 = vector.shape_cast %327 : vector<1x64x32xbf16> to vector<64x32xbf16>
    %cst_114 = arith.constant dense<0.000000e+00> : vector<8x32xf32>
    %329 = tpu.matmul %326, %328, %cst_114 {dimension_numbers = #tpu.dot_dimension_numbers<[1], [0], [0], [1], [0, 0, 1, 1], [], []>} : vector<8x64xbf16>, vector<64x32xbf16>, vector<8x32xf32> -> vector<8x32xf32>
    %c0_115 = arith.constant 0 : index
    %c0_116 = arith.constant 0 : index
    %c0_117 = arith.constant 0 : index
    %330 = vector.load %arg17[%c0_115, %c0_116, %c0_117] : memref<1x1x32xf32, #tpu.memory_space<vmem>>, vector<1x1x32xf32>
    %331 = vector.shape_cast %330 : vector<1x1x32xf32> to vector<1x32xf32>
    %332 = vector.broadcast %331 : vector<1x32xf32> to vector<8x32xf32>
    %333 = arith.addf %329, %332 : vector<8x32xf32>
    %334 = arith.addf %315, %333 : vector<8x32xf32>
    %335 = vector.extract_strided_slice %12 {offsets = [4, 0], sizes = [1, 32], strides = [1, 1]} : vector<6x32xf32> to vector<1x32xf32>
    %336 = vector.extract_strided_slice %12 {offsets = [5, 0], sizes = [1, 32], strides = [1, 1]} : vector<6x32xf32> to vector<1x32xf32>
    %cst_118 = arith.constant dense<0.000000e+00> : vector<8xf32>
    %337 = vector.multi_reduction <add>, %334, %cst_118 [1] : vector<8x32xf32> to vector<8xf32>
    %338 = vector.shape_cast %337 : vector<8xf32> to vector<8x1xf32>
    %cst_119 = arith.constant 3.200000e+01 : f32
    %339 = vector.broadcast %cst_119 : f32 to vector<8x1xf32>
    %340 = arith.divf %338, %339 : vector<8x1xf32>
    %341 = vector.broadcast %340 : vector<8x1xf32> to vector<8x32xf32>
    %342 = arith.subf %334, %341 : vector<8x32xf32>
    %343 = arith.mulf %342, %342 : vector<8x32xf32>
    %cst_120 = arith.constant dense<0.000000e+00> : vector<8xf32>
    %344 = vector.multi_reduction <add>, %343, %cst_120 [1] : vector<8x32xf32> to vector<8xf32>
    %345 = vector.shape_cast %344 : vector<8xf32> to vector<8x1xf32>
    %cst_121 = arith.constant 3.200000e+01 : f32
    %346 = vector.broadcast %cst_121 : f32 to vector<8x1xf32>
    %347 = arith.divf %345, %346 : vector<8x1xf32>
    %cst_122 = arith.constant 9.99999974E-6 : f32
    %348 = vector.broadcast %cst_122 : f32 to vector<8x1xf32>
    %349 = arith.addf %347, %348 : vector<8x1xf32>
    %350 = math.rsqrt %349 : vector<8x1xf32>
    %351 = vector.broadcast %350 : vector<8x1xf32> to vector<8x32xf32>
    %352 = arith.mulf %342, %351 : vector<8x32xf32>
    %353 = vector.broadcast %335 : vector<1x32xf32> to vector<8x32xf32>
    %354 = arith.mulf %352, %353 : vector<8x32xf32>
    %355 = vector.broadcast %336 : vector<1x32xf32> to vector<8x32xf32>
    %356 = arith.addf %354, %355 : vector<8x32xf32>
    %c0_123 = arith.constant 0 : index
    %c0_124 = arith.constant 0 : index
    %357 = vector.load %arg22[%c0_123, %c0_124] : memref<8x32xf32, #tpu.memory_space<vmem>>, vector<8x32xf32>
    tpu.vector_store %arg22[%c0_123, %c0_124], %356 {strides = array<i32>} : memref<8x32xf32, #tpu.memory_space<vmem>>, vector<8x32xf32>,
    %c1_i32 = arith.constant 1 : i32
    %358 = arith.cmpi eq, %arg1, %c1_i32 : i32
    %359 = arith.extui %358 : i1 to i32
    %c0_i32_125 = arith.constant 0 : i32
    %360 = arith.cmpi ne, %359, %c0_i32_125 : i32
    scf.if %360 {
      %c0_126 = arith.constant 0 : index
      %c0_127 = arith.constant 0 : index
      %361 = vector.load %arg19[%c0_126, %c0_127] : memref<1x32xf32, #tpu.memory_space<vmem>>, vector<1x32xf32>
      %c0_128 = arith.constant 0 : index
      %c0_129 = arith.constant 0 : index
      %362 = vector.load %arg20[%c0_128, %c0_129] : memref<1x32xf32, #tpu.memory_space<vmem>>, vector<1x32xf32>
      %cst_130 = arith.constant dense<0.000000e+00> : vector<8xf32>
      %363 = vector.multi_reduction <add>, %356, %cst_130 [1] : vector<8x32xf32> to vector<8xf32>
      %364 = vector.shape_cast %363 : vector<8xf32> to vector<8x1xf32>
      %cst_131 = arith.constant 3.200000e+01 : f32
      %365 = vector.broadcast %cst_131 : f32 to vector<8x1xf32>
      %366 = arith.divf %364, %365 : vector<8x1xf32>
      %367 = vector.broadcast %366 : vector<8x1xf32> to vector<8x32xf32>
      %368 = arith.subf %356, %367 : vector<8x32xf32>
      %369 = arith.mulf %368, %368 : vector<8x32xf32>
      %cst_132 = arith.constant dense<0.000000e+00> : vector<8xf32>
      %370 = vector.multi_reduction <add>, %369, %cst_132 [1] : vector<8x32xf32> to vector<8xf32>
      %371 = vector.shape_cast %370 : vector<8xf32> to vector<8x1xf32>
      %cst_133 = arith.constant 3.200000e+01 : f32
      %372 = vector.broadcast %cst_133 : f32 to vector<8x1xf32>
      %373 = arith.divf %371, %372 : vector<8x1xf32>
      %cst_134 = arith.constant 9.99999974E-6 : f32
      %374 = vector.broadcast %cst_134 : f32 to vector<8x1xf32>
      %375 = arith.addf %373, %374 : vector<8x1xf32>
      %376 = math.rsqrt %375 : vector<8x1xf32>
      %377 = vector.broadcast %376 : vector<8x1xf32> to vector<8x32xf32>
      %378 = arith.mulf %368, %377 : vector<8x32xf32>
      %379 = vector.broadcast %361 : vector<1x32xf32> to vector<8x32xf32>
      %380 = arith.mulf %378, %379 : vector<8x32xf32>
      %381 = vector.broadcast %362 : vector<1x32xf32> to vector<8x32xf32>
      %382 = arith.addf %380, %381 : vector<8x32xf32>
      %383 = vector.shape_cast %382 : vector<8x32xf32> to vector<1x8x32xf32>
      %c0_135 = arith.constant 0 : index
      %c0_136 = arith.constant 0 : index
      %c0_137 = arith.constant 0 : index
      %c0_138 = arith.constant 0 : index
      %384 = vector.load %arg21[%c0_135, %c0_136, %c0_137, %c0_138] : memref<1x1x8x32xf32, #tpu.memory_space<vmem>>, vector<1x1x8x32xf32>
      %385 = vector.shape_cast %384 : vector<1x1x8x32xf32> to vector<1x8x32xf32>
      %386 = vector.shape_cast %383 : vector<1x8x32xf32> to vector<1x1x8x32xf32>
      tpu.vector_store %arg21[%c0_135, %c0_136, %c0_137, %c0_138], %386 {strides = array<i32>} : memref<1x1x8x32xf32, #tpu.memory_space<vmem>>, vector<1x1x8x32xf32>,
    } else {
    }
    return
  }
  func.func @transform_0(%arg0: i32, %arg1: i32) -> (i32, i32, i32, i32) {
    %c0_i32 = arith.constant 0 : i32
    %c0_i32_0 = arith.constant 0 : i32
    %c0_i32_1 = arith.constant 0 : i32
    %c0_i32_2 = arith.constant 0 : i32
    return %arg0, %c0_i32, %c0_i32_0, %c0_i32_1 : i32, i32, i32, i32
  }
  func.func @transform_1(%arg0: i32, %arg1: i32) -> (i32, i32, i32, i32) {
    %c0_i32 = arith.constant 0 : i32
    %c0_i32_0 = arith.constant 0 : i32
    %c0_i32_1 = arith.constant 0 : i32
    %c0_i32_2 = arith.constant 0 : i32
    return %arg0, %c0_i32, %c0_i32_0, %c0_i32_1 : i32, i32, i32, i32
  }
  func.func @transform_2(%arg0: i32, %arg1: i32) -> (i32, i32, i32, i32) {
    %c0_i32 = arith.constant 0 : i32
    %c0_i32_0 = arith.constant 0 : i32
    %c0_i32_1 = arith.constant 0 : i32
    %c0_i32_2 = arith.constant 0 : i32
    return %arg0, %c0_i32, %c0_i32_0, %c0_i32_1 : i32, i32, i32, i32
  }
  func.func @transform_3(%arg0: i32, %arg1: i32) -> (i32, i32, i32, i32) {
    %c0_i32 = arith.constant 0 : i32
    %c0_i32_0 = arith.constant 0 : i32
    %c0_i32_1 = arith.constant 0 : i32
    %c0_i32_2 = arith.constant 0 : i32
    return %arg0, %c0_i32, %c0_i32_0, %c0_i32_1 : i32, i32, i32, i32
  }
  func.func @transform_4(%arg0: i32, %arg1: i32) -> (i32, i32, i32) {
    %c0_i32 = arith.constant 0 : i32
    %c0_i32_0 = arith.constant 0 : i32
    %c0_i32_1 = arith.constant 0 : i32
    return %arg1, %c0_i32, %c0_i32_0 : i32, i32, i32
  }
  func.func @transform_5(%arg0: i32, %arg1: i32) -> (i32, i32, i32) {
    %c0_i32 = arith.constant 0 : i32
    %c0_i32_0 = arith.constant 0 : i32
    %c0_i32_1 = arith.constant 0 : i32
    return %arg1, %c0_i32, %c0_i32_0 : i32, i32, i32
  }
  func.func @transform_6(%arg0: i32, %arg1: i32) -> (i32, i32, i32) {
    %c0_i32 = arith.constant 0 : i32
    %c0_i32_0 = arith.constant 0 : i32
    %c0_i32_1 = arith.constant 0 : i32
    return %arg1, %c0_i32, %c0_i32_0 : i32, i32, i32
  }
  func.func @transform_7(%arg0: i32, %arg1: i32) -> (i32, i32, i32) {
    %c0_i32 = arith.constant 0 : i32
    %c0_i32_0 = arith.constant 0 : i32
    %c0_i32_1 = arith.constant 0 : i32
    return %arg1, %c0_i32, %c0_i32_0 : i32, i32, i32
  }
  func.func @transform_8(%arg0: i32, %arg1: i32) -> (i32, i32, i32) {
    %c0_i32 = arith.constant 0 : i32
    %c0_i32_0 = arith.constant 0 : i32
    %c0_i32_1 = arith.constant 0 : i32
    return %arg1, %c0_i32, %c0_i32_0 : i32, i32, i32
  }
  func.func @transform_9(%arg0: i32, %arg1: i32) -> (i32, i32, i32) {
    %c0_i32 = arith.constant 0 : i32
    %c0_i32_0 = arith.constant 0 : i32
    %c0_i32_1 = arith.constant 0 : i32
    return %arg1, %c0_i32, %c0_i32_0 : i32, i32, i32
  }
  func.func @transform_10(%arg0: i32, %arg1: i32) -> (i32, i32, i32) {
    %c0_i32 = arith.constant 0 : i32
    %c0_i32_0 = arith.constant 0 : i32
    %c0_i32_1 = arith.constant 0 : i32
    return %arg1, %c0_i32, %c0_i32_0 : i32, i32, i32
  }
  func.func @transform_11(%arg0: i32, %arg1: i32) -> (i32, i32, i32) {
    %c0_i32 = arith.constant 0 : i32
    %c0_i32_0 = arith.constant 0 : i32
    %c0_i32_1 = arith.constant 0 : i32
    return %arg1, %c0_i32, %c0_i32_0 : i32, i32, i32
  }
  func.func @transform_12(%arg0: i32, %arg1: i32) -> (i32, i32, i32) {
    %c0_i32 = arith.constant 0 : i32
    %c0_i32_0 = arith.constant 0 : i32
    %c0_i32_1 = arith.constant 0 : i32
    return %arg1, %c0_i32, %c0_i32_0 : i32, i32, i32
  }
  func.func @transform_13(%arg0: i32, %arg1: i32) -> (i32, i32, i32) {
    %c0_i32 = arith.constant 0 : i32
    %c0_i32_0 = arith.constant 0 : i32
    %c0_i32_1 = arith.constant 0 : i32
    return %arg1, %c0_i32, %c0_i32_0 : i32, i32, i32
  }
  func.func @transform_14(%arg0: i32, %arg1: i32) -> (i32, i32, i32) {
    %c0_i32 = arith.constant 0 : i32
    %c0_i32_0 = arith.constant 0 : i32
    %c0_i32_1 = arith.constant 0 : i32
    return %arg1, %c0_i32, %c0_i32_0 : i32, i32, i32
  }
  func.func @transform_15(%arg0: i32, %arg1: i32) -> (i32, i32, i32) {
    %c0_i32 = arith.constant 0 : i32
    %c0_i32_0 = arith.constant 0 : i32
    %c0_i32_1 = arith.constant 0 : i32
    return %arg1, %c0_i32, %c0_i32_0 : i32, i32, i32
  }
  func.func @transform_16(%arg0: i32, %arg1: i32) -> (i32, i32, i32) {
    %c0_i32 = arith.constant 0 : i32
    %c0_i32_0 = arith.constant 0 : i32
    %c0_i32_1 = arith.constant 0 : i32
    return %arg1, %c0_i32, %c0_i32_0 : i32, i32, i32
  }
  func.func @transform_17(%arg0: i32, %arg1: i32) -> (i32, i32) {
    %c0_i32 = arith.constant 0 : i32
    %c0_i32_0 = arith.constant 0 : i32
    %c0_i32_1 = arith.constant 0 : i32
    return %c0_i32, %c0_i32_0 : i32, i32
  }
  func.func @transform_18(%arg0: i32, %arg1: i32) -> (i32, i32) {
    %c0_i32 = arith.constant 0 : i32
    %c0_i32_0 = arith.constant 0 : i32
    %c0_i32_1 = arith.constant 0 : i32
    return %c0_i32, %c0_i32_0 : i32, i32
  }
  func.func @transform_19(%arg0: i32, %arg1: i32) -> (i32, i32, i32, i32) {
    %c0_i32 = arith.constant 0 : i32
    %c0_i32_0 = arith.constant 0 : i32
    %c0_i32_1 = arith.constant 0 : i32
    %c0_i32_2 = arith.constant 0 : i32
    return %arg0, %c0_i32, %c0_i32_0, %c0_i32_1 : i32, i32, i32, i32
  }
}

</mosaic_0001>

<bundles_post_ra>
// kernel: tpu_custom_call.1
= control target key start
LH: loop header
LB: loop body
LE: loop exit
PB: predicated region body
PF: predicated region fallthrough
CT: control target
= control target key end

     0   :  { %s5453_s0 = inlined_call_operand.hbm [shape: f32[2,1,8,32], index: 0, kind: input, shape index: {}]   ;;  %s5454_s1 = inlined_call_operand.vmem [shape: f32[2,1,16,32], index: 1, kind: input, shape index: {}]   ;;  %s5455_s2 = inlined_call_operand.vmem [shape: f32[2,1,16,32], index: 2, kind: input, shape index: {}]   ;;  %s5456_s3 = inlined_call_operand.hbm [shape: f32[2,1,8,32], index: 3, kind: input, shape index: {}]   ;;  %s5457_s4 = inlined_call_operand.vmem [shape: bf16[2,32,96], index: 4, kind: input, shape index: {}]   ;;  %s5458_s5 = inlined_call_operand.hbm [shape: f32[2,1,96], index: 5, kind: input, shape index: {}]   ;;  %s5459_s6 = inlined_call_operand.vmem [shape: bf16[2,32,32], index: 6, kind: input, shape index: {}]   ;;  %s5460_s7 = inlined_call_operand.hbm [shape: f32[2,1,32], index: 7, kind: input, shape index: {}]   ;;  %s5461_s8 = inlined_call_operand.hbm [shape: bf16[2,32,96], index: 8, kind: input, shape index: {}]   ;;  %s5462_s9 = inlined_call_operand.hbm [shape: f32[2,1,96], index: 9, kind: input, shape index: {}]   ;;  %s5463_s10 = inlined_call_operand.hbm [shape: bf16[2,32,32], index: 10, kind: input, shape index: {}]   ;;  %s5464_s11 = inlined_call_operand.hbm [shape: f32[2,1,32], index: 11, kind: input, shape index: {}]   ;;  %s5465_s12 = inlined_call_operand.hbm [shape: bf16[2,32,64], index: 12, kind: input, shape index: {}]   ;;  %s5466_s13 = inlined_call_operand.hbm [shape: f32[2,1,64], index: 13, kind: input, shape index: {}]   ;;  %s5467_s14 = inlined_call_operand.vmem [shape: bf16[2,64,32], index: 14, kind: input, shape index: {}]   ;;  %s5468_s15 = inlined_call_operand.vmem [shape: f32[2,1,32], index: 15, kind: input, shape index: {}]   ;;  %s5469_s16 = inlined_call_operand.vmem [shape: f32[2,6,32], index: 16, kind: input, shape index: {}]   ;;  %s5470_s17 = inlined_call_operand.vmem [shape: f32[1,32], index: 17, kind: input, shape index: {}]   ;;  %s5471_s18 = inlined_call_operand.vmem [shape: f32[1,32], index: 18, kind: input, shape index: {}]   ;;  %s5472_s19 = inlined_call_operand.hbm [shape: f32[2,1,8,32], index: 19, kind: output, shape index: {}]  }
   0x1   :  { %5510 = sst [smem:[#allocation47_spill]] %s5453_s0 }
   0x2   :  { %5511 = sst [smem:[#allocation48_spill]] %s5454_s1 }
   0x3   :  { %5512 = sst [smem:[#allocation49_spill]] %s5455_s2 }
   0x4   :  { %5513 = sst [smem:[#allocation50_spill]] %s5456_s3 }
   0x5   :  { %5514 = sst [smem:[#allocation51_spill]] %s5457_s4 }
   0x6   :  { %5515 = sst [smem:[#allocation52_spill]] %s5458_s5 }
   0x7   :  { %5516 = sst [smem:[#allocation53_spill]] %s5459_s6 }
   0x8   :  { %5517 = sst [smem:[#allocation54_spill]] %s5460_s7 }
   0x9   :  { %5518 = sst [smem:[#allocation55_spill]] %s5461_s8 }
   0xa   :  { %5519 = sst [smem:[#allocation56_spill]] %s5462_s9 }
   0xb   :  { %5520 = sst [smem:[#allocation57_spill]] %s5463_s10 }
   0xc   :  { %5521 = sst [smem:[#allocation58_spill]] %s5464_s11 }
   0xd   :  { %5522 = sst [smem:[#allocation59_spill]] %s5465_s12 }
   0xe   :  { %5523 = sst [smem:[#allocation60_spill]] %s5466_s13 }
   0xf   :  { %5524 = sst [smem:[#allocation61_spill]] %s5467_s14 }
  0x10   :  { %5525 = sst [smem:[#allocation62_spill]] %s5468_s15 }
  0x11   :  { %5526 = sst [smem:[#allocation63_spill]] %s5469_s16 }
  0x12   :  { %5527 = sst [smem:[#allocation64_spill]] %s5470_s17 }
  0x13   :  { %5528 = sst [smem:[#allocation65_spill]] %s5471_s18 }
  0x14   :  { %5529 = sst [smem:[#allocation66_spill]] %s5472_s19 }
  0x15   :  { %24 = vsyncpa [#allocation4], 0 }
  0x16   :  { %26 = vsyncpa [#allocation4 + $0x1], 0 }
  0x17   :  { %27 = vsyncpa [#allocation7], 0 }
  0x18   :  { %29 = vsyncpa [#allocation7 + $0x1], 0 }
  0x19   :  { %30 = vsyncpa [#allocation10], 0 }
  0x1a   :  { %32 = vsyncpa [#allocation10 + $0x1], 0 }
  0x1b   :  { %33 = vsyncpa [#allocation13], 0 }
  0x1c   :  { %35 = vsyncpa [#allocation13 + $0x1], 0 }
  0x1d   :  { %36 = vsyncpa [#allocation16], 0 }
  0x1e   :  { %38 = vsyncpa [#allocation16 + $0x1], 0 }
  0x1f   :  { %39 = vsyncpa [#allocation19], 0 }
  0x20   :  { %41 = vsyncpa [#allocation19 + $0x1], 0 }
  0x21   :  { %42 = vsyncpa [#allocation5], 0 }
  0x22   :  { %44 = vsyncpa [#allocation5 + $0x1], 0  ;;  %s4451_s0 = smov 0   ;;  %s4453_s30 = smov 0  }
  0x23   :  { %s4455_s20 = smov 0   ;;  %s4457_s21 = smov 0  }
  0x24   :  { %s4459_s1 = smov 0   ;;  %s4461_s22 = smov 0  }
  0x25   :  { %s4463_s2 = smov 0   ;;  %s4465_s23 = smov 0  }
  0x26   :  { %s4467_s24 = smov 0   ;;  %s4469_s25 = smov 0  }
  0x27   :  { %s4471_s3 = smov 0  }
  0x28 LB: > { %5530 = sst [smem:[#allocation29_spill]] %s4290_s30  ;;  %s4507_s26 = sadd.s32 4294967295, %s4326_s3   ;;  %s4326_s3 = sphi %s4471_s3, %s50_s3   ;;  %s4322_s25 = sphi %s4469_s25, %s5633_s25   ;;  %s4318_s24 = sphi %s4467_s24, %s5632_s24   ;;  %s4314_s23 = sphi %s4465_s23, %s5631_s23   ;;  %s4310_s2 = sphi %s4463_s2, %s5630_s2   ;;  %s4306_s22 = sphi %s4461_s22, %s5629_s22   ;;  %s4302_s1 = sphi %s4459_s1, %s5628_s1   ;;  %s4298_s21 = sphi %s4457_s21, %s5627_s21   ;;  %s4294_s20 = sphi %s4455_s20, %s5626_s20   ;;  %s4290_s30 = sphi %s4453_s30, %s5625_s30   ;;  %s4286_s0 = sphi %s4451_s0, %s5624_s0  }
  0x29   : > { %5531 = sst [smem:[#allocation30_spill]] %s4294_s20  ;;  %s3294_s27 = sadd.s32 4294967294, %s4326_s3  }
  0x2a   : > { %5532 = sst [smem:[#allocation31_spill]] %s4298_s21  ;;  %s59_s28 = sadd.s32 1, %s4318_s24 }
  0x2b   : > { %5533 = sst [smem:[#allocation32_spill]] %s4302_s1  ;;  %s62_s29 = sadd.s32 1, %s4322_s25 }
  0x2c   : > { %5534 = sst [smem:[#allocation33_spill]] %s4306_s22  ;;  %p60_p0 = scmp.ge.s32.totalorder %s59_s28, 2 }
  0x2d   : > { %5535 = sst [smem:[#allocation34_spill]] %s4310_s2  ;;  %s69_s19 = sadd.s32 1, %s4306_s22 }
  0x2e   : > { %5536 = sst [smem:[#allocation35_spill]] %s4314_s23  ;;  %p76_p1 = scmp.ne.s32.totalorder %s4306_s22, %s4302_s1 }
  0x2f   : > { %5537 = sst [smem:[#allocation36_spill]] %s4318_s24  ;;  %p77_p2 = scmp.eq.s32.totalorder %s4326_s3, 0 }
  0x30   : > { %5538 = sst [smem:[#allocation37_spill]] %s4322_s25  ;;  %s5635_s28 = smov (%p60_p0, %s59_s28), 0 }
  0x31   : > { %5539 = sst [smem:[#allocation38_spill]] %s4326_s3  ;;  %s5637_s29 = smov (!%p60_p0, %s62_s29), %s4322_s25 }
  0x32   : > { %5540 = sst [smem:[#allocation39_spill]] %s4507_s26  ;;  %p4524_p3 = por %p77_p2, %p76_p1 }
  0x33   : > { %5541 = sst [smem:[#allocation40_spill]] %s5635_s28  ;;  %p5477_p4 = scmp.ne.s32.totalorder %s4302_s1, %s4298_s21 }
  0x34   : > { %p64_p5 = scmp.ge.s32.totalorder %s5637_s29, 2  ;;  %p83_p6 = scmp.eq.s32.totalorder %s4507_s26, 0 }
  0x35   : > { %s196_s17 = ssub.s32 %s4318_s24, %s5635_s28  ;;  %s199_s16 = sadd.s32 1, %s4294_s20 }
  0x36   : > { %s5639_s29 = smov (%p64_p5, %s5637_s29), 0  ;;  %p4541_p7 = por %p83_p6, %p5477_p4 }
  0x37   : > { %5543 = sst [smem:[#allocation41_spill]] %s5639_s29  ;;  %p197_p8 = scmp.eq.s32.totalorder %s196_s17, 0 }
  0x38   : > { %s5544_s15 = scalar_select %p4541_p7, 1, 0 }
  0x39   : > { %s66_s14 = ssub.s32 %s4322_s25, %s5639_s29  ;;  %p206_p9 = scmp.ne.s32.totalorder %s4294_s20, %s4290_s30 }
  0x3a   : > { %p67_p10 = scmp.eq.s32.totalorder %s66_s14, 0  ;;  %p212_p11 = scmp.ne.s32.totalorder %s4290_s30, %s4286_s0 }
  0x3b   : > { %s4552_s28 = scalar_select %p197_p8, %s4294_s20, %s199_s16  }
  0x3c   : > { %s4555_s6 = scalar_select %p67_p10, %s4306_s22, %s69_s19  }
  0x3d   : > { %5545 = sst [smem:[#allocation42_spill]] %s4552_s28  ;;  %p4559_p12 = por %p206_p9, %p77_p2 }
  0x3e   : > { %5546 = sst [smem:[#allocation43_spill]] %s4555_s6  ;;  %p4565_p13 = por %p212_p11, %p83_p6 }
  0x3f   : > { %p564_p0 = scmp.eq.s32.totalorder %s4507_s26, 3  ;;  %p570_p5 = scmp.eq.s32.totalorder %s3294_s27, 3 }
  0x40   : > { %s5548_s17 = scalar_select %p4565_p13, 1, 0 }
  0x41   : > { %p3728_p4 = scmp.lt.s32.totalorder %s4326_s3, 4  ;;  %p4574_p7 = por %p564_p0, %p76_p1 }
  0x42   : > { %5549 = sst [smem:[#allocation44_spill]] %s5548_s17  ;;  %p5552_p8 = scmp.ne.s32.totalorder %s4302_s1, %s4298_s21 }
  0x43   : > { %s5550_s14 = scalar_select %p4574_p7, 1, 0 }
  0x44   : > { %p4581_p10 = por %p570_p5, %p5552_p8  ;;  %s5484_s19 = sand.u32 1, %s4306_s22  }
  0x45   : > { %5551 = sst [smem:[#allocation45_spill]] %s5550_s14  ;;  %s5489_s0 = sshll.u32 %s4322_s25, 7 }
  0x46   : > { %s5553_s16 = scalar_select %p4581_p10, 1, 0 }
  0x47   : > { %s4589_s29 = sshll.u32 %s5484_s19, 3  ;;  %p4593_p2 = pnand %p3728_p4, %p4524_p3 }
  0x48   : > { %5554 = sst [smem:[#allocation46_spill]] %s5553_s16  ;;  %s4598_s6 = sand.u32 1, %s4326_s3  }
  0x49   : > { %s5555_s27 = scalar_select %p4593_p2, 1, 0 }
  0x4a   : > { %s5556_s14 = sld [smem:[#allocation50_spill]]  ;;  %s634_s18 = scalar_lea.vmem [#allocation6], %s4589_s29 }
  0x4b   : > { %s641_s19 = sshll.u32 %s634_s18, 4  ;;  %p4612_p1 = pnand %p3728_p4, %p4559_p12  ;;  %s4608_s19 = int_to_ptr.vmem [resolvable:$true] %s641_s19 }
  0x4c   : > { %s5493_s23 = scalar_lea.sflag [#allocation7], %s4598_s6  ;;  %p5498_p6 = pneg %p4593_p2 }
  0x4d   : > { %s5557_s2 = scalar_select %p4612_p1, 1, 0 }
  0x50   : > { %s4605_s16 = scalar_lea.hbm %s5556_s14, %s5489_s0  ;;  %s3885_s18 = scalar_lea.hbm %s5556_s14, 256 }
  0x51   : > { %s3880_s17 = scalar_lea.hbm %s4605_s16, 128  ;;  %p3886_p4 = scmp.lt.u32.totalorder %s4605_s16, %s5556_s14 }
  0x52   : > { %p3881_p3 = scmp.ne.s32.totalorder %s4605_s16, %s3880_s17  ;;  %p3887_p12 = scmp.lt.u32.totalorder %s3885_s18, %s3880_s17 }
  0x53   : > { %p3889_p5 = scmp.lt.u32.totalorder %s3880_s17, %s4605_s16 }
  0x54   : > { %p3883_p9 = pnand %p5498_p6, %p3881_p3  ;;  %p3888_p0 = por %p3887_p12, %p3886_p4 }
  0x56   : > { %p3884_p11 = pneg %p3883_p9  ;;  %p3890_p8 = por %p3889_p5, %p3888_p0 }
  0x58   : > { %p3891_p10 = pnand %p3890_p8, %p3884_p11 }
  0x5a   : > { %3894 = shalt.err (!%p3891_p10)
}
  0x5b   : > { %s3895_s4 = scalar_lea.vmem %s4608_s19, 128  ;;  %s4328_s21 = smov [#allocation6]  }
  0x5c   : > { %p3896_p3 = scmp.ne.s32.totalorder %s4608_s19, %s3895_s4  ;;  %s3900_s28 = sshll.u32 %s4328_s21, 4  ;;  %s3901_s28 = int_to_ptr.vmem [resolvable:$false] %s3900_s28 }
  0x5d   : > { %s3902_s30 = scalar_lea.vmem %s3901_s28, 256  ;;  %p3903_p13 = scmp.lt.s32.totalorder %s4608_s19, %s3901_s28 }
  0x5e   : > { %p3898_p9 = pnand %p3896_p3, %p5498_p6  ;;  %p3904_p4 = scmp.lt.s32.totalorder %s3902_s30, %s3895_s4 }
  0x60   : > { %p3899_p7 = pneg %p3898_p9  ;;  %p3905_p12 = por %p3904_p4, %p3903_p13 }
  0x62   : > { %p3906_p0 = pnand %p3905_p12, %p3899_p7 }
  0x64   : > { %3909 = shalt.err (!%p3906_p0)
}
  0x65   : > { %3699 = dma.hbm_to_vmem [thread:$0]  (!%p4593_p2), %s4605_s16, 128, %s4608_s19, %s5493_s23  }
  0x66   : > { %p3315_p10 = scmp.ge.s32.totalorder %s4326_s3, 1  ;;  %p831_p11 = scmp.lt.s32.totalorder %s4326_s3, 5 }
  0x67   : > { %s4647_s17 = sand.u32 1, %s4294_s20   ;;  %s4650_s0 = sshll.u32 %s4318_s24, 4 }
  0x68   : > { %p4652_p7 = pnand %p3315_p10, %p831_p11  ;;  %s5559_s7 = sld [smem:[#allocation54_spill]] }
  0x69   : > { %s684_s16 = scalar_lea.vmem [#allocation9], %s4647_s17  ;;  %p4670_p5 = pneg %p4612_p1 }
  0x6a   : > { %s5558_s18 = scalar_select %p4652_p7, 1, 0 }
  0x6b   : > { %s691_s19 = sshll.u32 %s684_s16, 4  ;;  %s4663_s19 = int_to_ptr.vmem [resolvable:$true] %s691_s19 }
  0x6e   : > { %s4660_s28 = scalar_lea.hbm %s5559_s7, %s4650_s0  ;;  %s3915_s20 = scalar_lea.hbm %s5559_s7, 32 }
  0x6f   : > { %s3910_s23 = scalar_lea.hbm %s4660_s28, 16  ;;  %p3916_p9 = scmp.lt.u32.totalorder %s4660_s28, %s5559_s7 }
  0x70   : > { %p3911_p13 = scmp.ne.s32.totalorder %s4660_s28, %s3910_s23  ;;  %p3917_p4 = scmp.lt.u32.totalorder %s3915_s20, %s3910_s23 }
  0x71   : > { %p3919_p0 = scmp.lt.u32.totalorder %s3910_s23, %s4660_s28 }
  0x72   : > { %p3913_p8 = pnand %p4670_p5, %p3911_p13  ;;  %p3918_p12 = por %p3917_p4, %p3916_p9 }
  0x74   : > { %p3914_p3 = pneg %p3913_p8  ;;  %p3920_p10 = por %p3919_p0, %p3918_p12 }
  0x76   : > { %p3921_p11 = pnand %p3920_p10, %p3914_p3 }
  0x78   : > { %3924 = shalt.err (!%p3921_p11)
}
  0x79   : > { %s3925_s30 = scalar_lea.vmem %s4663_s19, 16  ;;  %s4329_s4 = smov [#allocation9]  }
  0x7a   : > { %p3926_p13 = scmp.ne.s32.totalorder %s4663_s19, %s3925_s30  ;;  %s3930_s21 = sshll.u32 %s4329_s4, 4  ;;  %s3931_s21 = int_to_ptr.vmem [resolvable:$false] %s3930_s21 }
  0x7b   : > { %s3932_s3 = scalar_lea.vmem %s3931_s21, 32  ;;  %p3933_p7 = scmp.lt.s32.totalorder %s4663_s19, %s3931_s21 }
  0x7c   : > { %p3928_p8 = pnand %p3926_p13, %p4670_p5  ;;  %p3934_p2 = scmp.lt.s32.totalorder %s3932_s3, %s3925_s30 }
  0x7e   : > { %p3929_p6 = pneg %p3928_p8  ;;  %p3935_p9 = por %p3934_p2, %p3933_p7 }
  0x80   : > { %p3936_p4 = pnand %p3935_p9, %p3929_p6 }
  0x82   : > { %3939 = shalt.err (!%p3936_p4)
}
  0x83   : > { %s5561_s20 = scalar_lea.sflag [#allocation10], %s4598_s6  ;;  %s5562_s9 = sld [smem:[#allocation56_spill]] }
  0x84   : > { %3705 = dma.hbm_to_vmem [thread:$0]  (!%p4612_p1), %s4660_s28, 16, %s4663_s19, %s5561_s20  }
  0x85   : > { %s722_s30 = scalar_lea.vmem [#allocation12], %s4647_s17 }
  0x86   : > { %s729_s21 = sshll.u32 %s722_s30, 4  ;;  %s730_s21 = int_to_ptr.vmem [resolvable:$true] %s729_s21 }
  0x89   : > { %s4699_s4 = scalar_lea.hbm %s5562_s9, %s4650_s0  ;;  %s3945_s19 = scalar_lea.hbm %s5562_s9, 32 }
  0x8a   : > { %s3940_s7 = scalar_lea.hbm %s4699_s4, 16  ;;  %p3946_p3 = scmp.lt.u32.totalorder %s4699_s4, %s5562_s9 }
  0x8b   : > { %p3941_p2 = scmp.ne.s32.totalorder %s4699_s4, %s3940_s7  ;;  %p3947_p12 = scmp.lt.u32.totalorder %s3945_s19, %s3940_s7 }
  0x8c   : > { %p3949_p10 = scmp.lt.u32.totalorder %s3940_s7, %s4699_s4 }
  0x8d   : > { %p3943_p6 = pnand %p3941_p2, %p4670_p5  ;;  %p3948_p0 = por %p3947_p12, %p3946_p3 }
  0x8f   : > { %p3944_p7 = pneg %p3943_p6  ;;  %p3950_p11 = por %p3949_p10, %p3948_p0 }
  0x91   : > { %p3951_p13 = pnand %p3950_p11, %p3944_p7 }
  0x93   : > { %3954 = shalt.err (!%p3951_p13)
}
  0x94   : > { %s3955_s16 = scalar_lea.vmem %s730_s21, 16  ;;  %s4330_s30 = smov [#allocation12]  }
  0x95   : > { %p3956_p8 = scmp.ne.s32.totalorder %s730_s21, %s3955_s16  ;;  %s3960_s3 = sshll.u32 %s4330_s30, 4  ;;  %s3961_s3 = int_to_ptr.vmem [resolvable:$false] %s3960_s3 }
  0x96   : > { %s3962_s26 = scalar_lea.vmem %s3961_s3, 32  ;;  %p3963_p2 = scmp.lt.s32.totalorder %s730_s21, %s3961_s3 }
  0x97   : > { %p3958_p9 = pnand %p3956_p8, %p4670_p5  ;;  %p3964_p6 = scmp.lt.s32.totalorder %s3962_s26, %s3955_s16 }
  0x99   : > { %p3959_p4 = pneg %p3958_p9  ;;  %p3965_p1 = por %p3964_p6, %p3963_p2 }
  0x9b   : > { %p3966_p3 = pnand %p3965_p1, %p3959_p4 }
  0x9d   : > { %3969 = shalt.err (!%p3966_p3)
}
  0x9e   : > { %p5563_p12 = scmp.ne.s32.totalorder %s5557_s2, 0  ;;  %s5564_s7 = scalar_lea.sflag [#allocation13], %s4598_s6 }
  0x9f   : > { %s5565_s11 = sld [smem:[#allocation58_spill]]  ;;  %s760_s3 = scalar_lea.vmem [#allocation15], %s4647_s17 }
  0xa0   : > { %3711 = dma.hbm_to_vmem [thread:$0]  (!%p5563_p12), %s4699_s4, 16, %s730_s21, %s5564_s7  }
  0xa1   : > { %s767_s23 = sshll.u32 %s760_s3, 4  ;;  %s768_s23 = int_to_ptr.vmem [resolvable:$true] %s767_s23 }
  0xa5   : > { %s4726_s20 = scalar_lea.hbm %s5565_s11, %s4650_s0  ;;  %s3975_s21 = scalar_lea.hbm %s5565_s11, 32 }
  0xa6   : > { %s3970_s30 = scalar_lea.hbm %s4726_s20, 16  ;;  %p3976_p10 = scmp.lt.u32.totalorder %s4726_s20, %s5565_s11 }
  0xa7   : > { %p3971_p1 = scmp.ne.s32.totalorder %s4726_s20, %s3970_s30  ;;  %p3977_p11 = scmp.lt.u32.totalorder %s3975_s21, %s3970_s30 }
  0xa8   : > { %p3979_p8 = scmp.lt.u32.totalorder %s3970_s30, %s4726_s20 }
  0xa9   : > { %p3973_p7 = pnand %p3971_p1, %p4670_p5  ;;  %p3978_p13 = por %p3977_p11, %p3976_p10 }
  0xab   : > { %p3974_p0 = pneg %p3973_p7  ;;  %p3980_p9 = por %p3979_p8, %p3978_p13 }
  0xad   : > { %p3981_p4 = pnand %p3980_p9, %p3974_p0 }
  0xaf   : > { %3984 = shalt.err (!%p3981_p4)
}
  0xb0   : > { %s3985_s19 = scalar_lea.vmem %s768_s23, 16  ;;  %s4331_s3 = smov [#allocation15]  }
  0xb1   : > { %p3986_p2 = scmp.ne.s32.totalorder %s768_s23, %s3985_s19  ;;  %s3990_s16 = sshll.u32 %s4331_s3, 4  ;;  %s3991_s16 = int_to_ptr.vmem [resolvable:$false] %s3990_s16 }
  0xb2   : > { %s3992_s26 = scalar_lea.vmem %s3991_s16, 32  ;;  %p3993_p1 = scmp.lt.s32.totalorder %s768_s23, %s3991_s16 }
  0xb3   : > { %p3988_p6 = pnand %p3986_p2, %p4670_p5  ;;  %p3994_p7 = scmp.lt.s32.totalorder %s3992_s26, %s3985_s19 }
  0xb5   : > { %p3989_p3 = pneg %p3988_p6  ;;  %p3995_p12 = por %p3994_p7, %p3993_p1 }
  0xb7   : > { %p3996_p10 = pnand %p3995_p12, %p3989_p3 }
  0xb9   : > { %3999 = shalt.err (!%p3996_p10)
}
  0xba   : > { %p5566_p11 = scmp.ne.s32.totalorder %s5557_s2, 0  ;;  %s5567_s30 = scalar_lea.sflag [#allocation16], %s4598_s6 }
  0xbb   : > { %s5568_s4 = sshll.u32 %s4322_s25, 7  ;;  %s5569_s28 = sld [smem:[#allocation47_spill]] }
  0xbc   : > { %3717 = dma.hbm_to_vmem [thread:$0]  (!%p5566_p11), %s4726_s20, 16, %s768_s23, %s5567_s30  }
  0xbd   : > { %s600_s19 = scalar_lea.vmem [#allocation3], %s4589_s29  ;;  %s5570_s5 = sld [smem:[#allocation52_spill]] }
  0xbe   : > { %s607_s3 = sshll.u32 %s600_s19, 4  ;;  %s5571_s20 = sand.u32 1, %s4306_s22   ;;  %s4757_s3 = int_to_ptr.vmem [resolvable:$true] %s607_s3 }
  0xbf   : > { %s597_s23 = scalar_lea.sflag [#allocation4], %s5571_s20  ;;  %p5572_p0 = scmp.ne.s32.totalorder %s5555_s27, 0 }
  0xc1   : > { %s4754_s16 = scalar_lea.hbm %s5569_s28, %s5568_s4  ;;  %p5573_p13 = pneg %p5572_p0 }
  0xc2   : > { %s4000_s30 = scalar_lea.hbm %s4754_s16, 128  ;;  %s4005_s29 = scalar_lea.hbm %s5569_s28, 256 }
  0xc3   : > { %s4763_s11 = scalar_lea.hbm %s5570_s5, %s4650_s0  ;;  %p4001_p12 = scmp.ne.s32.totalorder %s4754_s16, %s4000_s30 }
  0xc4   : > { %p4006_p4 = scmp.lt.u32.totalorder %s4754_s16, %s5569_s28  ;;  %p4007_p2 = scmp.lt.u32.totalorder %s4005_s29, %s4000_s30 }
  0xc5   : > { %p4003_p8 = pnand %p4001_p12, %p5573_p13  ;;  %p4009_p3 = scmp.lt.u32.totalorder %s4000_s30, %s4754_s16 }
  0xc6   : > { %p4008_p6 = por %p4007_p2, %p4006_p4 }
  0xc7   : > { %p4004_p9 = pneg %p4003_p8 }
  0xc8   : > { %p4010_p1 = por %p4009_p3, %p4008_p6 }
  0xca   : > { %p4011_p7 = pnand %p4010_p1, %p4004_p9 }
  0xcc   : > { %4014 = shalt.err (!%p4011_p7)
}
  0xcd   : > { %s4015_s9 = scalar_lea.vmem %s4757_s3, 128  ;;  %p5574_p12 = pmov %p5573_p13 }
  0xce   : > { %p4016_p10 = scmp.ne.s32.totalorder %s4757_s3, %s4015_s9  ;;  %s4332_s26 = smov [#allocation3]  }
  0xcf   : > { %s4020_s20 = sshll.u32 %s4332_s26, 4  ;;  %s4021_s20 = int_to_ptr.vmem [resolvable:$false] %s4020_s20 }
  0xd0   : > { %p4018_p13 = pnand %p4016_p10, %p5574_p12  ;;  %s4022_s4 = scalar_lea.vmem %s4021_s20, 256 }
  0xd1   : > { %p4023_p11 = scmp.lt.s32.totalorder %s4757_s3, %s4021_s20  ;;  %p4024_p4 = scmp.lt.s32.totalorder %s4022_s4, %s4015_s9 }
  0xd2   : > { %p4019_p8 = pneg %p4018_p13 }
  0xd3   : > { %p4025_p2 = por %p4024_p4, %p4023_p11 }
  0xd5   : > { %p4026_p6 = pnand %p4025_p2, %p4019_p8 }
  0xd7   : > { %4029 = shalt.err (!%p4026_p6)
}
  0xd8   : > { %3696 = dma.hbm_to_vmem [thread:$0]  (!%p5572_p0), %s4754_s16, 128, %s4757_s3, %s597_s23  }
  0xd9   : > { %s659_s30 = scalar_lea.vmem [#allocation8], %s4647_s17  ;;  %s4792_s29 = sshll.u32 %s4647_s17, 4 }
  0xda   : > { %s666_s21 = sshll.u32 %s659_s30, 4  ;;  %s4030_s7 = scalar_lea.hbm %s4763_s11, 16  ;;  %s667_s21 = int_to_ptr.vmem [resolvable:$true] %s666_s21 }
  0xdb   : > { %p4031_p11 = scmp.ne.s32.totalorder %s4763_s11, %s4030_s7  ;;  %s4035_s9 = scalar_lea.hbm %s5570_s5, 32 }
  0xdc   : > { %p4036_p1 = scmp.lt.u32.totalorder %s4763_s11, %s5570_s5  ;;  %p4037_p7 = scmp.lt.u32.totalorder %s4035_s9, %s4030_s7 }
  0xdd   : > { %p4033_p9 = pnand %p4031_p11, %p4670_p5  ;;  %p4039_p10 = scmp.lt.u32.totalorder %s4030_s7, %s4763_s11 }
  0xde   : > { %p4038_p0 = por %p4037_p7, %p4036_p1 }
  0xdf   : > { %p4034_p3 = pneg %p4033_p9 }
  0xe0   : > { %p4040_p12 = por %p4039_p10, %p4038_p0 }
  0xe2   : > { %p4041_p13 = pnand %p4040_p12, %p4034_p3 }
  0xe4   : > { %4044 = shalt.err (!%p4041_p13)
}
  0xe5   : > { %s4045_s16 = scalar_lea.vmem %s667_s21, 16  ;;  %s4333_s3 = smov [#allocation8]  }
  0xe6   : > { %p4046_p8 = scmp.ne.s32.totalorder %s667_s21, %s4045_s16  ;;  %s4050_s23 = sshll.u32 %s4333_s3, 4  ;;  %s4051_s23 = int_to_ptr.vmem [resolvable:$false] %s4050_s23 }
  0xe7   : > { %s4052_s4 = scalar_lea.vmem %s4051_s23, 32  ;;  %p4053_p6 = scmp.lt.s32.totalorder %s667_s21, %s4051_s23 }
  0xe8   : > { %p4048_p4 = pnand %p4046_p8, %p4670_p5  ;;  %p4054_p11 = scmp.lt.s32.totalorder %s4052_s4, %s4045_s16 }
  0xea   : > { %p4049_p2 = pneg %p4048_p4  ;;  %p4055_p9 = por %p4054_p11, %p4053_p6 }
  0xec   : > { %p4056_p1 = pnand %p4055_p9, %p4049_p2 }
  0xee   : > { %4059 = shalt.err (!%p4056_p1)
}
  0xef   : > { %p5575_p7 = scmp.ne.s32.totalorder %s5557_s2, 0  ;;  %s5576_s30 = scalar_lea.sflag [#allocation7], %s4598_s6 }
  0xf0   : > { %s4814_s7 = sshll.u32 %s4318_s24, 8  ;;  %s702_s27 = scalar_lea.vmem [#allocation11], %s4792_s29 }
  0xf1   : > { %3702 = dma.hbm_to_vmem [thread:$0]  (!%p5575_p7), %s4763_s11, 16, %s667_s21, %s5576_s30  }
  0xf2   : > { %s709_s19 = sshll.u32 %s702_s27, 4  ;;  %s5577_s8 = sld [smem:[#allocation55_spill]]  ;;  %s4823_s19 = int_to_ptr.vmem [resolvable:$true] %s709_s19 }
  0xf8   : > { %s4821_s20 = scalar_lea.hbm %s5577_s8, %s4814_s7  ;;  %s4065_s3 = scalar_lea.hbm %s5577_s8, 512 }
  0xf9   : > { %s4060_s16 = scalar_lea.hbm %s4821_s20, 256  ;;  %p4066_p12 = scmp.lt.u32.totalorder %s4821_s20, %s5577_s8 }
  0xfa   : > { %p4061_p3 = scmp.ne.s32.totalorder %s4821_s20, %s4060_s16  ;;  %p4067_p13 = scmp.lt.u32.totalorder %s4065_s3, %s4060_s16 }
  0xfb   : > { %p4069_p4 = scmp.lt.u32.totalorder %s4060_s16, %s4821_s20 }
  0xfc   : > { %p4063_p0 = pnand %p4061_p3, %p4670_p5  ;;  %p4068_p8 = por %p4067_p13, %p4066_p12 }
  0xfe   : > { %p4064_p10 = pneg %p4063_p0  ;;  %p4070_p2 = por %p4069_p4, %p4068_p8 }
 0x100   : > { %p4071_p6 = pnand %p4070_p2, %p4064_p10 }
 0x102   : > { %4074 = shalt.err (!%p4071_p6)
}
 0x103   : > { %s4075_s30 = scalar_lea.vmem %s4823_s19, 256  ;;  %s4334_s27 = smov [#allocation11]  }
 0x104   : > { %p4076_p11 = scmp.ne.s32.totalorder %s4823_s19, %s4075_s30  ;;  %s4080_s9 = sshll.u32 %s4334_s27, 4  ;;  %s4081_s9 = int_to_ptr.vmem [resolvable:$false] %s4080_s9 }
 0x105   : > { %s4082_s26 = scalar_lea.vmem %s4081_s9, 512  ;;  %p4083_p3 = scmp.lt.s32.totalorder %s4823_s19, %s4081_s9 }
 0x106   : > { %p4078_p9 = pnand %p4076_p11, %p4670_p5  ;;  %p4084_p0 = scmp.lt.s32.totalorder %s4082_s26, %s4075_s30 }
 0x108   : > { %p4079_p1 = pneg %p4078_p9  ;;  %p4085_p12 = por %p4084_p0, %p4083_p3 }
 0x10a   : > { %p4086_p13 = pnand %p4085_p12, %p4079_p1 }
 0x10c   : > { %4089 = shalt.err (!%p4086_p13)
}
 0x10d   : > { %s4335_s16 = smov 64   ;;  %s4336_s11 = smov 4  }
 0x10e   : > { %s5578_s21 = scalar_lea.sflag [#allocation10], %s4598_s6  ;;  %s5579_s10 = sld [smem:[#allocation57_spill]] }
 0x10f   : > { %3708 = dma.hbm_to_vmem [thread:$0]  (!%p5575_p7), %s4821_s20, 256, %s4823_s19, %s5578_s21, %s4335_s16, %s4335_s16, %s4336_s11  }
 0x110   : > { %s740_s30 = scalar_lea.vmem [#allocation14], %s4792_s29  ;;  %s5580_s12 = sld [smem:[#allocation59_spill]] }
 0x111   : > { %s747_s27 = sshll.u32 %s740_s30, 4  ;;  %s4858_s27 = int_to_ptr.vmem [resolvable:$true] %s747_s27 }
 0x114   : > { %s4855_s4 = scalar_lea.hbm %s5579_s10, %s4814_s7  ;;  %s4095_s21 = scalar_lea.hbm %s5579_s10, 512 }
 0x115   : > { %s4090_s8 = scalar_lea.hbm %s4855_s4, 256  ;;  %p4096_p2 = scmp.lt.u32.totalorder %s4855_s4, %s5579_s10 }
 0x116   : > { %s4864_s5 = scalar_lea.hbm %s5580_s12, %s4814_s7  ;;  %p4091_p10 = scmp.ne.s32.totalorder %s4855_s4, %s4090_s8 }
 0x117   : > { %p4097_p6 = scmp.lt.u32.totalorder %s4095_s21, %s4090_s8  ;;  %p4099_p9 = scmp.lt.u32.totalorder %s4090_s8, %s4855_s4 }
 0x118   : > { %p4093_p8 = pnand %p4091_p10, %p4670_p5 }
 0x119   : > { %p4098_p11 = por %p4097_p6, %p4096_p2 }
 0x11a   : > { %p4094_p4 = pneg %p4093_p8 }
 0x11b   : > { %p4100_p1 = por %p4099_p9, %p4098_p11 }
 0x11d   : > { %p4101_p3 = pnand %p4100_p1, %p4094_p4 }
 0x11f   : > { %4104 = shalt.err (!%p4101_p3)
}
 0x120   : > { %s4105_s7 = scalar_lea.vmem %s4858_s27, 256  ;;  %s4337_s30 = smov [#allocation14]  }
 0x121   : > { %p4106_p0 = scmp.ne.s32.totalorder %s4858_s27, %s4105_s7  ;;  %s4110_s9 = sshll.u32 %s4337_s30, 4  ;;  %s4111_s9 = int_to_ptr.vmem [resolvable:$false] %s4110_s9 }
 0x122   : > { %s4112_s26 = scalar_lea.vmem %s4111_s9, 512  ;;  %p4113_p10 = scmp.lt.s32.totalorder %s4858_s27, %s4111_s9 }
 0x123   : > { %p4108_p12 = pnand %p4106_p0, %p4670_p5  ;;  %p4114_p8 = scmp.lt.s32.totalorder %s4112_s26, %s4105_s7 }
 0x125   : > { %p4109_p13 = pneg %p4108_p12  ;;  %p4115_p2 = por %p4114_p8, %p4113_p10 }
 0x127   : > { %p4116_p6 = pnand %p4115_p2, %p4109_p13 }
 0x129   : > { %4119 = shalt.err (!%p4116_p6)
}
 0x12a   : > { %s5581_s8 = scalar_lea.sflag [#allocation13], %s4598_s6  ;;  %s778_s19 = scalar_lea.vmem [#allocation17], %s4792_s29 }
 0x12b   : > { %3714 = dma.hbm_to_vmem [thread:$0]  (!%p5575_p7), %s4855_s4, 256, %s4858_s27, %s5581_s8, %s4335_s16, %s4335_s16, %s4336_s11  }
 0x12c   : > { %s785_s20 = sshll.u32 %s778_s19, 4  ;;  %s4120_s21 = scalar_lea.hbm %s4864_s5, 256  ;;  %s4893_s20 = int_to_ptr.vmem [resolvable:$true] %s785_s20 }
 0x12d   : > { %p4121_p4 = scmp.ne.s32.totalorder %s4864_s5, %s4120_s21  ;;  %s4125_s7 = scalar_lea.hbm %s5580_s12, 512 }
 0x12e   : > { %p4126_p1 = scmp.lt.u32.totalorder %s4864_s5, %s5580_s12  ;;  %p4127_p3 = scmp.lt.u32.totalorder %s4125_s7, %s4120_s21 }
 0x12f   : > { %p4123_p11 = pnand %p4121_p4, %p4670_p5  ;;  %p4129_p12 = scmp.lt.u32.totalorder %s4120_s21, %s4864_s5 }
 0x130   : > { %p4128_p0 = por %p4127_p3, %p4126_p1 }
 0x131   : > { %p4124_p9 = pneg %p4123_p11 }
 0x132   : > { %p4130_p13 = por %p4129_p12, %p4128_p0 }
 0x134   : > { %p4131_p10 = pnand %p4130_p13, %p4124_p9 }
 0x136   : > { %4134 = shalt.err (!%p4131_p10)
}
 0x137   : > { %s4135_s29 = scalar_lea.vmem %s4893_s20, 256  ;;  %s4338_s4 = smov [#allocation17]  }
 0x138   : > { %p4136_p8 = scmp.ne.s32.totalorder %s4893_s20, %s4135_s29  ;;  %s4140_s27 = sshll.u32 %s4338_s4, 4  ;;  %s4141_s27 = int_to_ptr.vmem [resolvable:$false] %s4140_s27 }
 0x139   : > { %s4142_s26 = scalar_lea.vmem %s4141_s27, 512  ;;  %p4143_p4 = scmp.lt.s32.totalorder %s4893_s20, %s4141_s27 }
 0x13a   : > { %p4138_p2 = pnand %p4136_p8, %p4670_p5  ;;  %p4144_p11 = scmp.lt.s32.totalorder %s4142_s26, %s4135_s29 }
 0x13c   : > { %p4139_p6 = pneg %p4138_p2  ;;  %p4145_p1 = por %p4144_p11, %p4143_p4 }
 0x13e   : > { %p4146_p3 = pnand %p4145_p1, %p4139_p6 }
 0x140   : > { %4149 = shalt.err (!%p4146_p3)
}
 0x141   : > { %s5582_s8 = scalar_lea.sflag [#allocation16], %s4598_s6  ;;  %s5583_s13 = sld [smem:[#allocation60_spill]] }
 0x142   : > { %3720 = dma.hbm_to_vmem [thread:$0]  (!%p5575_p7), %s4864_s5, 256, %s4893_s20, %s5582_s8, %s4335_s16, %s4335_s16, %s4336_s11  }
 0x143   : > { %s798_s23 = scalar_lea.vmem [#allocation18], %s4647_s17  ;;  %s796_s6 = scalar_lea.sflag [#allocation19], %s4647_s17 }
 0x144   : > { %s805_s7 = sshll.u32 %s798_s23, 4  ;;  %s806_s7 = int_to_ptr.vmem [resolvable:$true] %s805_s7 }
 0x147   : > { %s4925_s3 = scalar_lea.hbm %s5583_s13, %s4650_s0  ;;  %s4155_s16 = scalar_lea.hbm %s5583_s13, 32 }
 0x148   : > { %s4150_s30 = scalar_lea.hbm %s4925_s3, 16  ;;  %p4156_p13 = scmp.lt.u32.totalorder %s4925_s3, %s5583_s13 }
 0x149   : > { %p4151_p9 = scmp.ne.s32.totalorder %s4925_s3, %s4150_s30  ;;  %p4157_p10 = scmp.lt.u32.totalorder %s4155_s16, %s4150_s30 }
 0x14a   : > { %p4159_p2 = scmp.lt.u32.totalorder %s4150_s30, %s4925_s3 }
 0x14b   : > { %p4153_p0 = pnand %p4151_p9, %p4670_p5  ;;  %p4158_p8 = por %p4157_p10, %p4156_p13 }
 0x14d   : > { %p4154_p12 = pneg %p4153_p0  ;;  %p4160_p6 = por %p4159_p2, %p4158_p8 }
 0x14f   : > { %p4161_p4 = pnand %p4160_p6, %p4154_p12 }
 0x151   : > { %4164 = shalt.err (!%p4161_p4)
}
 0x152   : > { %s4165_s17 = scalar_lea.vmem %s806_s7, 16  ;;  %s4339_s20 = smov [#allocation18]  }
 0x153   : > { %p4166_p11 = scmp.ne.s32.totalorder %s806_s7, %s4165_s17  ;;  %s4170_s29 = sshll.u32 %s4339_s20, 4  ;;  %s4171_s29 = int_to_ptr.vmem [resolvable:$false] %s4170_s29 }
 0x154   : > { %s4172_s4 = scalar_lea.vmem %s4171_s29, 32  ;;  %p4173_p9 = scmp.lt.s32.totalorder %s806_s7, %s4171_s29 }
 0x155   : > { %p4168_p1 = pnand %p4166_p11, %p4670_p5  ;;  %p4174_p0 = scmp.lt.s32.totalorder %s4172_s4, %s4165_s17 }
 0x157   : > { %p4169_p3 = pneg %p4168_p1  ;;  %p4175_p7 = por %p4174_p0, %p4173_p9 }
 0x159   : > { %p4176_p10 = pnand %p4175_p7, %p4169_p3 }
 0x15b   : > { %4179 = shalt.err (!%p4176_p10)
}
 0x15c   : > { %p5584_p13 = scmp.ne.s32.totalorder %s5557_s2, 0  ;;  %p5585_p12 = scmp.ne.s32.totalorder %s5558_s18, 0 }
 0x15d   : > { %s4949_s14 = sand.u32 (!%p5585_p12), 1, %s4302_s1   ;;  %p5586_p5 = scmp.ne.s32.totalorder (!%p5585_p12), %s5544_s15, 0 }
 0x15e   : > { %3723 = dma.hbm_to_vmem [thread:$0]  (!%p5584_p13), %s4925_s3, 16, %s806_s7, %s796_s6  }
 0x15f   : > { %835 = sbr.rel (%p5585_p12) target bundleno = 7319 (0x1c97), region = 96  ;;  %s4952_s27 = sshll.u32 (!%p5585_p12), %s4949_s14, 3 }
 0x160   : > { %s838_s26 = scalar_lea.sflag (!%p5585_p12), [#allocation4], %s4949_s14 }
 0x166   : > { %4253 = dma.done.wait (%p5586_p5), %s838_s26, 128  }
 0x167   : > { %4255 = vsyncadd (%p5586_p5), %s838_s26, 4294967168  ;;  %s5587_s2 = sld [smem:[#allocation39_spill]] }
 0x16d   : > { %s846_s18 = sand.u32 1, %s5587_s2  }
 0x16e   : > { %s847_s19 = scalar_lea.sflag [#allocation7], %s846_s18 }
 0x16f   : > { %4257 = dma.done.wait (%p5586_p5), %s847_s19, 128  }
 0x170   : > { %4259 = vsyncadd (%p5586_p5), %s847_s19, 4294967168  ;;  %s5588_s3 = sld [smem:[#allocation29_spill]]  ;;  %s5589_s23 = sld [smem:[#allocation44_spill]] }
 0x176   : > { %s4967_s7 = sand.u32 1, %s5588_s3   ;;  %p5590_p7 = scmp.ne.s32.totalorder %s5589_s23, 0 }
 0x178   : > { %4261 = dma.done.wait (%p5590_p7), %s847_s19, 16  }
 0x179   : > { %4263 = vsyncadd (%p5590_p7), %s847_s19, 4294967280  ;;  %s864_s30 = scalar_lea.sflag [#allocation10], %s846_s18 }
 0x17a   : > { %4265 = dma.done.wait (%p5590_p7), %s864_s30, 272  }
 0x17b   : > { %4267 = vsyncadd (%p5590_p7), %s864_s30, 4294967024  ;;  %s4980_s15 = sshll.u32 %s4967_s7, 4  ;;  %s881_s16 = scalar_lea.sflag [#allocation13], %s846_s18 }
 0x17c   : > { %4269 = dma.done.wait (%p5590_p7), %s881_s16, 272  }
 0x17d   : > { %4271 = vsyncadd (%p5590_p7), %s881_s16, 4294967024  ;;  %s4989_s0 = scalar_lea.vmem [#allocation14], %s4980_s15  ;;  %s898_s17 = scalar_lea.sflag [#allocation16], %s846_s18 }
 0x17e   : > { %4273 = dma.done.wait (%p5590_p7), %s898_s17, 272  }
 0x17f   : > { %4275 = vsyncadd (%p5590_p7), %s898_s17, 4294967024  ;;  %s915_s4 = scalar_lea.sflag [#allocation19], %s4967_s7 }
 0x180   : > { %4277 = dma.done.wait (%p5590_p7), %s915_s4, 16  }
 0x181   : > { %4279 = vsyncadd (%p5590_p7), %s915_s4, 4294967280  ;;  %s5591_s2 = sld [smem:[#allocation35_spill]]  ;;  %s5592_s18 = sld [smem:[#allocation34_spill]] }
 0x182   : > { %s5593_s17 = sld [smem:[#allocation48_spill]]  ;;  %s5594_s29 = sld [smem:[#allocation49_spill]] }
 0x183   : > { %s5595_s21 = sld [smem:[#allocation51_spill]]  ;;  %s5596_s13 = sld [smem:[#allocation53_spill]] }
 0x184   : > { %s5597_s16 = sld [smem:[#allocation61_spill]]  ;;  %s5599_s1 = sld [smem:[#allocation63_spill]] }
 0x187   : > { %p1044_p8 = scmp.lt.s32.totalorder %s5591_s2, 1  ;;  %p1054_p2 = scmp.lt.s32.totalorder %s5592_s18, 1 }
 0x188   : > { %p3333_p6 = scmp.ne.s32.totalorder %s5592_s18, 0 }
 0x189   : > { %s5641_s2 = smov (!%p1044_p8, %s5591_s2), 1  ;;  %s5600_s10 = scalar_lea.vmem (!%p3333_p6), [#allocation3], %s4952_s27  ;;  %vm1082_vm0 = vcmask (!%p3333_p6), 261120  }
 0x18a   : > { %s5007_s19 = scalar_select %p1054_p2, %s5592_s18, 1 }
 0x18b   : > { %s3391_s3 = sshll.u32 %s5641_s2, 4  ;;  %v1081_v0 = vld [vmem:[%s5600_s10] sm:$0xff] (!%p3333_p6) }
 0x18c   : > { %s5012_s23 = scalar_lea.vmem %s5593_s17, %s3391_s3  ;;  %s5017_s20 = scalar_lea.vmem %s5594_s29, %s3391_s3  ;;  %1083 = vst.msk [vmem:[#allocation2] sm:$0xff] (!%p3333_p6), %vm1082_vm0, %v1081_v0 }
 0x18d   : > { %s3393_s11 = sshll.u32 %s5007_s19, 4  ;;  %s3395_s5 = sshll.u32 %s5007_s19, 5 }
 0x18e   : > { %s1058_s8 = scalar_lea.vmem %s5595_s21, %s3393_s11  ;;  %s5027_s2 = scalar_lea.vmem %s5596_s13, %s3393_s11 }
 0x18f   : > { %s5032_s17 = scalar_lea.vmem %s5597_s16, %s3395_s5  ;;  %s5598_s29 = sld [smem:[#allocation62_spill]] }
 0x190   : > { %s3332_s4 = sshll.u32 %s5007_s19, 3  ;;  %s1043_s21 = scalar_lea.vmem [#allocation20], %s4952_s27 }
 0x191   : > { %s5042_s6 = scalar_lea.vmem %s5599_s1, %s3332_s4  ;;  %1080 = sbr.rel (%p3333_p6) target bundleno = 408 (0x198), region = 140 }
 0x195   : > { %s1071_s3 = scalar_lea.vmem %s5598_s29, %s5007_s19 }
 0x198 PF: > { %v3830_v1 = vld [vmem:[%s1058_s8] sm:$0xff]   ;;  %v4340_v2 = vmov 0.0   ;;  %v3831_v3 = vld [vmem:[%s1058_s8 + $0x8] sm:$0xff]   ;;  %vm4341_vm1 = vmmov 0   ;;  %s5601_s12 = scalar_lea.vmem [#allocation6], %s4952_s27  ;;  %vm1122_vm2 = vcmask 261120  }
 0x199   : > { %3467 = vmatprep.subr.bf16.mxu1 %v4340_v2  ;;  %3483 = vmatprep.subr.bf16.mxu0 %v4340_v2  ;;  %v5052_v4 = vld [vmem:[#allocation2] sm:$0xff]  ;;  %s5602_s13 = scalar_lea.vmem [#allocation8], %s4967_s7  ;;  %s4342_s1 = smov 120   ;;  %vm1223_vm3 = vcmask 64512   ;;  %vm1286_vm4 = vcmask 1043456   ;;  %vm2119_vm5 = vcmask 130048  }
 0x19a   : > { %3468 = vmatpush3.bf16.msra.mxu1 %v3830_v1  ;;  %3471 = vmatprep.mubr.msk.bf16.mxu1 %vm4341_vm1, %v4340_v2  ;;  %v5056_v5 = vld [vmem:[%s5601_s12] sm:$0xff]  ;;  %s4343_s22 = smov 96   ;;  %s4344_s24 = smov 88   ;;  %v1103_v21 = vpack.c.bf16 %v5052_v4, %v5052_v4  ;;  %vm2834_vm6 = vcmask 523264  }
 0x19b   : > { %3469 = vmatprep.subr.bf16.mxu1 %v4340_v2  ;;  %v1091_v6 = vadd.f32 %v5056_v5, %v5052_v4  ;;  %3485 = vmatprep.mubr.msk.bf16.mxu0 %vm4341_vm1, %v4340_v2  ;;  %v3334_v8 = vld [vmem:[%s5602_s13] ss:$0 sm:$0xff]  ;;  %s4345_s25 = smov 64   ;;  %s4346_s28 = smov 80  }
 0x19c   : > { %s4347_s8 = smov 112   ;;  %v1097_v63 = vld [vmem:[%s5027_s2] sm:$0xf]  ;;  %s4348_s9 = smov 72  }
 0x19d   : > { %v1102_v7 = vpack.c.bf16 %v1091_v6, %v1091_v6  ;;  %v1494_v0 = vsel %vm1286_vm4, %v1097_v63, 0  ;;  %s4349_s5 = smov 104   ;;  %s5603_s11 = scalar_lea.vmem [#allocation9], %s4967_s7 }
 0x19e   : > { %3470 = vmatpush3.bf16.msra.mxu1 %v3831_v3  ;;  %s5604_s18 = scalar_lea.vmem [#allocation11], %s4980_s15  ;;  %s5606_s30 = scalar_lea.vmem [#allocation12], %s4967_s7 }
 0x19f   : > { %3475 = vmatprep.subr.bf16.mxu1 %v4340_v2 }
 0x1a1   : > { %3472 = vmatmul.mubr.msk.bf16.vlgmr.msra.gmra.mrb[0].mxu1 %vm1122_vm2, %v1102_v7 }
 0x1a2   : > { %3479 = vmatprep.mubr.msk.bf16.mxu1 %vm4341_vm1, %v4340_v2 }
 0x274   : > { %v1160_v9 = vpop.f32.mrb[0].mxu1 }
 0x275   : > { %v1161_v10 = vadd.f32 %v3334_v8, %v1160_v9  ;;  %v3473_v11 = vpop.f32.mrb[1].mxu1 }
 0x276   : > { %v1163_v12 = vpop.f32.mrb[2].mxu1 }
 0x277   : > { %v5069_v13 = vpack.c.bf16 %v1161_v10, %v1161_v10  ;;  %v3474_v14 = vpop.f32.mrb[3].mxu1 }
 0x279   : > { %1331 = vrot.lane.b32.xlu1 %v5069_v13, %s4342_s1  ;;  %1221 = vrot.lane.b32.xlu0 %v5069_v13, %s4343_s22 }
 0x27d   : > { %1333 = vrot.lane.b32.xlu0 %v5069_v13, %s4344_s24  ;;  %1166 = vrot.lane.b32.xlu1 %v3830_v1, %s4345_s25  ;;  %v1098_v1 = vld [vmem:[%s5027_s2 + $0x4] sm:$0xf] }
 0x281   : > { %1168 = vrot.lane.b32.xlu0 %v3831_v3, %s4345_s25  ;;  %v1448_v3 = vsel %vm1286_vm4, %v1098_v1, 0 }
 0x2eb   : > { %v1332_v15 = vpop.permute.xlu1 %1331  ;;  %v1222_v16 = vpop.permute.xlu0 %1221 }
 0x2ec   : > { %v1228_v17 = vsel %vm1223_vm3, %v1222_v16, 0 }
 0x2ed   : > { %3484 = vmatpush3.bf16.xpose.msra.mxu0 %v1228_v17 }
 0x2ee   : > { %3495 = vmatprep.subr.bf16.mxu0 %v4340_v2 }
 0x2ef   : > { %v1334_v18 = vpop.permute.xlu0 %1333  ;;  %v1167_v19 = vpop.permute.xlu1 %1166 }
 0x2f0   : > { %3476 = vmatpush3.bf16.msra.mxu1 %v1167_v19  ;;  %v1339_v22 = vsel %vm1223_vm3, %v1334_v18, 0 }
 0x2f1   : > { %3477 = vmatprep.subr.bf16.mxu1 %v4340_v2 }
 0x2f3   : > { %v1169_v20 = vpop.permute.xlu0 %1168 }
 0x2f4   : > { %3486 = vmatmul.mubr.msk.bf16.vlgmr.msra.gmra.mrb[0].mxu0 %vm1223_vm3, %v5069_v13  ;;  %3478 = vmatpush3.bf16.msra.mxu1 %v1169_v20 }
 0x2f5   : > { %3496 = vmatpush3.bf16.xpose.msra.mxu0 %v1339_v22  ;;  %3497 = vmatprep.mubr.msk.bf16.mxu0 %vm4341_vm1, %v4340_v2 }
 0x2f6   : > { %3489 = vmatprep.subr.bf16.mxu1 %v4340_v2  ;;  %3507 = vmatprep.subr.bf16.mxu0 %v4340_v2 }
 0x2f7   : > { %3480 = vmatmul.mubr.msk.bf16.vlgmr.msra.gmra.mrb[4].mxu1 %vm1122_vm2, %v1103_v21 }
 0x2f8   : > { %3491 = vmatprep.mubr.msk.bf16.mxu1 %vm4341_vm1, %v4340_v2 }
 0x2fc   : > { %3498 = vmatmul.mubr.msk.bf16.vlgmr.msra.gmra.mrb[4].mxu0 %vm1223_vm3, %v1332_v15 }
 0x2fd   : > { %3509 = vmatprep.mubr.msk.bf16.mxu0 %vm4341_vm1, %v4340_v2  ;;  %3508 = vmatpush3.bf16.msra.mxu0 %v1448_v3 }
 0x2fe   : > { %3519 = vmatprep.subr.bf16.mxu0 %v4340_v2 }
 0x3c7   : > { %v1264_v23 = vpop.f32.mrb[0].mxu0 }
 0x3c8   : > { %v1270_v24 = vmul.f32 0.35355338, %v1264_v23  ;;  %v3487_v25 = vpop.f32.mrb[1].mxu0 }
 0x3c9   : > { %v1267_v26 = vpop.f32.mrb[2].mxu0 }
 0x3ca   : > { %v3488_v27 = vpop.f32.mrb[3].mxu0  ;;  %v1271_v28 = vsel %vm1223_vm3, %v1270_v24, -inf  ;;  %v1212_v35 = vpop.f32.mrb[4].mxu1 }
 0x3cb   : > { %1272 = vmax.xlane.f32.xlu1 %v1271_v28  ;;  %v3481_v36 = vpop.f32.mrb[5].mxu1 }
 0x3cc   : > { %v1215_v37 = vpop.f32.mrb[6].mxu1 }
 0x3cd   : > { %v3482_v38 = vpop.f32.mrb[7].mxu1 }
 0x3cf   : > { %v1375_v29 = vpop.f32.mrb[4].mxu0 }
 0x3d0   : > { %v1381_v30 = vmul.f32 0.35355338, %v1375_v29  ;;  %v3499_v31 = vpop.f32.mrb[5].mxu0 }
 0x3d1   : > { %v1378_v32 = vpop.f32.mrb[6].mxu0 }
 0x3d2   : > { %v3500_v33 = vpop.f32.mrb[7].mxu0  ;;  %v1382_v34 = vsel %vm1223_vm3, %v1381_v30, -inf }
 0x3d3   : > { %1383 = vmax.xlane.f32.xlu0 %v1382_v34 }
 0x3e9   : > { %1172 = vrot.lane.b32.xlu0 %v3334_v8, %s4345_s25 }
 0x3ed   : > { %1538 = vrot.lane.b32.xlu0 %v5069_v13, %s4346_s28 }
 0x3f1   : > { %1536 = vrot.lane.b32.xlu0 %v5069_v13, %s4347_s8 }
 0x458   : > { %v1273_v39 = vpop.xlane.xlu1 %1272 }
 0x459   : > { %v1274_v40 = vsub.f32 %v1270_v24, %v1273_v39 }
 0x45b   : > { %v1275_v41 = vmul.f32 1.442695, %v1274_v40 }
 0x45d   : > { %3840 = vpow2.f32 %v1275_v41 }
 0x460   : > { %v1384_v42 = vpop.xlane.xlu0 %1383 }
 0x461   : > { %v1385_v43 = vsub.f32 %v1381_v30, %v1384_v42 }
 0x463   : > { %v1386_v44 = vmul.f32 1.442695, %v1385_v43 }
 0x464   : > { %v1173_v45 = vpop.permute.xlu0 %1172 }
 0x465   : > { %3842 = vpow2.f32 %v1386_v44  ;;  %v1213_v46 = vadd.f32 %v1212_v35, %v1173_v45 }
 0x467   : > { %v3841_v47 = vpop.eup %3840  ;;  %v5102_v48 = vpack.c.bf16 %v1213_v46, %v1213_v46 }
 0x468   : > { %v1277_v49 = vsel %vm1223_vm3, %v3841_v47, 0.0  ;;  %v1539_v11 = vpop.permute.xlu0 %1538 }
 0x469   : > { %1278 = vadd.xlane.f32.xlu1 %v1277_v49  ;;  %v1288_v50 = vsel %vm1286_vm4, %v5102_v48, 0  ;;  %v1544_v17 = vsel %vm1223_vm3, %v1539_v11, 0  ;;  %v1099_v49 = vld [vmem:[%s5027_s2 + $0x8] sm:$0xf] }
 0x46a   : > { %3490 = vmatpush3.bf16.msra.mxu1 %v1288_v50  ;;  %v1652_v50 = vsel %vm1286_vm4, %v1099_v49, 0 }
 0x46b   : > { %3501 = vmatprep.subr.bf16.mxu1 %v4340_v2 }
 0x46c   : > { %v1537_v19 = vpop.permute.xlu0 %1536 }
 0x46f   : > { %v3843_v51 = vpop.eup %3842 }
 0x470   : > { %v1388_v52 = vsel %vm1223_vm3, %v3843_v51, 0.0 }
 0x471   : > { %1389 = vadd.xlane.f32.xlu1 %v1388_v52 }
 0x482   : > { %1395 = vrot.lane.b32.xlu1 %v5102_v48, %s4342_s1 }
 0x4f6   : > { %v1279_v53 = vpop.xlane.xlu1 %1278 }
 0x4f7   : > { %3844 = vrcp.f32 %v1279_v53 }
 0x4fe   : > { %v1390_v54 = vpop.xlane.xlu1 %1389 }
 0x4ff   : > { %3846 = vrcp.f32 %v1390_v54 }
 0x501   : > { %v3845_v55 = vpop.eup %3844 }
 0x502   : > { %v1281_v56 = vmul.f32 %v3845_v55, %v3841_v47  ;;  %v1396_v57 = vpop.permute.xlu1 %1395 }
 0x503   : > { %v1401_v58 = vsel %vm1286_vm4, %v1396_v57, 0 }
 0x504   : > { %v1282_v59 = vpack.c.bf16 %v1281_v56, %v1281_v56 }
 0x506   : > { %3492 = vmatmul.mubr.msk.bf16.vlgmr.msra.gmra.mrb[8].mxu1 %vm1223_vm3, %v1282_v59 }
 0x507   : > { %3502 = vmatpush3.bf16.msra.mxu1 %v1401_v58  ;;  %3503 = vmatprep.mubr.msk.bf16.mxu1 %vm4341_vm1, %v4340_v2 }
 0x508   : > { %3513 = vmatprep.subr.bf16.mxu1 %v4340_v2 }
 0x509   : > { %v3847_v60 = vpop.eup %3846 }
 0x50a   : > { %v1392_v61 = vmul.f32 %v3847_v60, %v3843_v51 }
 0x50c   : > { %v1393_v62 = vpack.c.bf16 %v1392_v61, %v1392_v61 }
 0x50e   : > { %3504 = vmatmul.mubr.msk.bf16.vlgmr.msra.gmra.mrb[12].mxu1 %vm1223_vm3, %v1393_v62 }
 0x50f   : > { %3515 = vmatprep.mubr.msk.bf16.mxu1 %vm4341_vm1, %v4340_v2  ;;  %3514 = vmatpush3.bf16.msra.mxu1 %v1494_v0 }
 0x510   : > { %3525 = vmatprep.subr.bf16.mxu1 %v4340_v2 }
 0x5d9   : > { %v1324_v6 = vpop.f32.mrb[8].mxu1 }
 0x5da   : > { %v1330_v7 = vpack.c.bf16 %v1324_v6, %v1324_v6  ;;  %v3493_v8 = vpop.f32.mrb[9].mxu1 }
 0x5db   : > { %v1327_v9 = vpop.f32.mrb[10].mxu1  ;;  %v1100_v8 = vld [vmem:[%s5027_s2 + $0xc] sm:$0xf]  ;;  %s5605_s2 = smov %s5604_s18 }
 0x5dc   : > { %v3494_v10 = vpop.f32.mrb[11].mxu1  ;;  %3516 = vmatmul.mubr.msk.bf16.vlgmr.msra.gmra.mrb[16].mxu1 %vm1223_vm3, %v1330_v7  ;;  %v1811_v9 = vsel %vm1286_vm4, %v1100_v8, 0 }
 0x5dd   : > { %3527 = vmatprep.mubr.msk.bf16.mxu1 %vm4341_vm1, %v4340_v2 }
 0x5e1   : > { %v1437_v12 = vpop.f32.mrb[12].mxu1 }
 0x5e2   : > { %v1443_v14 = vpack.c.bf16 %v1437_v12, %v1437_v12  ;;  %v3505_v15 = vpop.f32.mrb[13].mxu1 }
 0x5e3   : > { %v1440_v16 = vpop.f32.mrb[14].mxu1 }
 0x5e4   : > { %v3506_v18 = vpop.f32.mrb[15].mxu1  ;;  %3510 = vmatmul.mubr.msk.bf16.vlgmr.msra.gmra.mrb[8].mxu0 %vm1223_vm3, %v1443_v14 }
 0x5e5   : > { %3520 = vmatpush3.bf16.xpose.msra.mxu0 %v1544_v17  ;;  %3521 = vmatprep.mubr.msk.bf16.mxu0 %vm4341_vm1, %v4340_v2 }
 0x5e6   : > { %3531 = vmatprep.subr.bf16.mxu0 %v4340_v2 }
 0x5ec   : > { %3522 = vmatmul.mubr.msk.bf16.vlgmr.msra.gmra.mrb[12].mxu0 %vm1223_vm3, %v1537_v19 }
 0x5ed   : > { %3533 = vmatprep.mubr.msk.bf16.mxu0 %vm4341_vm1, %v4340_v2  ;;  %3532 = vmatpush3.bf16.msra.mxu0 %v1652_v50 }
 0x5ee   : > { %3543 = vmatprep.subr.bf16.mxu0 %v4340_v2 }
 0x6af   : > { %v1530_v20 = vpop.f32.mrb[16].mxu1 }
 0x6b0   : > { %v3517_v21 = vpop.f32.mrb[17].mxu1 }
 0x6b1   : > { %v1533_v22 = vpop.f32.mrb[18].mxu1 }
 0x6b2   : > { %v3518_v23 = vpop.f32.mrb[19].mxu1 }
 0x6b7   : > { %v1484_v24 = vpop.f32.mrb[8].mxu0 }
 0x6b8   : > { %v5136_v25 = vadd.f32 %v1530_v20, %v1484_v24  ;;  %v3511_v26 = vpop.f32.mrb[9].mxu0  ;;  %v3351_v24 = vld [vmem:[%s5603_s11] ss:$0 sm:$0xff] }
 0x6b9   : > { %v1487_v27 = vpop.f32.mrb[10].mxu0 }
 0x6ba   : > { %v3512_v28 = vpop.f32.mrb[11].mxu0 }
 0x6bf   : > { %v1580_v29 = vpop.f32.mrb[12].mxu0 }
 0x6c0   : > { %v1586_v30 = vmul.f32 0.35355338, %v1580_v29  ;;  %v3523_v31 = vpop.f32.mrb[13].mxu0 }
 0x6c1   : > { %v1583_v32 = vpop.f32.mrb[14].mxu0 }
 0x6c2   : > { %v3524_v33 = vpop.f32.mrb[15].mxu0  ;;  %v1587_v34 = vsel %vm1223_vm3, %v1586_v30, -inf }
 0x6c3   : > { %1588 = vmax.xlane.f32.xlu1 %v1587_v34  ;;  %v3832_v33 = vld [vmem:[%s5604_s18] sm:$0xff]  }
 0x6c4   : > { %v5186_v34 = vld [vmem:[%s5605_s2 + $0x8] sm:$0xff]  }
 0x6d4   : > { %1697 = vrot.lane.b32.xlu1 %v5069_v13, %s4348_s9 }
 0x6d8   : > { %1695 = vrot.lane.b32.xlu1 %v5069_v13, %s4349_s5 }
 0x750   : > { %v1589_v35 = vpop.xlane.xlu1 %1588 }
 0x751   : > { %v1590_v36 = vsub.f32 %v1586_v30, %v1589_v35 }
 0x753   : > { %v1591_v37 = vmul.f32 1.442695, %v1590_v36 }
 0x754   : > { %v1698_v44 = vpop.permute.xlu1 %1697 }
 0x755   : > { %3848 = vpow2.f32 %v1591_v37  ;;  %v1703_v46 = vsel %vm1223_vm3, %v1698_v44, 0  ;;  %v1089_v44 = vld [vmem:[%s5017_s20 + $0x8] sm:$0xff] }
 0x758   : > { %v1696_v47 = vpop.permute.xlu1 %1695 }
 0x75f   : > { %v3849_v38 = vpop.eup %3848 }
 0x760   : > { %v1593_v39 = vsel %vm1223_vm3, %v3849_v38, 0.0 }
 0x761   : > { %1594 = vadd.xlane.f32.xlu0 %v1593_v39  ;;  %v5196_v39 = vld [vmem:[%s5606_s30] ss:$0 sm:$0xff] }
 0x777   : > { %1599 = vrot.lane.b32.xlu0 %v5102_v48, %s4347_s8 }
 0x7ee   : > { %v1595_v40 = vpop.xlane.xlu0 %1594 }
 0x7ef   : > { %3850 = vrcp.f32 %v1595_v40 }
 0x7f2   : > { %v1600_v41 = vpop.permute.xlu0 %1599 }
 0x7f3   : > { %v1605_v42 = vsel %vm1286_vm4, %v1600_v41, 0  ;;  %v5201_v41 = vld [vmem:[%s5012_s23] sm:$0xff] }
 0x7f4   : > { %3526 = vmatpush3.bf16.msra.mxu1 %v1605_v42 }
 0x7f5   : > { %3537 = vmatprep.subr.bf16.mxu1 %v4340_v2 }
 0x7f9   : > { %v3851_v13 = vpop.eup %3850 }
 0x7fa   : > { %v1597_v43 = vmul.f32 %v3851_v13, %v3849_v38  ;;  %v5204_v13 = vld [vmem:[%s5012_s23 + $0x8] sm:$0xff] }
 0x7fb   : > { %v1888_v50 = vadd.f32 %v1089_v44, %v5204_v13 }
 0x7fc   : > { %v1598_v45 = vpack.c.bf16 %v1597_v43, %v1597_v43  ;;  %v1088_v43 = vld [vmem:[%s5017_s20] sm:$0xff]  ;;  %s5608_s20 = scalar_lea.vmem [#allocation17], %s4980_s15  ;;  %s5610_s15 = scalar_lea.vmem [#allocation18], %s4967_s7 }
 0x7fd   : > { %v1887_v49 = vadd.f32 %v1088_v43, %v5201_v41  ;;  %s5609_s23 = smov %s5608_s20 }
 0x7fe   : > { %3528 = vmatmul.mubr.msk.bf16.vlgmr.msra.gmra.mrb[20].mxu1 %vm1223_vm3, %v1598_v45  ;;  %v1876_v45 = vlaneseq }
 0x7ff   : > { %3538 = vmatpush3.bf16.xpose.msra.mxu1 %v1703_v46  ;;  %3539 = vmatprep.mubr.msk.bf16.mxu1 %vm4341_vm1, %v4340_v2 }
 0x800   : > { %3549 = vmatprep.subr.bf16.mxu1 %v4340_v2 }
 0x806   : > { %3540 = vmatmul.mubr.msk.bf16.vlgmr.msra.gmra.mrb[24].mxu1 %vm1223_vm3, %v1696_v47 }
 0x807   : > { %3551 = vmatprep.mubr.msk.bf16.mxu1 %vm4341_vm1, %v4340_v2  ;;  %3550 = vmatpush3.bf16.msra.mxu1 %v1811_v9 }
 0x808   : > { %3563 = vmatprep.subr.bf16.mxu1 %v4340_v2 }
 0x8d1   : > { %v1641_v51 = vpop.f32.mrb[20].mxu1 }
 0x8d2   : > { %v1647_v52 = vpack.c.bf16 %v1641_v51, %v1641_v51  ;;  %v3529_v53 = vpop.f32.mrb[21].mxu1  ;;  %v5210_v51 = vshrl.u32 %v1876_v45, 7 }
 0x8d3   : > { %v1644_v54 = vpop.f32.mrb[22].mxu1  ;;  %v1961_v53 = vpack.c.bf16 %v1888_v50, %v1887_v49 }
 0x8d4   : > { %v3530_v55 = vpop.f32.mrb[23].mxu1  ;;  %3534 = vmatmul.mubr.msk.bf16.vlgmr.msra.gmra.mrb[16].mxu0 %vm1223_vm3, %v1647_v52  ;;  %v1878_v54 = vsub.s32 0, %v5210_v51 }
 0x8d5   : > { %3545 = vmatprep.mubr.msk.bf16.mxu0 %vm4341_vm1, %v4340_v2  ;;  %v5216_v55 = vld [vmem:[%s5042_s6] sm:$0x3f] }
 0x8d9   : > { %v1739_v56 = vpop.f32.mrb[24].mxu1 }
 0x8da   : > { %v1745_v57 = vmul.f32 0.35355338, %v1739_v56  ;;  %v3541_v58 = vpop.f32.mrb[25].mxu1  ;;  %v1883_v56 = vsub.s32 1, %v5210_v51 }
 0x8db   : > { %v1742_v59 = vpop.f32.mrb[26].mxu1 }
 0x8dc   : > { %v3542_v60 = vpop.f32.mrb[27].mxu1  ;;  %v1746_v61 = vsel %vm1223_vm3, %v1745_v57, -inf }
 0x8dd   : > { %1747 = vmax.xlane.f32.xlu0 %v1746_v61  ;;  %v1884_v60 = vrot.slane %v5216_v55, %v1883_v56 }
 0x8f3   : > { %1758 = vrot.lane.b32.xlu0 %v5102_v48, %s4349_s5 }
 0x8f7   : > { %1964 = vrot.lane.b32.xlu0 %v5186_v34, %s4343_s22 }
 0x8fb   : > { %1968 = vrot.lane.b32.xlu0 %v5196_v39, %s4343_s22 }
 0x96a   : > { %v1748_v62 = vpop.xlane.xlu0 %1747 }
 0x96b   : > { %v1749_v63 = vsub.f32 %v1745_v57, %v1748_v62  ;;  %v1879_v57 = vrot.slane %v5216_v55, %v1878_v54 }
 0x96d   : > { %v1750_v0 = vmul.f32 1.442695, %v1749_v63 }
 0x96e   : > { %v1759_v1 = vpop.permute.xlu0 %1758 }
 0x96f   : > { %3852 = vpow2.f32 %v1750_v0  ;;  %v1764_v3 = vsel %vm1286_vm4, %v1759_v1, 0 }
 0x970   : > { %3544 = vmatpush3.bf16.msra.mxu0 %v1764_v3 }
 0x971   : > { %3555 = vmatprep.subr.bf16.mxu0 %v4340_v2 }
 0x972   : > { %v1965_v52 = vpop.permute.xlu0 %1964 }
 0x976   : > { %v1969_v1 = vpop.permute.xlu0 %1968 }
 0x979   : > { %v3853_v6 = vpop.eup %3852 }
 0x97a   : > { %v1752_v7 = vsel %vm1223_vm3, %v3853_v6, 0.0 }
 0x97b   : > { %1753 = vadd.xlane.f32.xlu1 %v1752_v7 }
 0x9a7   : > { %v1688_v48 = vpop.f32.mrb[16].mxu0 }
 0x9a8   : > { %v1694_v10 = vadd.f32 %v1688_v48, %v5136_v25  ;;  %v3535_v11 = vpop.f32.mrb[17].mxu0 }
 0x9a9   : > { %v1691_v12 = vpop.f32.mrb[18].mxu0 }
 0x9aa   : > { %v3536_v14 = vpop.f32.mrb[19].mxu0 }
 0xa08   : > { %v1754_v15 = vpop.xlane.xlu1 %1753 }
 0xa09   : > { %3854 = vrcp.f32 %v1754_v15 }
 0xa13   : > { %v3855_v16 = vpop.eup %3854 }
 0xa14   : > { %v1756_v17 = vmul.f32 %v3855_v16, %v3853_v6 }
 0xa16   : > { %v1757_v18 = vpack.c.bf16 %v1756_v17, %v1756_v17 }
 0xa18   : > { %3546 = vmatmul.mubr.msk.bf16.vlgmr.msra.gmra.mrb[20].mxu0 %vm1223_vm3, %v1757_v18 }
 0xa19   : > { %3559 = vmatprep.mubr.msk.bf16.mxu0 %vm4341_vm1, %v4340_v2  ;;  %3556 = vmatpush3.bf16.msra.mxu0 %v3832_v33 }
 0xa1a   : > { %3557 = vmatprep.subr.bf16.mxu0 %v4340_v2 }
 0xa1d   : > { %3558 = vmatpush3.bf16.msra.mxu0 %v5186_v34 }
 0xa1e   : > { %3571 = vmatprep.subr.bf16.mxu0 %v4340_v2 }
 0xaeb   : > { %v1800_v19 = vpop.f32.mrb[20].mxu0 }
 0xaec   : > { %v1806_v20 = vpack.c.bf16 %v1800_v19, %v1800_v19  ;;  %v3547_v21 = vpop.f32.mrb[21].mxu0 }
 0xaed   : > { %v1803_v22 = vpop.f32.mrb[22].mxu0 }
 0xaee   : > { %v3548_v23 = vpop.f32.mrb[23].mxu0  ;;  %3552 = vmatmul.mubr.msk.bf16.vlgmr.msra.gmra.mrb[28].mxu1 %vm1223_vm3, %v1806_v20 }
 0xaef   : > { %3567 = vmatprep.mubr.msk.bf16.mxu1 %vm4341_vm1, %v4340_v2  ;;  %v2015_v23 = vpack.c.bf16 %v5204_v13, %v5201_v41 }
 0xbc1   : > { %v1847_v25 = vpop.f32.mrb[28].mxu1 }
 0xbc2   : > { %v1853_v26 = vadd.f32 %v1847_v25, %v1694_v10  ;;  %v3553_v27 = vpop.f32.mrb[29].mxu1 }
 0xbc3   : > { %v1850_v28 = vpop.f32.mrb[30].mxu1 }
 0xbc4   : > { %v1860_v29 = vadd.f32 %v3351_v24, %v1853_v26  ;;  %v3554_v30 = vpop.f32.mrb[31].mxu1 }
 0xbc6   : > { %v1861_v31 = vadd.f32 %v1860_v29, %v5052_v4 }
 0xbc8   : > { %v1862_v32 = vsel %vm1122_vm2, %v1861_v31, 0.0 }
 0xbc9   : > { %1863 = vadd.xlane.f32.xlu1 %v1862_v32 }
 0xc56   : > { %v1864_v4 = vpop.xlane.xlu1 %1863 }
 0xc57   : > { %v1866_v35 = vmul.f32 0.03125, %v1864_v4 }
 0xc59   : > { %v1867_v36 = vsub.f32 %v1861_v31, %v1866_v35 }
 0xc5b   : > { %v1868_v37 = vmul.f32 %v1867_v36, %v1867_v36 }
 0xc5d   : > { %v1869_v38 = vsel %vm1122_vm2, %v1868_v37, 0.0 }
 0xc5e   : > { %1870 = vadd.xlane.f32.xlu1 %v1869_v38 }
 0xc6f   : > { %1962 = vrot.lane.b32.xlu1 %v3832_v33, %s4343_s22 }
 0xceb   : > { %v1871_v40 = vpop.xlane.xlu1 %1870 }
 0xcec   : > { %v1872_v42 = vmul.f32 0.03125, %v1871_v40 }
 0xcee   : > { %v1873_v46 = vadd.f32 1e-05, %v1872_v42 }
 0xcef   : > { %v1963_v47 = vpop.permute.xlu1 %1962 }
 0xcf0   : > { %3856 = vrsqrt.f32 %v1873_v46  ;;  %3564 = vmatpush3.bf16.msra.mxu1 %v1963_v47 }
 0xcf1   : > { %3565 = vmatprep.subr.bf16.mxu1 %v4340_v2 }
 0xcf4   : > { %3566 = vmatpush3.bf16.msra.mxu1 %v1965_v52 }
 0xcf5   : > { %3579 = vmatprep.subr.bf16.mxu1 %v4340_v2 }
 0xcf7   : > { %3568 = vmatmul.mubr.msk.bf16.vlgmr.msra.gmra.mrb[32].mxu1 %vm1122_vm2, %v1961_v53 }
 0xcf8   : > { %3581 = vmatprep.mubr.msk.bf16.mxu1 %vm4341_vm1, %v4340_v2 }
 0xcfa   : > { %v3857_v58 = vpop.eup %3856 }
 0xcfb   : > { %v1875_v59 = vmul.f32 %v3857_v58, %v1867_v36 }
 0xcfd   : > { %v1880_v61 = vmul.f32 %v1879_v57, %v1875_v59  ;;  %v1895_v59 = vld [vmem:[%s4989_s0 + $0x4] sm:$0xf] }
 0xcff   : > { %v5224_v62 = vadd.f32 %v1884_v60, %v1880_v61  ;;  %v2293_v60 = vsel %vm1286_vm4, %v1895_v59, 0 }
 0xd01   : > { %v1886_v63 = vadd.f32 %v5224_v62, %v5056_v5 }
 0xd03   : > { %v1899_v0 = vpack.c.bf16 %v1886_v63, %v1886_v63 }
 0xd05   : > { %3560 = vmatmul.mubr.msk.bf16.vlgmr.msra.gmra.mrb[24].mxu0 %vm1122_vm2, %v1899_v0 }
 0xd06   : > { %3575 = vmatprep.mubr.msk.bf16.mxu0 %vm4341_vm1, %v4340_v2 }
 0xdca   : > { %v2008_v3 = vpop.f32.mrb[32].mxu1 }
 0xdcb   : > { %v3569_v6 = vpop.f32.mrb[33].mxu1  ;;  %v2009_v7 = vadd.f32 %v2008_v3, %v1969_v1 }
 0xdcc   : > { %v2011_v8 = vpop.f32.mrb[34].mxu1 }
 0xdcd   : > { %v2012_v9 = vadd.f32 %v2011_v8, %v1969_v1  ;;  %v3570_v48 = vpop.f32.mrb[35].mxu1  ;;  %v1894_v1 = vld [vmem:[%s4989_s0] sm:$0xf] }
 0xdcf   : > { %v5231_v10 = vpack.c.bf16 %v2012_v9, %v2009_v7  ;;  %v2339_v7 = vsel %vm1286_vm4, %v1894_v1, 0 }
 0xdd1   : > { %2180 = vrot.lane.b32.xlu0 %v5231_v10, %s4342_s1  ;;  %v2076_v5 = vsel %vm1223_vm3, %v5231_v10, 0 }
 0xdd2   : > { %3580 = vmatpush3.bf16.xpose.msra.mxu1 %v2076_v5 }
 0xdd3   : > { %3591 = vmatprep.subr.bf16.mxu1 %v4340_v2 }
 0xdd5   : > { %2016 = vrot.lane.b32.xlu0 %v3832_v33, %s4345_s25 }
 0xdd8   : > { %v1955_v11 = vpop.f32.mrb[24].mxu0 }
 0xdd9   : > { %v1956_v12 = vadd.f32 %v5196_v39, %v1955_v11  ;;  %v3561_v14 = vpop.f32.mrb[25].mxu0 }
 0xdda   : > { %v1958_v15 = vpop.f32.mrb[26].mxu0 }
 0xddb   : > { %v5240_v16 = vpack.c.bf16 %v1956_v12, %v1956_v12  ;;  %v3562_v17 = vpop.f32.mrb[27].mxu0 }
 0xddd   : > { %2177 = vrot.lane.b32.xlu1 %v5240_v16, %s4342_s1  ;;  %3582 = vmatmul.mubr.msk.bf16.vlgmr.msra.gmra.mrb[36].mxu1 %vm1223_vm3, %v5240_v16 }
 0xdde   : > { %3593 = vmatprep.mubr.msk.bf16.mxu1 %vm4341_vm1, %v4340_v2 }
 0xde1   : > { %2018 = vrot.lane.b32.xlu1 %v5186_v34, %s4345_s25 }
 0xe43   : > { %v2181_v18 = vpop.permute.xlu0 %2180 }
 0xe44   : > { %v2186_v19 = vsel %vm1223_vm3, %v2181_v18, 0 }
 0xe45   : > { %3592 = vmatpush3.bf16.xpose.msra.mxu1 %v2186_v19 }
 0xe46   : > { %3603 = vmatprep.subr.bf16.mxu1 %v4340_v2 }
 0xe47   : > { %v2017_v21 = vpop.permute.xlu0 %2016 }
 0xe48   : > { %3572 = vmatpush3.bf16.msra.mxu0 %v2017_v21 }
 0xe49   : > { %3573 = vmatprep.subr.bf16.mxu0 %v4340_v2 }
 0xe4f   : > { %v2178_v20 = vpop.permute.xlu1 %2177 }
 0xe50   : > { %3594 = vmatmul.mubr.msk.bf16.vlgmr.msra.gmra.mrb[40].mxu1 %vm1223_vm3, %v2178_v20 }
 0xe51   : > { %3605 = vmatprep.mubr.msk.bf16.mxu1 %vm4341_vm1, %v4340_v2  ;;  %3604 = vmatpush3.bf16.msra.mxu1 %v2293_v60 }
 0xe52   : > { %3615 = vmatprep.subr.bf16.mxu1 %v4340_v2 }
 0xe53   : > { %v2019_v22 = vpop.permute.xlu1 %2018 }
 0xe54   : > { %3574 = vmatpush3.bf16.msra.mxu0 %v2019_v22 }
 0xe55   : > { %3585 = vmatprep.subr.bf16.mxu0 %v4340_v2 }
 0xe57   : > { %3576 = vmatmul.mubr.msk.bf16.vlgmr.msra.gmra.mrb[28].mxu0 %vm1122_vm2, %v2015_v23 }
 0xe58   : > { %3587 = vmatprep.mubr.msk.bf16.mxu0 %vm4341_vm1, %v4340_v2 }
 0xeb0   : > { %v2112_v24 = vpop.f32.mrb[36].mxu1 }
 0xeb1   : > { %v2118_v25 = vmul.f32 0.35355338, %v2112_v24  ;;  %v3583_v26 = vpop.f32.mrb[37].mxu1 }
 0xeb2   : > { %v2115_v27 = vpop.f32.mrb[38].mxu1 }
 0xeb3   : > { %v3584_v28 = vpop.f32.mrb[39].mxu1  ;;  %v2120_v29 = vsel %vm2119_vm5, %v2118_v25, -inf }
 0xeb4   : > { %2121 = vmax.xlane.f32.xlu0 %v2120_v29 }
 0xeca   : > { %2022 = vrot.lane.b32.xlu0 %v5196_v39, %s4345_s25 }
 0xece   : > { %2383 = vrot.lane.b32.xlu0 %v5231_v10, %s4347_s8 }
 0xed2   : > { %2381 = vrot.lane.b32.xlu0 %v5240_v16, %s4347_s8 }
 0xf23   : > { %v2222_v30 = vpop.f32.mrb[40].mxu1 }
 0xf24   : > { %v2228_v31 = vmul.f32 0.35355338, %v2222_v30  ;;  %v3595_v32 = vpop.f32.mrb[41].mxu1 }
 0xf25   : > { %v2225_v33 = vpop.f32.mrb[42].mxu1 }
 0xf26   : > { %v3596_v34 = vpop.f32.mrb[43].mxu1  ;;  %v2229_v4 = vsel %vm2119_vm5, %v2228_v31, -inf }
 0xf27   : > { %2230 = vmax.xlane.f32.xlu1 %v2229_v4 }
 0xf2a   : > { %v2062_v38 = vpop.f32.mrb[28].mxu0 }
 0xf2b   : > { %v3577_v39 = vpop.f32.mrb[29].mxu0 }
 0xf2c   : > { %v2065_v43 = vpop.f32.mrb[30].mxu0 }
 0xf2d   : > { %v3578_v44 = vpop.f32.mrb[31].mxu0 }
 0xf41   : > { %v2122_v35 = vpop.xlane.xlu0 %2121 }
 0xf42   : > { %v2123_v36 = vsub.f32 %v2118_v25, %v2122_v35 }
 0xf44   : > { %v2124_v37 = vmul.f32 1.442695, %v2123_v36 }
 0xf45   : > { %v2023_v42 = vpop.permute.xlu0 %2022 }
 0xf46   : > { %3858 = vpow2.f32 %v2124_v37  ;;  %v2063_v13 = vadd.f32 %v2062_v38, %v2023_v42  ;;  %v2066_v45 = vadd.f32 %v2065_v43, %v2023_v42 }
 0xf48   : > { %v5271_v46 = vpack.c.bf16 %v2066_v45, %v2063_v13 }
 0xf49   : > { %v2384_v12 = vpop.permute.xlu0 %2383 }
 0xf4a   : > { %3586 = vmatpush3.bf16.msra.mxu0 %v5271_v46  ;;  %v2389_v19 = vsel %vm1223_vm3, %v2384_v12, 0 }
 0xf4b   : > { %3597 = vmatprep.subr.bf16.mxu0 %v4340_v2 }
 0xf4d   : > { %v2382_v21 = vpop.permute.xlu0 %2381 }
 0xf50   : > { %v3859_v40 = vpop.eup %3858 }
 0xf51   : > { %v2126_v41 = vsel %vm2119_vm5, %v3859_v40, 0.0 }
 0xf52   : > { %2127 = vadd.xlane.f32.xlu1 %v2126_v41 }
 0xfb4   : > { %v2231_v47 = vpop.xlane.xlu1 %2230 }
 0xfb5   : > { %v2232_v49 = vsub.f32 %v2228_v31, %v2231_v47 }
 0xfb7   : > { %v2233_v50 = vmul.f32 1.442695, %v2232_v49 }
 0xfb9   : > { %3860 = vpow2.f32 %v2233_v50 }
 0xfc3   : > { %v3861_v52 = vpop.eup %3860 }
 0xfc4   : > { %v2235_v53 = vsel %vm2119_vm5, %v3861_v52, 0.0 }
 0xfc5   : > { %2236 = vadd.xlane.f32.xlu1 %v2235_v53 }
 0xfd6   : > { %2242 = vrot.lane.b32.xlu1 %v5271_v46, %s4342_s1 }
 0xfdf   : > { %v2128_v54 = vpop.xlane.xlu1 %2127 }
 0xfe0   : > { %3862 = vrcp.f32 %v2128_v54 }
 0xfea   : > { %v3863_v56 = vpop.eup %3862 }
 0xfeb   : > { %v2130_v57 = vmul.f32 %v3863_v56, %v3859_v40 }
 0xfed   : > { %v2131_v58 = vpack.c.bf16 %v2130_v57, %v2130_v57 }
 0xfef   : > { %3588 = vmatmul.mubr.msk.bf16.vlgmr.msra.gmra.mrb[32].mxu0 %vm2119_vm5, %v2131_v58 }
 0xff0   : > { %3599 = vmatprep.mubr.msk.bf16.mxu0 %vm4341_vm1, %v4340_v2 }
0x1052   : > { %v2237_v61 = vpop.xlane.xlu1 %2236 }
0x1053   : > { %3864 = vrcp.f32 %v2237_v61 }
0x1056   : > { %v2243_v63 = vpop.permute.xlu1 %2242 }
0x1057   : > { %3598 = vmatpush3.bf16.msra.mxu0 %v2243_v63 }
0x1058   : > { %3609 = vmatprep.subr.bf16.mxu0 %v4340_v2 }
0x105d   : > { %v3865_v0 = vpop.eup %3864 }
0x105e   : > { %v2239_v3 = vmul.f32 %v3865_v0, %v3861_v52 }
0x1060   : > { %v2240_v6 = vpack.c.bf16 %v2239_v3, %v2239_v3 }
0x1062   : > { %3600 = vmatmul.mubr.msk.bf16.vlgmr.msra.gmra.mrb[36].mxu0 %vm2119_vm5, %v2240_v6 }
0x1063   : > { %3610 = vmatpush3.bf16.msra.mxu0 %v2339_v7  ;;  %3611 = vmatprep.mubr.msk.bf16.mxu0 %vm4341_vm1, %v4340_v2 }
0x1064   : > { %3621 = vmatprep.subr.bf16.mxu0 %v4340_v2 }
0x10c2   : > { %v2169_v8 = vpop.f32.mrb[32].mxu0 }
0x10c3   : > { %v2175_v9 = vpack.c.bf16 %v2169_v8, %v2169_v8  ;;  %v3589_v48 = vpop.f32.mrb[33].mxu0  ;;  %v1897_v8 = vld [vmem:[%s4989_s0 + $0xc] sm:$0xf] }
0x10c4   : > { %v2172_v5 = vpop.f32.mrb[34].mxu0 }
0x10c5   : > { %v3590_v11 = vpop.f32.mrb[35].mxu0  ;;  %3612 = vmatmul.mubr.msk.bf16.vlgmr.msra.gmra.mrb[40].mxu0 %vm1223_vm3, %v2175_v9  ;;  %v2652_v9 = vsel %vm1286_vm4, %v1897_v8, 0 }
0x10c6   : > { %3623 = vmatprep.mubr.msk.bf16.mxu0 %vm4341_vm1, %v4340_v2 }
0x1135   : > { %v2282_v14 = vpop.f32.mrb[36].mxu0 }
0x1136   : > { %v2288_v15 = vpack.c.bf16 %v2282_v14, %v2282_v14  ;;  %v3601_v17 = vpop.f32.mrb[37].mxu0 }
0x1137   : > { %v2285_v18 = vpop.f32.mrb[38].mxu0 }
0x1138   : > { %v3602_v20 = vpop.f32.mrb[39].mxu0  ;;  %3606 = vmatmul.mubr.msk.bf16.vlgmr.msra.gmra.mrb[44].mxu1 %vm1223_vm3, %v2288_v15 }
0x1139   : > { %3616 = vmatpush3.bf16.xpose.msra.mxu1 %v2389_v19  ;;  %3617 = vmatprep.mubr.msk.bf16.mxu1 %vm4341_vm1, %v4340_v2 }
0x113a   : > { %3627 = vmatprep.subr.bf16.mxu1 %v4340_v2 }
0x1140   : > { %3618 = vmatmul.mubr.msk.bf16.vlgmr.msra.gmra.mrb[48].mxu1 %vm1223_vm3, %v2382_v21 }
0x1141   : > { %3629 = vmatprep.mubr.msk.bf16.mxu1 %vm4341_vm1, %v4340_v2 }
0x1198   : > { %v2375_v22 = vpop.f32.mrb[40].mxu0 }
0x1199   : > { %v3613_v23 = vpop.f32.mrb[41].mxu0 }
0x119a   : > { %v2378_v24 = vpop.f32.mrb[42].mxu0 }
0x119b   : > { %v3614_v25 = vpop.f32.mrb[43].mxu0 }
0x120b   : > { %v2329_v26 = vpop.f32.mrb[44].mxu1 }
0x120c   : > { %v5302_v27 = vadd.f32 %v2375_v22, %v2329_v26  ;;  %v3607_v28 = vpop.f32.mrb[45].mxu1 }
0x120d   : > { %v2332_v29 = vpop.f32.mrb[46].mxu1 }
0x120e   : > { %v3608_v30 = vpop.f32.mrb[47].mxu1 }
0x1213   : > { %v2425_v31 = vpop.f32.mrb[48].mxu1 }
0x1214   : > { %v2431_v32 = vmul.f32 0.35355338, %v2425_v31  ;;  %v3619_v33 = vpop.f32.mrb[49].mxu1 }
0x1215   : > { %v2428_v34 = vpop.f32.mrb[50].mxu1 }
0x1216   : > { %v3620_v4 = vpop.f32.mrb[51].mxu1  ;;  %v2432_v35 = vsel %vm2119_vm5, %v2431_v32, -inf }
0x1217   : > { %2433 = vmax.xlane.f32.xlu0 %v2432_v35 }
0x122d   : > { %2444 = vrot.lane.b32.xlu0 %v5271_v46, %s4347_s8 }
0x1231   : > { %2538 = vrot.lane.b32.xlu0 %v5240_v16, %s4349_s5 }
0x12a4   : > { %v2434_v36 = vpop.xlane.xlu0 %2433 }
0x12a5   : > { %v2435_v37 = vsub.f32 %v2431_v32, %v2434_v36 }
0x12a7   : > { %v2436_v38 = vmul.f32 1.442695, %v2435_v37 }
0x12a8   : > { %v2445_v39 = vpop.permute.xlu0 %2444 }
0x12a9   : > { %3866 = vpow2.f32 %v2436_v38  ;;  %3622 = vmatpush3.bf16.msra.mxu0 %v2445_v39  ;;  %v3834_v38 = vld [vmem:[%s5608_s20] sm:$0xff]   ;;  %v3835_v39 = vld [vmem:[%s5609_s23 + $0x8] sm:$0xff]  }
0x12aa   : > { %3633 = vmatprep.subr.bf16.mxu0 %v4340_v2 }
0x12ac   : > { %v2539_v47 = vpop.permute.xlu0 %2538 }
0x12b3   : > { %v3867_v40 = vpop.eup %3866 }
0x12b4   : > { %v2438_v41 = vsel %vm2119_vm5, %v3867_v40, 0.0 }
0x12b5   : > { %2439 = vadd.xlane.f32.xlu1 %v2438_v41 }
0x12c6   : > { %2540 = vrot.lane.b32.xlu1 %v5231_v10, %s4349_s5  ;;  %v1896_v10 = vld [vmem:[%s4989_s0 + $0x8] sm:$0xf]  ;;  %s5607_s0 = scalar_lea.vmem [#allocation15], %s4967_s7  ;;  %s5612_s7 = sld [smem:[#allocation34_spill]] }
0x12c7   : > { %v2495_v49 = vsel %vm1286_vm4, %v1896_v10, 0  ;;  %v3370_v25 = vld [vmem:[%s5607_s0] ss:$0 sm:$0xff] }
0x12c8   : > { %3628 = vmatpush3.bf16.msra.mxu1 %v2495_v49 }
0x12c9   : > { %3639 = vmatprep.subr.bf16.mxu1 %v4340_v2 }
0x12cc   : > { %p3381_p4 = scmp.ne.s32.totalorder %s5612_s7, 1 }
0x12cd   : > { %s5614_s10 = sld [smem:[#allocation65_spill]] (!%p3381_p4) }
0x1342   : > { %v2440_v42 = vpop.xlane.xlu1 %2439 }
0x1343   : > { %3868 = vrcp.f32 %v2440_v42 }
0x1346   : > { %v2541_v43 = vpop.permute.xlu1 %2540 }
0x1347   : > { %v2546_v45 = vsel %vm1223_vm3, %v2541_v43, 0  ;;  %v2723_v43 = vsub.s32 3, %v5210_v51 }
0x1349   : > { %v2724_v10 = vrot.slane %v5216_v55, %v2723_v43 }
0x134d   : > { %v3869_v13 = vpop.eup %3868 }
0x134e   : > { %v2442_v16 = vmul.f32 %v3869_v13, %v3867_v40  ;;  %v3837_v40 = vld [vmem:[%s5032_s17 + $0x8] sm:$0xff]  }
0x1350   : > { %v2443_v44 = vpack.c.bf16 %v2442_v16, %v2442_v16  ;;  %v2718_v16 = vsub.s32 2, %v5210_v51 }
0x1352   : > { %3624 = vmatmul.mubr.msk.bf16.vlgmr.msra.gmra.mrb[44].mxu0 %vm2119_vm5, %v2443_v44  ;;  %v2719_v44 = vrot.slane %v5216_v55, %v2718_v16 }
0x1353   : > { %3634 = vmatpush3.bf16.xpose.msra.mxu0 %v2546_v45  ;;  %3635 = vmatprep.mubr.msk.bf16.mxu0 %vm4341_vm1, %v4340_v2 }
0x1354   : > { %3645 = vmatprep.subr.bf16.mxu0 %v4340_v2 }
0x135a   : > { %3636 = vmatmul.mubr.msk.bf16.vlgmr.msra.gmra.mrb[48].mxu0 %vm1223_vm3, %v2539_v47 }
0x135b   : > { %3647 = vmatprep.mubr.msk.bf16.mxu0 %vm4341_vm1, %v4340_v2  ;;  %3646 = vmatpush3.bf16.msra.mxu0 %v2652_v9 }
0x135c   : > { %3659 = vmatprep.subr.bf16.mxu0 %v4340_v2 }
0x1425   : > { %v2484_v50 = vpop.f32.mrb[44].mxu0 }
0x1426   : > { %v2490_v52 = vpack.c.bf16 %v2484_v50, %v2484_v50  ;;  %v3625_v53 = vpop.f32.mrb[45].mxu0 }
0x1427   : > { %v2487_v54 = vpop.f32.mrb[46].mxu0  ;;  %v3838_v53 = vld [vmem:[%s5032_s17 + $0x10] sm:$0xff]  }
0x1428   : > { %v3626_v56 = vpop.f32.mrb[47].mxu0  ;;  %3630 = vmatmul.mubr.msk.bf16.vlgmr.msra.gmra.mrb[52].mxu1 %vm1223_vm3, %v2490_v52  ;;  %v3839_v54 = vld [vmem:[%s5032_s17 + $0x18] sm:$0xff]  }
0x1429   : > { %3641 = vmatprep.mubr.msk.bf16.mxu1 %vm4341_vm1, %v4340_v2  ;;  %v3371_v56 = vld [vmem:[%s5610_s15] ss:$0 sm:$0xff] }
0x142d   : > { %v2582_v57 = vpop.f32.mrb[48].mxu0 }
0x142e   : > { %v2588_v58 = vmul.f32 0.35355338, %v2582_v57  ;;  %v3637_v59 = vpop.f32.mrb[49].mxu0 }
0x142f   : > { %v2585_v60 = vpop.f32.mrb[50].mxu0 }
0x1430   : > { %v3638_v61 = vpop.f32.mrb[51].mxu0  ;;  %v2589_v63 = vsel %vm2119_vm5, %v2588_v58, -inf }
0x1431   : > { %2590 = vmax.xlane.f32.xlu1 %v2589_v63 }
0x14be   : > { %v2591_v0 = vpop.xlane.xlu1 %2590 }
0x14bf   : > { %v2592_v1 = vsub.f32 %v2588_v58, %v2591_v0 }
0x14c1   : > { %v2593_v3 = vmul.f32 1.442695, %v2592_v1  ;;  %v3375_v1 = vld [vmem:[%s1071_s3] ss:$0 sm:$0xff]  ;;  %s5613_s3 = sld [smem:[#allocation64_spill]] (!%p3381_p4) }
0x14c3   : > { %3870 = vpow2.f32 %v2593_v3 }
0x14cd   : > { %v3871_v6 = vpop.eup %3870 }
0x14ce   : > { %v2595_v7 = vsel %vm2119_vm5, %v3871_v6, 0.0 }
0x14cf   : > { %2596 = vadd.xlane.f32.xlu0 %v2595_v7 }
0x14e5   : > { %2601 = vrot.lane.b32.xlu0 %v5271_v46, %s4349_s5 }
0x14fb   : > { %v2531_v48 = vpop.f32.mrb[52].mxu1 }
0x14fc   : > { %v2537_v5 = vadd.f32 %v2531_v48, %v5302_v27  ;;  %v3631_v11 = vpop.f32.mrb[53].mxu1 }
0x14fd   : > { %v2534_v12 = vpop.f32.mrb[54].mxu1 }
0x14fe   : > { %v3632_v14 = vpop.f32.mrb[55].mxu1 }
0x155c   : > { %v2597_v15 = vpop.xlane.xlu0 %2596 }
0x155d   : > { %3872 = vrcp.f32 %v2597_v15 }
0x1560   : > { %v2602_v17 = vpop.permute.xlu0 %2601 }
0x1561   : > { %3640 = vmatpush3.bf16.msra.mxu1 %v2602_v17 }
0x1562   : > { %3651 = vmatprep.subr.bf16.mxu1 %v4340_v2 }
0x1567   : > { %v3873_v46 = vpop.eup %3872 }
0x1568   : > { %v2599_v18 = vmul.f32 %v3873_v46, %v3871_v6 }
0x156a   : > { %v2600_v19 = vpack.c.bf16 %v2599_v18, %v2599_v18 }
0x156c   : > { %3642 = vmatmul.mubr.msk.bf16.vlgmr.msra.gmra.mrb[56].mxu1 %vm2119_vm5, %v2600_v19  ;;  %v2894_v19 = vsub.s32 4, %v5210_v51 }
0x156d   : > { %3655 = vmatprep.mubr.msk.bf16.mxu1 %vm4341_vm1, %v4340_v2  ;;  %3652 = vmatpush3.bf16.msra.mxu1 %v3834_v38 }
0x156e   : > { %3653 = vmatprep.subr.bf16.mxu1 %v4340_v2 }
0x1571   : > { %3654 = vmatpush3.bf16.msra.mxu1 %v3835_v39 }
0x163f   : > { %v2641_v20 = vpop.f32.mrb[56].mxu1 }
0x1640   : > { %v2647_v21 = vpack.c.bf16 %v2641_v20, %v2641_v20  ;;  %v3643_v22 = vpop.f32.mrb[57].mxu1  ;;  %v2899_v20 = vsub.s32 5, %v5210_v51 }
0x1641   : > { %v2644_v23 = vpop.f32.mrb[58].mxu1 }
0x1642   : > { %v3644_v24 = vpop.f32.mrb[59].mxu1  ;;  %3648 = vmatmul.mubr.msk.bf16.vlgmr.msra.gmra.mrb[52].mxu0 %vm1223_vm3, %v2647_v21  ;;  %v2895_v21 = vrot.slane %v5216_v55, %v2894_v19  ;;  %v2900_v23 = vrot.slane %v5216_v55, %v2899_v20 }
0x1643   : > { %3667 = vmatprep.mubr.msk.bf16.mxu0 %vm4341_vm1, %v4340_v2 }
0x1715   : > { %v2688_v26 = vpop.f32.mrb[52].mxu0 }
0x1716   : > { %v2694_v27 = vadd.f32 %v2688_v26, %v2537_v5  ;;  %v3649_v28 = vpop.f32.mrb[53].mxu0 }
0x1717   : > { %v2691_v29 = vpop.f32.mrb[54].mxu0 }
0x1718   : > { %v2701_v30 = vadd.f32 %v3370_v25, %v2694_v27  ;;  %v3650_v31 = vpop.f32.mrb[55].mxu0 }
0x171a   : > { %v2702_v32 = vadd.f32 %v2701_v30, %v5224_v62  ;;  %v3836_v62 = vld [vmem:[%s5032_s17] sm:$0xff]  }
0x171b   : > { %3660 = vmatpush3.bf16.msra.mxu0 %v3836_v62 }
0x171c   : > { %v2703_v33 = vsel %vm1122_vm2, %v2702_v32, 0.0  ;;  %3661 = vmatprep.subr.bf16.mxu0 %v4340_v2 }
0x171d   : > { %2704 = vadd.xlane.f32.xlu1 %v2703_v33 }
0x171f   : > { %3662 = vmatpush3.bf16.msra.mxu0 %v3837_v40 }
0x1720   : > { %3663 = vmatprep.subr.bf16.mxu0 %v4340_v2 }
0x1723   : > { %3664 = vmatpush3.bf16.msra.mxu0 %v3838_v53 }
0x1724   : > { %3665 = vmatprep.subr.bf16.mxu0 %v4340_v2 }
0x1727   : > { %3666 = vmatpush3.bf16.msra.mxu0 %v3839_v54 }
0x17aa   : > { %v2705_v34 = vpop.xlane.xlu1 %2704 }
0x17ab   : > { %v2706_v4 = vmul.f32 0.03125, %v2705_v34 }
0x17ad   : > { %v2707_v35 = vsub.f32 %v2702_v32, %v2706_v4  ;;  %v3382_v4 = vld [vmem:[%s5613_s3] ss:$0 sm:$0xff] (!%p3381_p4) }
0x17af   : > { %v2708_v36 = vmul.f32 %v2707_v35, %v2707_v35 }
0x17b1   : > { %v2709_v37 = vsel %vm1122_vm2, %v2708_v36, 0.0  ;;  %v3383_v36 = vld [vmem:[%s5614_s10] ss:$0 sm:$0xff] (!%p3381_p4) }
0x17b2   : > { %2710 = vadd.xlane.f32.xlu1 %v2709_v37 }
0x183f   : > { %v2711_v41 = vpop.xlane.xlu1 %2710 }
0x1840   : > { %v2712_v42 = vmul.f32 0.03125, %v2711_v41 }
0x1842   : > { %v2713_v13 = vadd.f32 1e-05, %v2712_v42 }
0x1844   : > { %3874 = vrsqrt.f32 %v2713_v13 }
0x184e   : > { %v3875_v45 = vpop.eup %3874 }
0x184f   : > { %v2715_v47 = vmul.f32 %v3875_v45, %v2707_v35 }
0x1851   : > { %v2720_v49 = vmul.f32 %v2719_v44, %v2715_v47 }
0x1853   : > { %v2725_v50 = vadd.f32 %v2724_v10, %v2720_v49 }
0x1855   : > { %v2726_v52 = vpack.c.bf16 %v2725_v50, %v2725_v50 }
0x1857   : > { %3656 = vmatmul.mubr.msk.bf16.vlgmr.msra.gmra.mrb[60].mxu1 %vm1122_vm2, %v2726_v52 }
0x192a   : > { %v2787_v57 = vpop.f32.mrb[60].mxu1 }
0x192b   : > { %v2788_v58 = vadd.f32 %v3371_v56, %v2787_v57  ;;  %v3657_v59 = vpop.f32.mrb[61].mxu1 }
0x192c   : > { %v2790_v60 = vpop.f32.mrb[62].mxu1 }
0x192d   : > { %v2793_v61 = vmax.f32 %v2788_v58, 0.0  ;;  %v3658_v63 = vpop.f32.mrb[63].mxu1 }
0x192f   : > { %v2794_v0 = vpack.c.bf16 %v2793_v61, %v2793_v61 }
0x1931   : > { %3668 = vmatmul.mubr.msk.bf16.vlgmr.msra.gmra.mrb[56].mxu0 %vm2834_vm6, %v2794_v0 }
0x1a04   : > { %v2872_v3 = vpop.f32.mrb[56].mxu0 }
0x1a05   : > { %v2873_v2 = vadd.f32 %v3375_v1, %v2872_v3  ;;  %v3669_v6 = vpop.f32.mrb[57].mxu0 }
0x1a06   : > { %v2875_v7 = vpop.f32.mrb[58].mxu0 }
0x1a07   : > { %v3670_v8 = vpop.f32.mrb[59].mxu0  ;;  %v2878_v9 = vadd.f32 %v2873_v2, %v2725_v50 }
0x1a09   : > { %v2879_v48 = vsel %vm1122_vm2, %v2878_v9, 0.0 }
0x1a0a   : > { %2880 = vadd.xlane.f32.xlu1 %v2879_v48 }
0x1a97   : > { %v2881_v5 = vpop.xlane.xlu1 %2880 }
0x1a98   : > { %v2882_v11 = vmul.f32 0.03125, %v2881_v5 }
0x1a9a   : > { %v2883_v12 = vsub.f32 %v2878_v9, %v2882_v11 }
0x1a9c   : > { %v2884_v14 = vmul.f32 %v2883_v12, %v2883_v12 }
0x1a9e   : > { %v2885_v15 = vsel %vm1122_vm2, %v2884_v14, 0.0 }
0x1a9f   : > { %2886 = vadd.xlane.f32.xlu1 %v2885_v15 }
0x1b2c   : > { %v2887_v17 = vpop.xlane.xlu1 %2886 }
0x1b2d   : > { %v2888_v46 = vmul.f32 0.03125, %v2887_v17 }
0x1b2f   : > { %v2889_v18 = vadd.f32 1e-05, %v2888_v46 }
0x1b31   : > { %3876 = vrsqrt.f32 %v2889_v18 }
0x1b3b   : > { %v3877_v22 = vpop.eup %3876 }
0x1b3c   : > { %v2891_v24 = vmul.f32 %v3877_v22, %v2883_v12  ;;  %2906 = sbr.rel (%p3381_p4) target bundleno = 7292 (0x1c7c), region = 144 }
0x1b3e   : > { %v2896_v25 = vmul.f32 %v2895_v21, %v2891_v24 }
0x1b40   : > { %v2901_v26 = vadd.f32 %v2900_v23, %v2896_v25 }
0x1b42   : > { %2902 = vst.msk [vmem:[#allocation2] sm:$0xff] %vm1122_vm2, %v2901_v26  ;;  %v2909_v27 = vsel (!%p3381_p4), %vm1122_vm2, %v2901_v26, 0.0 }
0x1b43   : > { %2910 = vadd.xlane.f32.xlu0 %v2909_v27 }
0x1bd0   : > { %v2911_v28 = vpop.xlane.xlu0 %2910 }
0x1bd1   : > { %v2912_v29 = vmul.f32 0.03125, %v2911_v28 }
0x1bd3   : > { %v2913_v51 = vsub.f32 %v2901_v26, %v2912_v29 }
0x1bd5   : > { %v2914_v30 = vmul.f32 %v2913_v51, %v2913_v51 }
0x1bd7   : > { %v2915_v31 = vsel %vm1122_vm2, %v2914_v30, 0.0 }
0x1bd8   : > { %2916 = vadd.xlane.f32.xlu0 %v2915_v31 }
0x1c65   : > { %v2917_v55 = vpop.xlane.xlu0 %2916 }
0x1c66   : > { %v2918_v32 = vmul.f32 0.03125, %v2917_v55 }
0x1c68   : > { %v2919_v33 = vadd.f32 1e-05, %v2918_v32 }
0x1c6a   : > { %3878 = vrsqrt.f32 %v2919_v33 }
0x1c74   : > { %v3879_v34 = vpop.eup %3878 }
0x1c75   : > { %v2921_v35 = vmul.f32 %v3879_v34, %v2913_v51 }
0x1c77   : > { %v2928_v37 = vmul.f32 %v3382_v4, %v2921_v35 }
0x1c79   : > { %v2935_v38 = vadd.f32 %v3383_v36, %v2928_v37 }
0x1c7b   : > { %2936 = vst.msk [vmem:[%s1043_s21] sm:$0xff] %vm1122_vm2, %v2935_v38 }
0x1c7c PF: > { %s5615_s12 = sld [smem:[#allocation35_spill]]  ;;  %s5616_s13 = sld [smem:[#allocation45_spill]] }
0x1c7d   : > { %s5617_s25 = sld [smem:[#allocation66_spill]]  ;;  %s2951_s9 = sshll.u32 %s1043_s21, 4  ;;  %s2952_s9 = int_to_ptr.vmem [resolvable:$true] %s2951_s9 }
0x1c7e   : > { %s2938_s5 = scalar_lea.sflag [#allocation5], %s4949_s14  ;;  %s4180_s11 = scalar_lea.vmem %s2952_s9, 128 }
0x1c7f   : > { %p4181_p11 = scmp.ne.s32.totalorder %s2952_s9, %s4180_s11  ;;  %s4350_s18 = smov [#allocation20]  }
0x1c80   : > { %s4184_s2 = sshll.u32 %s4350_s18, 4  ;;  %s4185_s2 = int_to_ptr.vmem [resolvable:$false] %s4184_s2 }
0x1c81   : > { %s4186_s30 = scalar_lea.vmem %s4185_s2, 256  ;;  %p4187_p0 = scmp.lt.s32.totalorder %s2952_s9, %s4185_s2 }
0x1c82   : > { %s3385_s1 = sshll.u32 %s5615_s12, 7  ;;  %p5619_p1 = scmp.ne.s32.totalorder %s5616_s13, 0 }
0x1c83   : > { %s5618_s28 = smov %s5617_s25  ;;  %s5394_s8 = scalar_lea.hbm %s5617_s25, %s3385_s1 }
0x1c84   : > { %p4182_p3 = pnand %p4181_p11, %p5619_p1  ;;  %p4188_p10 = scmp.lt.s32.totalorder %s4186_s30, %s4180_s11 }
0x1c86   : > { %p4183_p9 = pneg %p4182_p3  ;;  %p4189_p13 = por %p4188_p10, %p4187_p0 }
0x1c88   : > { %p4190_p12 = pnand %p4189_p13, %p4183_p9 }
0x1c8a   : > { %4193 = shalt.err (!%p4190_p12)
}
0x1c8b   : > { %s4194_s14 = scalar_lea.hbm %s5394_s8, 128  ;;  %s4198_s0 = scalar_lea.hbm %s5618_s28, 256 }
0x1c8c   : > { %p4195_p5 = scmp.ne.s32.totalorder %s5394_s8, %s4194_s14  ;;  %p4199_p2 = scmp.lt.u32.totalorder %s5394_s8, %s5618_s28 }
0x1c8d   : > { %p4200_p6 = scmp.lt.u32.totalorder %s4198_s0, %s4194_s14  ;;  %p4202_p11 = scmp.lt.u32.totalorder %s4194_s14, %s5394_s8 }
0x1c8e   : > { %p4196_p7 = pnand %p4195_p5, %p5619_p1 }
0x1c8f   : > { %p4201_p4 = por %p4200_p6, %p4199_p2 }
0x1c90   : > { %p4197_p8 = pneg %p4196_p7 }
0x1c91   : > { %p4203_p3 = por %p4202_p11, %p4201_p4 }
0x1c93   : > { %p4204_p9 = pnand %p4203_p3, %p4197_p8 }
0x1c95   : > { %4207 = shalt.err (!%p4204_p9)
}
0x1c96   : > { %3691 = dma.vmem_to_hbm [thread:$0]  (%p5619_p1), %s2952_s9, 128, %s5394_s8, %s2938_s5  }
0x1c97 PF: > { %s5620_s15 = sld [smem:[#allocation38_spill]]  ;;  %s5621_s16 = sld [smem:[#allocation31_spill]] }
0x1c98   : > { %s5622_s26 = sld [smem:[#allocation46_spill]] }
0x1c9d   : > { %p3729_p0 = scmp.ge.s32.totalorder %s5620_s15, 2  ;;  %s2963_s29 = sand.u32 1, %s5621_s16  }
0x1c9e   : > { %p5623_p10 = scmp.ne.s32.totalorder %s5622_s26, 0  ;;  %s2964_s7 = scalar_lea.sflag [#allocation5], %s2963_s29 }
0x1ca0   : > { %p3725_p13 = pnand %p3729_p0, %p5623_p10 }
0x1ca2   : > { %4281 = dma.done.wait (!%p3725_p13), %s2964_s7, 128  }
0x1ca3   : > { %4283 = vsyncadd (!%p3725_p13), %s2964_s7, 4294967168  ;;  %s50_s3 = sadd.s32 1, %s5620_s15   ;;  %s5624_s0 = sld [smem:[#allocation29_spill]] }
0x1ca4   : > { %p47_p12 = scmp.ge.s32.totalorder %s50_s3, 6   ;;  %s5625_s30 = sld [smem:[#allocation30_spill]] }
0x1ca5   : > { %s5626_s20 = sld [smem:[#allocation42_spill]]  ;;  %s5627_s21 = sld [smem:[#allocation32_spill]] }
0x1ca6   : > { %s5628_s1 = sld [smem:[#allocation33_spill]]  ;;  %s5629_s22 = sld [smem:[#allocation43_spill]] }
0x1ca7   : > { %s5630_s2 = sld [smem:[#allocation36_spill]]  ;;  %s5631_s23 = sld [smem:[#allocation37_spill]] }
0x1ca8   : > { %s5632_s24 = sld [smem:[#allocation40_spill]]  ;;  %s5633_s25 = sld [smem:[#allocation41_spill]] }
0x1ca9   :  { %49 = sbr.rel (!%p47_p12) target bundleno = 40 (0x28), region = 279 }
0x1cb0   :  { %2969 = vsyncpa [#allocation4], 1 }
0x1cb1   :  { %2971 = vsyncpa [#allocation4 + $0x1], 1 }
0x1cb2   :  { %2972 = vsyncpa [#allocation7], 1 }
0x1cb3   :  { %2974 = vsyncpa [#allocation7 + $0x1], 1 }
0x1cb4   :  { %2975 = vsyncpa [#allocation10], 1 }
0x1cb5   :  { %2977 = vsyncpa [#allocation10 + $0x1], 1 }
0x1cb6   :  { %2978 = vsyncpa [#allocation13], 1 }
0x1cb7   :  { %2980 = vsyncpa [#allocation13 + $0x1], 1 }
0x1cb8   :  { %2981 = vsyncpa [#allocation16], 1 }
0x1cb9   :  { %2983 = vsyncpa [#allocation16 + $0x1], 1 }
0x1cba   :  { %2984 = vsyncpa [#allocation19], 1 }
0x1cbb   :  { %2986 = vsyncpa [#allocation19 + $0x1], 1 }
0x1cbc   :  { %2987 = vsyncpa [#allocation5], 1 }
0x1cbd   :  { %2989 = vsyncpa [#allocation5 + $0x1], 1 }

</bundles_post_ra>
